<compile_context>
chip_gen: v7x
topology: tpu7x:2x2x1
jax: 0.10.0
libtpu: 0.0.40
codegen_flags: <defaults>
</compile_context>

<pallas_src>
import functools

import jax
import jax.numpy as jnp
import numpy as np
from jax import lax
from jax.experimental import pallas as pl
from jax.experimental.pallas import tpu as pltpu

# ---- small problem sizes consistent with the module ----
BATCH = 2          # B
SEQ_TEXT = 8       # number of text tokens
SEQ_VIS = 16       # number of visual tokens
VISUAL_DIM = 64    # visual_dim
WIDTH = 32         # transformer_width
N_HEAD = 4         # transformer_heads
N_LAYERS = 2       # transformer_layers (small for the test)
LN_EPS = 1e-5

HEAD_DIM = WIDTH // N_HEAD
D_FF = 4 * WIDTH

# row layout of the packed "row-vector" operand
_ROWS_GLOBAL = 11       # mem_ln1(w,b) txt_ln(w,b) mem_ln2(w,b) out_ln(w,b)
                        # mem_b txt_b proj_out_b
_ROWS_PER_LAYER = 10    # norm1(w,b) norm2(w,b) norm3(w,b)
                        # self_proj_b cross_proj_b mlp_out_b fc_b


def make_context_decoder_kernel(B, Nt, Nv, V, W, H, n_layers):
    Dh = W // H
    Dff = 4 * W
    scale = 1.0 / float(np.sqrt(Dh))
    inv_sqrt2 = 1.0 / float(np.sqrt(2.0))

    def _ln(x, w, b):
        # x: (R, D) f32; w, b: (1, D)
        mu = jnp.mean(x, axis=-1, keepdims=True)
        xc = x - mu
        var = jnp.mean(xc * xc, axis=-1, keepdims=True)
        return xc * lax.rsqrt(var + LN_EPS) * w + b

    def _erf(x):
        # Abramowitz & Stegun 7.1.26 polynomial, |err| <= 1.5e-7
        # (exact-GELU semantics without relying on a lax.erf lowering).
        a1, a2, a3, a4, a5 = (0.254829592, -0.284496736, 1.421413741,
                              -1.453152027, 1.061405429)
        pc = 0.3275911
        ax = jnp.abs(x)
        t = 1.0 / (1.0 + pc * ax)
        poly = ((((a5 * t + a4) * t + a3) * t + a2) * t + a1) * t
        e = 1.0 - poly * jnp.exp(-ax * ax)
        return jnp.where(x < 0.0, -e, e)

    def _gelu(x):
        return 0.5 * x * (1.0 + _erf(x * inv_sqrt2))

    def _mha(q, k, v, nq, nk, w_out, b_out):
        # q: (B*nq, W), k/v: (B*nk, W) with head-major columns.
        # w_out: (W, W) in (in, out) layout, b_out: (1, W).
        ctx_heads = []
        for hd in range(H):                          # small static head loop
            cs = slice(hd * Dh, (hd + 1) * Dh)
            qh = q[:, cs].reshape(B, nq, Dh)
            kh = k[:, cs].reshape(B, nk, Dh)
            vh = v[:, cs].reshape(B, nk, Dh)
            # batched over B in one contraction (single leading batch dim)
            s = jnp.einsum("bnd,bmd->bnm", qh, kh,
                           preferred_element_type=jnp.float32) * scale
            s = s - jnp.max(s, axis=-1, keepdims=True)
            p = jnp.exp(s)
            p = p / jnp.sum(p, axis=-1, keepdims=True)
            ctx = jnp.einsum("bnm,bmd->bnd", p, vh,
                             preferred_element_type=jnp.float32)
            ctx_heads.append(ctx.reshape(B * nq, Dh))
        # lane-concat the head contexts and do ONE output-projection matmul
        ctx_full = jnp.concatenate(ctx_heads, axis=-1)            # (B*nq, W)
        return jnp.dot(ctx_full, w_out,
                       preferred_element_type=jnp.float32) + b_out

    def kernel(io_ref, vecs_ref, wg_ref, wl_ref, wm_ref, o_ref):
        # packed row vectors (LN gammas/betas + all biases): (rows, 128)
        vecs = vecs_ref[...].astype(jnp.float32)

        io = io_ref[...].astype(jnp.float32)           # (B*Nt + B*Nv, V)
        text = io[:B * Nt, :]
        vis = io[B * Nt:, :]

        # ---- text_proj LN + memory_proj LN1, then ONE fused input matmul ----
        h_text = _ln(text, vecs[2:3, :V], vecs[3:4, :V])   # txt_ln
        h_vis = _ln(vis, vecs[0:1, :V], vecs[1:2, :V])     # mem_ln1
        h = jnp.concatenate([h_text, h_vis], axis=0)       # (B*(Nt+Nv), V)
        w_comb = wg_ref[0:V, 0:2 * W]                      # [txt_w | mem_w]
        y = jnp.dot(h, w_comb, preferred_element_type=jnp.float32)
        x = y[:B * Nt, 0:W] + vecs[9:10, :W]               # text path  (B*Nt, W)
        mem = y[B * Nt:, W:2 * W] + vecs[8:9, :W]          # memory path
        mem = _ln(mem, vecs[4:5, :W], vecs[5:6, :W])       # mem_ln2    (B*Nv, W)

        # ---- hoisted cross-attention K/V for ALL layers (mem is layer-invariant) ----
        w_ckv_all = wg_ref[V:V + W, 0:2 * W * n_layers]    # (W, nL*2W)
        kv_all = jnp.dot(mem, w_ckv_all,
                         preferred_element_type=jnp.float32)   # (B*Nv, nL*2W)

        # ---- decoder layers (small static loop) ----
        for l in range(n_layers):
            wl = wl_ref[l].astype(jnp.float32)             # (W, 10W)
            base = _ROWS_GLOBAL + l * _ROWS_PER_LAYER

            # self-attention: q = k = v = norm1(x)
            hh = _ln(x, vecs[base:base + 1, :W], vecs[base + 1:base + 2, :W])
            qkv = jnp.dot(hh, wl[:, 0:3 * W],
                          preferred_element_type=jnp.float32)   # (B*Nt, 3W)
            q = qkv[:, 0 * W:1 * W]
            k = qkv[:, 1 * W:2 * W]
            v = qkv[:, 2 * W:3 * W]
            x = x + _mha(q, k, v, Nt, Nt,
                         wl[:, 3 * W:4 * W], vecs[base + 6:base + 7, :W])

            # cross-attention: q = norm2(x), k = v from hoisted kv_all
            hh = _ln(x, vecs[base + 2:base + 3, :W], vecs[base + 3:base + 4, :W])
            qc = jnp.dot(hh, wl[:, 4 * W:5 * W],
                         preferred_element_type=jnp.float32)    # (B*Nt, W)
            kc = kv_all[:, l * 2 * W:l * 2 * W + W]
            vc = kv_all[:, l * 2 * W + W:(l + 1) * 2 * W]
            x = x + _mha(qc, kc, vc, Nt, Nv,
                         wl[:, 5 * W:6 * W], vecs[base + 7:base + 8, :W])

            # MLP: norm3 -> Linear(W, 4W) -> GELU -> Linear(4W, W)
            hh = _ln(x, vecs[base + 4:base + 5, :W], vecs[base + 5:base + 6, :W])
            fc = jnp.dot(hh, wl[:, 6 * W:10 * W],
                         preferred_element_type=jnp.float32) + vecs[base + 9:base + 10, :Dff]
            fc = _gelu(fc)
            w_mlp = wm_ref[l].astype(jnp.float32)          # (4W, W)
            x = x + jnp.dot(fc, w_mlp,
                            preferred_element_type=jnp.float32) + vecs[base + 8:base + 9, :W]

        # ---- out_proj: LN(W) -> Linear(W, V) ----
        yo = _ln(x, vecs[6:7, :W], vecs[7:8, :W])
        w_op = wg_ref[V + W:V + 2 * W, 0:V]                # (W, V)
        yo = jnp.dot(yo, w_op,
                     preferred_element_type=jnp.float32) + vecs[10:11, :V]
        o_ref[...] = yo.astype(o_ref.dtype)

    return kernel


# ---------------- one-time parameter packing (OUTSIDE the hot path) ----------------
def prepare_packed_params(params):
    """Pack ~29 small tensors into 4 lane-dense operands, done once."""
    V, W = VISUAL_DIM, WIDTH
    layers = params["layers"]
    nL = len(layers)
    lanes = max(V, 4 * W, 2 * W * nL)      # 128 at these sizes

    def t(w):                              # (out, in) -> (in, out), done ONCE
        return jnp.transpose(w).astype(jnp.float32)

    rows = []

    def add(v):
        v = jnp.asarray(v, jnp.float32).reshape(-1)
        rows.append(jnp.pad(v, (0, lanes - v.shape[0])))

    # global row vectors (indices must match _ROWS_GLOBAL layout in the kernel)
    add(params["mem_ln1_w"]); add(params["mem_ln1_b"])     # 0, 1
    add(params["txt_ln_w"]); add(params["txt_ln_b"])       # 2, 3
    add(params["mem_ln2_w"]); add(params["mem_ln2_b"])     # 4, 5
    add(params["out_ln_w"]); add(params["out_ln_b"])       # 6, 7
    add(params["mem_b"]); add(params["txt_b"])             # 8, 9
    add(params["proj_out_b"])                              # 10
    # per-layer row vectors
    for lp in layers:
        add(lp["norm1_w"]); add(lp["norm1_b"])             # +0, +1
        add(lp["norm2_w"]); add(lp["norm2_b"])             # +2, +3
        add(lp["norm3_w"]); add(lp["norm3_b"])             # +4, +5
        add(lp["self"]["proj_b"])                          # +6
        add(lp["cross"]["proj_b"])                         # +7
        add(lp["out_b"])                                   # +8
        add(lp["fc_b"])                                    # +9
    rows += [jnp.zeros((lanes,), jnp.float32)] * ((-len(rows)) % 8)
    vecs = jnp.stack(rows)                                 # (rows, 128)

    # global weight matrices stacked along sublanes: (V + 2W, 128)
    lg = max(V, 2 * W, 2 * W * nL)
    w_comb = jnp.concatenate([t(params["txt_w"]), t(params["mem_w"])], axis=1)
    w_comb = jnp.pad(w_comb, ((0, 0), (0, lg - 2 * W)))            # (V, lg)
    w_ckv = jnp.concatenate(
        [jnp.concatenate([t(lp["cross"]["k_w"]), t(lp["cross"]["v_w"])], axis=1)
         for lp in layers], axis=1)                                # (W, nL*2W)
    w_ckv = jnp.pad(w_ckv, ((0, 0), (0, lg - 2 * W * nL)))
    w_op = jnp.pad(t(params["proj_out_w"]), ((0, 0), (0, lg - V))) # (W, lg)
    w_glob = jnp.concatenate([w_comb, w_ckv, w_op], axis=0)

    # per-layer weights with first dim W, lane-concatenated: (nL, W, 10W)
    def layer_w(lp):
        return jnp.concatenate(
            [t(lp["self"]["q_w"]), t(lp["self"]["k_w"]), t(lp["self"]["v_w"]),
             t(lp["self"]["proj_w"]),
             t(lp["cross"]["q_w"]),
             t(lp["cross"]["proj_w"]),
             t(lp["fc_w"])], axis=1)

    w_layers = jnp.stack([layer_w(lp) for lp in layers])
    w_mlp = jnp.stack([t(lp["out_w"]) for lp in layers])   # (nL, 4W, W)

    return dict(vecs=vecs, w_glob=w_glob, w_layers=w_layers,
                w_mlp=w_mlp, n_layers=nL)


# ---------------- hot-path wrapper ----------------
@functools.partial(jax.jit, static_argnames=("n_layers",))
def _context_decoder_impl(text, visual, vecs, w_glob, w_layers, w_mlp, *, n_layers):
    B, Nt, V = text.shape
    _, Nv, _ = visual.shape
    io = jnp.concatenate([text.reshape(B * Nt, V),
                          visual.reshape(B * Nv, V)], axis=0)
    vmem = pl.BlockSpec(memory_space=pltpu.MemorySpace.VMEM)
    # TODO(synk): on v7x, shard B across the two TensorCores with grid=(B,) +
    # dimension_semantics=("parallel",); on single-TC v5e/v6e the extra grid
    # step only adds overhead, so keep the single-step, fully VMEM-resident kernel.
    out = pl.pallas_call(
        make_context_decoder_kernel(B, Nt, Nv, V, WIDTH, N_HEAD, n_layers),
        out_shape=jax.ShapeDtypeStruct((B * Nt, V), jnp.float32),
        in_specs=[vmem] * 5,
        out_specs=vmem,
    )(io, vecs, w_glob, w_layers, w_mlp)
    return out.reshape(B, Nt, V)


def context_decoder(text, visual, packed):
    """text: (B, Nt, V), visual: (B, Nv, V) -> (B, Nt, V)."""
    return _context_decoder_impl(text, visual, packed["vecs"], packed["w_glob"],
                                 packed["w_layers"], packed["w_mlp"],
                                 n_layers=packed["n_layers"])


# ---------------- parameter construction ----------------
def init_params(key):
    ks = iter(jax.random.split(key, 128))

    def w(shape):
        return 0.02 * jax.random.normal(next(ks), shape, jnp.float32)

    def b(shape):
        return 0.02 * jax.random.normal(next(ks), shape, jnp.float32)

    def ln(dim):
        return (1.0 + 0.1 * jax.random.normal(next(ks), (dim,), jnp.float32),
                0.1 * jax.random.normal(next(ks), (dim,), jnp.float32))

    p = {}
    p["mem_ln1_w"], p["mem_ln1_b"] = ln(VISUAL_DIM)
    p["mem_w"] = w((WIDTH, VISUAL_DIM)); p["mem_b"] = b((WIDTH,))
    p["mem_ln2_w"], p["mem_ln2_b"] = ln(WIDTH)
    p["txt_ln_w"], p["txt_ln_b"] = ln(VISUAL_DIM)
    p["txt_w"] = w((WIDTH, VISUAL_DIM)); p["txt_b"] = b((WIDTH,))
    layers = []
    for _ in range(N_LAYERS):
        lp = {}
        lp["norm1_w"], lp["norm1_b"] = ln(WIDTH)
        lp["norm2_w"], lp["norm2_b"] = ln(WIDTH)
        lp["norm3_w"], lp["norm3_b"] = ln(WIDTH)
        lp["self"] = dict(q_w=w((WIDTH, WIDTH)), k_w=w((WIDTH, WIDTH)),
                          v_w=w((WIDTH, WIDTH)), proj_w=w((WIDTH, WIDTH)),
                          proj_b=b((WIDTH,)))
        lp["cross"] = dict(q_w=w((WIDTH, WIDTH)), k_w=w((WIDTH, WIDTH)),
                           v_w=w((WIDTH, WIDTH)), proj_w=w((WIDTH, WIDTH)),
                           proj_b=b((WIDTH,)))
        lp["fc_w"] = w((D_FF, WIDTH)); lp["fc_b"] = b((D_FF,))
        lp["out_w"] = w((WIDTH, D_FF)); lp["out_b"] = b((WIDTH,))
        layers.append(lp)
    p["layers"] = layers
    p["out_ln_w"], p["out_ln_b"] = ln(WIDTH)
    p["proj_out_w"] = w((VISUAL_DIM, WIDTH)); p["proj_out_b"] = b((VISUAL_DIM,))
    return p


# ---------------- pure-JAX reference (mirrors PyTorch semantics) ----------------
def reference(text, visual, p):
    HI = jax.lax.Precision.HIGHEST
    H, Dh = N_HEAD, HEAD_DIM
    scale = Dh ** (-0.5)

    def ln(x, w, b):
        mu = jnp.mean(x, -1, keepdims=True)
        var = jnp.mean((x - mu) ** 2, -1, keepdims=True)
        return (x - mu) / jnp.sqrt(var + LN_EPS) * w + b

    def linear(x, w, bias=None):
        y = jnp.dot(x, w.T, precision=HI)
        return y if bias is None else y + bias

    def attention(q_in, kv_in, ap):
        B, N, C = q_in.shape
        M = kv_in.shape[1]
        q = linear(q_in, ap["q_w"]).reshape(B, N, H, Dh)
        k = linear(kv_in, ap["k_w"]).reshape(B, M, H, Dh)
        v = linear(kv_in, ap["v_w"]).reshape(B, M, H, Dh)
        attn = jnp.einsum("bnkc,bmkc->bknm", q, k, precision=HI) * scale
        attn = jax.nn.softmax(attn, axis=-1)
        ctx = jnp.einsum("bknm,bmkc->bnkc", attn, v, precision=HI).reshape(B, N, C)
        return linear(ctx, ap["proj_w"], ap["proj_b"])

    mem = ln(visual, p["mem_ln1_w"], p["mem_ln1_b"])
    mem = linear(mem, p["mem_w"], p["mem_b"])
    mem = ln(mem, p["mem_ln2_w"], p["mem_ln2_b"])

    x = ln(text, p["txt_ln_w"], p["txt_ln_b"])
    x = linear(x, p["txt_w"], p["txt_b"])

    for lp in p["layers"]:
        h = ln(x, lp["norm1_w"], lp["norm1_b"])
        x = x + attention(h, h, lp["self"])
        h = ln(x, lp["norm2_w"], lp["norm2_b"])
        x = x + attention(h, mem, lp["cross"])
        h = ln(x, lp["norm3_w"], lp["norm3_b"])
        fc = linear(h, lp["fc_w"], lp["fc_b"])
        fc = jax.nn.gelu(fc, approximate=False)
        x = x + linear(fc, lp["out_w"], lp["out_b"])

    y = ln(x, p["out_ln_w"], p["out_ln_b"])
    return linear(y, p["proj_out_w"], p["proj_out_b"])


if __name__ == "__main__":
    root = jax.random.PRNGKey(0)
    kp, kt, kv = jax.random.split(root, 3)

    params = init_params(kp)
    packed = prepare_packed_params(params)      # one-time packing, not per-call
    text = jax.random.normal(kt, (BATCH, SEQ_TEXT, VISUAL_DIM), jnp.float32)
    visual = jax.random.normal(kv, (BATCH, SEQ_VIS, VISUAL_DIM), jnp.float32)

    out = jax.block_until_ready(context_decoder(text, visual, packed))
    ref = jax.block_until_ready(reference(text, visual, params))

    np.testing.assert_allclose(np.asarray(out), np.asarray(ref),
                               rtol=5e-5, atol=5e-5)
    print("KERNEL_OK")
</pallas_src>

<mosaic_0001>
module attributes {stable_mosaic.version = 11 : i64} {
  func.func @kernel(%arg0: memref<48x64xf32, #tpu.memory_space<vmem>>, %arg1: memref<32x128xf32, #tpu.memory_space<vmem>>, %arg2: memref<128x128xf32, #tpu.memory_space<vmem>>, %arg3: memref<2x32x320xf32, #tpu.memory_space<vmem>>, %arg4: memref<2x128x32xf32, #tpu.memory_space<vmem>>, %arg5: memref<16x64xf32, #tpu.memory_space<vmem>>) attributes {dimension_semantics = [], scalar_prefetch = 0 : i64, scratch_operands = 0 : i64, tpu.core_type = #tpu.core_type<tc>} {
    %c0 = arith.constant 0 : index
    %c0_0 = arith.constant 0 : index
    %0 = vector.load %arg1[%c0, %c0_0] : memref<32x128xf32, #tpu.memory_space<vmem>>, vector<32x128xf32>
    %c0_1 = arith.constant 0 : index
    %c0_2 = arith.constant 0 : index
    %1 = vector.load %arg0[%c0_1, %c0_2] : memref<48x64xf32, #tpu.memory_space<vmem>>, vector<48x64xf32>
    %2 = vector.extract_strided_slice %1 {offsets = [0, 0], sizes = [16, 64], strides = [1, 1]} : vector<48x64xf32> to vector<16x64xf32>
    %3 = vector.extract_strided_slice %1 {offsets = [16, 0], sizes = [32, 64], strides = [1, 1]} : vector<48x64xf32> to vector<32x64xf32>
    %4 = vector.extract_strided_slice %0 {offsets = [2, 0], sizes = [1, 64], strides = [1, 1]} : vector<32x128xf32> to vector<1x64xf32>
    %5 = vector.extract_strided_slice %0 {offsets = [3, 0], sizes = [1, 64], strides = [1, 1]} : vector<32x128xf32> to vector<1x64xf32>
    %cst = arith.constant dense<0.000000e+00> : vector<16xf32>
    %6 = vector.multi_reduction <add>, %2, %cst [1] : vector<16x64xf32> to vector<16xf32>
    %7 = vector.shape_cast %6 : vector<16xf32> to vector<16x1xf32>
    %cst_3 = arith.constant 6.400000e+01 : f32
    %8 = vector.broadcast %cst_3 : f32 to vector<16x1xf32>
    %9 = arith.divf %7, %8 : vector<16x1xf32>
    %10 = vector.broadcast %9 : vector<16x1xf32> to vector<16x64xf32>
    %11 = arith.subf %2, %10 : vector<16x64xf32>
    %12 = arith.mulf %11, %11 : vector<16x64xf32>
    %cst_4 = arith.constant dense<0.000000e+00> : vector<16xf32>
    %13 = vector.multi_reduction <add>, %12, %cst_4 [1] : vector<16x64xf32> to vector<16xf32>
    %14 = vector.shape_cast %13 : vector<16xf32> to vector<16x1xf32>
    %cst_5 = arith.constant 6.400000e+01 : f32
    %15 = vector.broadcast %cst_5 : f32 to vector<16x1xf32>
    %16 = arith.divf %14, %15 : vector<16x1xf32>
    %cst_6 = arith.constant 9.99999974E-6 : f32
    %17 = vector.broadcast %cst_6 : f32 to vector<16x1xf32>
    %18 = arith.addf %16, %17 : vector<16x1xf32>
    %19 = math.rsqrt %18 : vector<16x1xf32>
    %20 = vector.broadcast %19 : vector<16x1xf32> to vector<16x64xf32>
    %21 = arith.mulf %11, %20 : vector<16x64xf32>
    %22 = vector.broadcast %4 : vector<1x64xf32> to vector<16x64xf32>
    %23 = arith.mulf %21, %22 : vector<16x64xf32>
    %24 = vector.broadcast %5 : vector<1x64xf32> to vector<16x64xf32>
    %25 = arith.addf %23, %24 : vector<16x64xf32>
    %26 = vector.extract_strided_slice %0 {offsets = [0, 0], sizes = [1, 64], strides = [1, 1]} : vector<32x128xf32> to vector<1x64xf32>
    %27 = vector.extract_strided_slice %0 {offsets = [1, 0], sizes = [1, 64], strides = [1, 1]} : vector<32x128xf32> to vector<1x64xf32>
    %cst_7 = arith.constant dense<0.000000e+00> : vector<32xf32>
    %28 = vector.multi_reduction <add>, %3, %cst_7 [1] : vector<32x64xf32> to vector<32xf32>
    %29 = vector.shape_cast %28 : vector<32xf32> to vector<32x1xf32>
    %cst_8 = arith.constant 6.400000e+01 : f32
    %30 = vector.broadcast %cst_8 : f32 to vector<32x1xf32>
    %31 = arith.divf %29, %30 : vector<32x1xf32>
    %32 = vector.broadcast %31 : vector<32x1xf32> to vector<32x64xf32>
    %33 = arith.subf %3, %32 : vector<32x64xf32>
    %34 = arith.mulf %33, %33 : vector<32x64xf32>
    %cst_9 = arith.constant dense<0.000000e+00> : vector<32xf32>
    %35 = vector.multi_reduction <add>, %34, %cst_9 [1] : vector<32x64xf32> to vector<32xf32>
    %36 = vector.shape_cast %35 : vector<32xf32> to vector<32x1xf32>
    %cst_10 = arith.constant 6.400000e+01 : f32
    %37 = vector.broadcast %cst_10 : f32 to vector<32x1xf32>
    %38 = arith.divf %36, %37 : vector<32x1xf32>
    %cst_11 = arith.constant 9.99999974E-6 : f32
    %39 = vector.broadcast %cst_11 : f32 to vector<32x1xf32>
    %40 = arith.addf %38, %39 : vector<32x1xf32>
    %41 = math.rsqrt %40 : vector<32x1xf32>
    %42 = vector.broadcast %41 : vector<32x1xf32> to vector<32x64xf32>
    %43 = arith.mulf %33, %42 : vector<32x64xf32>
    %44 = vector.broadcast %26 : vector<1x64xf32> to vector<32x64xf32>
    %45 = arith.mulf %43, %44 : vector<32x64xf32>
    %46 = vector.broadcast %27 : vector<1x64xf32> to vector<32x64xf32>
    %47 = arith.addf %45, %46 : vector<32x64xf32>
    %48 = tpu.concatenate %25, %47 in 0 : vector<16x64xf32>, vector<32x64xf32> -> vector<48x64xf32>
    %c0_12 = arith.constant 0 : index
    %c0_13 = arith.constant 0 : index
    %49 = vector.load %arg2[%c0_12, %c0_13] : memref<128x128xf32, #tpu.memory_space<vmem>>, vector<64x64xf32>
    %cst_14 = arith.constant dense<0.000000e+00> : vector<48x64xf32>
    %50 = tpu.matmul %48, %49, %cst_14 {dimension_numbers = #tpu.dot_dimension_numbers<[1], [0], [0], [1], [0, 0, 1, 1], [], []>} : vector<48x64xf32>, vector<64x64xf32>, vector<48x64xf32> -> vector<48x64xf32>
    %51 = vector.extract_strided_slice %50 {offsets = [0, 0], sizes = [16, 32], strides = [1, 1]} : vector<48x64xf32> to vector<16x32xf32>
    %52 = vector.extract_strided_slice %0 {offsets = [9, 0], sizes = [1, 32], strides = [1, 1]} : vector<32x128xf32> to vector<1x32xf32>
    %53 = vector.broadcast %52 : vector<1x32xf32> to vector<16x32xf32>
    %54 = arith.addf %51, %53 : vector<16x32xf32>
    %55 = vector.extract_strided_slice %50 {offsets = [16, 32], sizes = [32, 32], strides = [1, 1]} : vector<48x64xf32> to vector<32x32xf32>
    %56 = vector.extract_strided_slice %0 {offsets = [8, 0], sizes = [1, 32], strides = [1, 1]} : vector<32x128xf32> to vector<1x32xf32>
    %57 = vector.broadcast %56 : vector<1x32xf32> to vector<32x32xf32>
    %58 = arith.addf %55, %57 : vector<32x32xf32>
    %59 = vector.extract_strided_slice %0 {offsets = [4, 0], sizes = [1, 32], strides = [1, 1]} : vector<32x128xf32> to vector<1x32xf32>
    %60 = vector.extract_strided_slice %0 {offsets = [5, 0], sizes = [1, 32], strides = [1, 1]} : vector<32x128xf32> to vector<1x32xf32>
    %cst_15 = arith.constant dense<0.000000e+00> : vector<32xf32>
    %61 = vector.multi_reduction <add>, %58, %cst_15 [1] : vector<32x32xf32> to vector<32xf32>
    %62 = vector.shape_cast %61 : vector<32xf32> to vector<32x1xf32>
    %cst_16 = arith.constant 3.200000e+01 : f32
    %63 = vector.broadcast %cst_16 : f32 to vector<32x1xf32>
    %64 = arith.divf %62, %63 : vector<32x1xf32>
    %65 = vector.broadcast %64 : vector<32x1xf32> to vector<32x32xf32>
    %66 = arith.subf %58, %65 : vector<32x32xf32>
    %67 = arith.mulf %66, %66 : vector<32x32xf32>
    %cst_17 = arith.constant dense<0.000000e+00> : vector<32xf32>
    %68 = vector.multi_reduction <add>, %67, %cst_17 [1] : vector<32x32xf32> to vector<32xf32>
    %69 = vector.shape_cast %68 : vector<32xf32> to vector<32x1xf32>
    %cst_18 = arith.constant 3.200000e+01 : f32
    %70 = vector.broadcast %cst_18 : f32 to vector<32x1xf32>
    %71 = arith.divf %69, %70 : vector<32x1xf32>
    %cst_19 = arith.constant 9.99999974E-6 : f32
    %72 = vector.broadcast %cst_19 : f32 to vector<32x1xf32>
    %73 = arith.addf %71, %72 : vector<32x1xf32>
    %74 = math.rsqrt %73 : vector<32x1xf32>
    %75 = vector.broadcast %74 : vector<32x1xf32> to vector<32x32xf32>
    %76 = arith.mulf %66, %75 : vector<32x32xf32>
    %77 = vector.broadcast %59 : vector<1x32xf32> to vector<32x32xf32>
    %78 = arith.mulf %76, %77 : vector<32x32xf32>
    %79 = vector.broadcast %60 : vector<1x32xf32> to vector<32x32xf32>
    %80 = arith.addf %78, %79 : vector<32x32xf32>
    %c64 = arith.constant 64 : index
    %c0_20 = arith.constant 0 : index
    %81 = vector.load %arg2[%c64, %c0_20] : memref<128x128xf32, #tpu.memory_space<vmem>>, vector<32x128xf32>
    %cst_21 = arith.constant dense<0.000000e+00> : vector<32x128xf32>
    %82 = tpu.matmul %80, %81, %cst_21 {dimension_numbers = #tpu.dot_dimension_numbers<[1], [0], [0], [1], [0, 0, 1, 1], [], []>} : vector<32x32xf32>, vector<32x128xf32>, vector<32x128xf32> -> vector<32x128xf32>
    %c0_22 = arith.constant 0 : index
    %c0_23 = arith.constant 0 : index
    %c0_24 = arith.constant 0 : index
    %83 = vector.load %arg3[%c0_22, %c0_23, %c0_24] : memref<2x32x320xf32, #tpu.memory_space<vmem>>, vector<1x32x320xf32>
    %84 = vector.shape_cast %83 : vector<1x32x320xf32> to vector<32x320xf32>
    %85 = vector.extract_strided_slice %0 {offsets = [11, 0], sizes = [1, 32], strides = [1, 1]} : vector<32x128xf32> to vector<1x32xf32>
    %86 = vector.extract_strided_slice %0 {offsets = [12, 0], sizes = [1, 32], strides = [1, 1]} : vector<32x128xf32> to vector<1x32xf32>
    %cst_25 = arith.constant dense<0.000000e+00> : vector<16xf32>
    %87 = vector.multi_reduction <add>, %54, %cst_25 [1] : vector<16x32xf32> to vector<16xf32>
    %88 = vector.shape_cast %87 : vector<16xf32> to vector<16x1xf32>
    %cst_26 = arith.constant 3.200000e+01 : f32
    %89 = vector.broadcast %cst_26 : f32 to vector<16x1xf32>
    %90 = arith.divf %88, %89 : vector<16x1xf32>
    %91 = vector.broadcast %90 : vector<16x1xf32> to vector<16x32xf32>
    %92 = arith.subf %54, %91 : vector<16x32xf32>
    %93 = arith.mulf %92, %92 : vector<16x32xf32>
    %cst_27 = arith.constant dense<0.000000e+00> : vector<16xf32>
    %94 = vector.multi_reduction <add>, %93, %cst_27 [1] : vector<16x32xf32> to vector<16xf32>
    %95 = vector.shape_cast %94 : vector<16xf32> to vector<16x1xf32>
    %cst_28 = arith.constant 3.200000e+01 : f32
    %96 = vector.broadcast %cst_28 : f32 to vector<16x1xf32>
    %97 = arith.divf %95, %96 : vector<16x1xf32>
    %cst_29 = arith.constant 9.99999974E-6 : f32
    %98 = vector.broadcast %cst_29 : f32 to vector<16x1xf32>
    %99 = arith.addf %97, %98 : vector<16x1xf32>
    %100 = math.rsqrt %99 : vector<16x1xf32>
    %101 = vector.broadcast %100 : vector<16x1xf32> to vector<16x32xf32>
    %102 = arith.mulf %92, %101 : vector<16x32xf32>
    %103 = vector.broadcast %85 : vector<1x32xf32> to vector<16x32xf32>
    %104 = arith.mulf %102, %103 : vector<16x32xf32>
    %105 = vector.broadcast %86 : vector<1x32xf32> to vector<16x32xf32>
    %106 = arith.addf %104, %105 : vector<16x32xf32>
    %107 = vector.extract_strided_slice %84 {offsets = [0, 0], sizes = [32, 96], strides = [1, 1]} : vector<32x320xf32> to vector<32x96xf32>
    %cst_30 = arith.constant dense<0.000000e+00> : vector<16x96xf32>
    %108 = tpu.matmul %106, %107, %cst_30 {dimension_numbers = #tpu.dot_dimension_numbers<[1], [0], [0], [1], [0, 0, 1, 1], [], []>} : vector<16x32xf32>, vector<32x96xf32>, vector<16x96xf32> -> vector<16x96xf32>
    %109 = vector.extract_strided_slice %108 {offsets = [0, 0], sizes = [16, 32], strides = [1, 1]} : vector<16x96xf32> to vector<16x32xf32>
    %110 = vector.extract_strided_slice %108 {offsets = [0, 32], sizes = [16, 32], strides = [1, 1]} : vector<16x96xf32> to vector<16x32xf32>
    %111 = vector.extract_strided_slice %108 {offsets = [0, 64], sizes = [16, 32], strides = [1, 1]} : vector<16x96xf32> to vector<16x32xf32>
    %112 = vector.extract_strided_slice %84 {offsets = [0, 96], sizes = [32, 32], strides = [1, 1]} : vector<32x320xf32> to vector<32x32xf32>
    %113 = vector.extract_strided_slice %0 {offsets = [17, 0], sizes = [1, 32], strides = [1, 1]} : vector<32x128xf32> to vector<1x32xf32>
    %114 = vector.extract_strided_slice %109 {offsets = [0, 0], sizes = [16, 8], strides = [1, 1]} : vector<16x32xf32> to vector<16x8xf32>
    %115 = vector.shape_cast %114 : vector<16x8xf32> to vector<2x8x8xf32>
    %116 = vector.extract_strided_slice %110 {offsets = [0, 0], sizes = [16, 8], strides = [1, 1]} : vector<16x32xf32> to vector<16x8xf32>
    %117 = vector.shape_cast %116 : vector<16x8xf32> to vector<2x8x8xf32>
    %118 = vector.extract_strided_slice %111 {offsets = [0, 0], sizes = [16, 8], strides = [1, 1]} : vector<16x32xf32> to vector<16x8xf32>
    %119 = vector.shape_cast %118 : vector<16x8xf32> to vector<2x8x8xf32>
    "tpu.trace_start"() <{level = 10 : i32, message = "bnd,bmd->bnm"}> : () -> ()
    %cst_31 = arith.constant dense<0.000000e+00> : vector<2x8x8xf32>
    %120 = tpu.matmul %115, %117, %cst_31 {dimension_numbers = #tpu.dot_dimension_numbers<[2], [2], [1], [1], [0, 0, 0, 1, 1, 1], [0], [0]>} : vector<2x8x8xf32>, vector<2x8x8xf32>, vector<2x8x8xf32> -> vector<2x8x8xf32>
    "tpu.trace_stop"() : () -> ()
    %cst_32 = arith.constant 0.353553385 : f32
    %121 = vector.broadcast %cst_32 : f32 to vector<2x8x8xf32>
    %122 = arith.mulf %120, %121 : vector<2x8x8xf32>
    %cst_33 = arith.constant dense<0xFF800000> : vector<2x8xf32>
    %123 = vector.multi_reduction <maximumf>, %122, %cst_33 [2] : vector<2x8x8xf32> to vector<2x8xf32>
    %124 = vector.shape_cast %123 : vector<2x8xf32> to vector<2x8x1xf32>
    %125 = vector.broadcast %124 : vector<2x8x1xf32> to vector<2x8x8xf32>
    %126 = arith.subf %122, %125 : vector<2x8x8xf32>
    %127 = math.exp %126 : vector<2x8x8xf32>
    %cst_34 = arith.constant dense<0.000000e+00> : vector<2x8xf32>
    %128 = vector.multi_reduction <add>, %127, %cst_34 [2] : vector<2x8x8xf32> to vector<2x8xf32>
    %129 = vector.shape_cast %128 : vector<2x8xf32> to vector<2x8x1xf32>
    %130 = vector.broadcast %129 : vector<2x8x1xf32> to vector<2x8x8xf32>
    %131 = arith.divf %127, %130 : vector<2x8x8xf32>
    "tpu.trace_start"() <{level = 10 : i32, message = "bnm,bmd->bnd"}> : () -> ()
    %cst_35 = arith.constant dense<0.000000e+00> : vector<2x8x8xf32>
    %132 = tpu.matmul %131, %119, %cst_35 {dimension_numbers = #tpu.dot_dimension_numbers<[2], [1], [1], [2], [0, 0, 0, 1, 1, 2], [0], [0]>} : vector<2x8x8xf32>, vector<2x8x8xf32>, vector<2x8x8xf32> -> vector<2x8x8xf32>
    "tpu.trace_stop"() : () -> ()
    %133 = vector.shape_cast %132 : vector<2x8x8xf32> to vector<16x8xf32>
    %134 = vector.extract_strided_slice %109 {offsets = [0, 8], sizes = [16, 8], strides = [1, 1]} : vector<16x32xf32> to vector<16x8xf32>
    %135 = vector.shape_cast %134 : vector<16x8xf32> to vector<2x8x8xf32>
    %136 = vector.extract_strided_slice %110 {offsets = [0, 8], sizes = [16, 8], strides = [1, 1]} : vector<16x32xf32> to vector<16x8xf32>
    %137 = vector.shape_cast %136 : vector<16x8xf32> to vector<2x8x8xf32>
    %138 = vector.extract_strided_slice %111 {offsets = [0, 8], sizes = [16, 8], strides = [1, 1]} : vector<16x32xf32> to vector<16x8xf32>
    %139 = vector.shape_cast %138 : vector<16x8xf32> to vector<2x8x8xf32>
    "tpu.trace_start"() <{level = 10 : i32, message = "bnd,bmd->bnm"}> : () -> ()
    %cst_36 = arith.constant dense<0.000000e+00> : vector<2x8x8xf32>
    %140 = tpu.matmul %135, %137, %cst_36 {dimension_numbers = #tpu.dot_dimension_numbers<[2], [2], [1], [1], [0, 0, 0, 1, 1, 1], [0], [0]>} : vector<2x8x8xf32>, vector<2x8x8xf32>, vector<2x8x8xf32> -> vector<2x8x8xf32>
    "tpu.trace_stop"() : () -> ()
    %cst_37 = arith.constant 0.353553385 : f32
    %141 = vector.broadcast %cst_37 : f32 to vector<2x8x8xf32>
    %142 = arith.mulf %140, %141 : vector<2x8x8xf32>
    %cst_38 = arith.constant dense<0xFF800000> : vector<2x8xf32>
    %143 = vector.multi_reduction <maximumf>, %142, %cst_38 [2] : vector<2x8x8xf32> to vector<2x8xf32>
    %144 = vector.shape_cast %143 : vector<2x8xf32> to vector<2x8x1xf32>
    %145 = vector.broadcast %144 : vector<2x8x1xf32> to vector<2x8x8xf32>
    %146 = arith.subf %142, %145 : vector<2x8x8xf32>
    %147 = math.exp %146 : vector<2x8x8xf32>
    %cst_39 = arith.constant dense<0.000000e+00> : vector<2x8xf32>
    %148 = vector.multi_reduction <add>, %147, %cst_39 [2] : vector<2x8x8xf32> to vector<2x8xf32>
    %149 = vector.shape_cast %148 : vector<2x8xf32> to vector<2x8x1xf32>
    %150 = vector.broadcast %149 : vector<2x8x1xf32> to vector<2x8x8xf32>
    %151 = arith.divf %147, %150 : vector<2x8x8xf32>
    "tpu.trace_start"() <{level = 10 : i32, message = "bnm,bmd->bnd"}> : () -> ()
    %cst_40 = arith.constant dense<0.000000e+00> : vector<2x8x8xf32>
    %152 = tpu.matmul %151, %139, %cst_40 {dimension_numbers = #tpu.dot_dimension_numbers<[2], [1], [1], [2], [0, 0, 0, 1, 1, 2], [0], [0]>} : vector<2x8x8xf32>, vector<2x8x8xf32>, vector<2x8x8xf32> -> vector<2x8x8xf32>
    "tpu.trace_stop"() : () -> ()
    %153 = vector.shape_cast %152 : vector<2x8x8xf32> to vector<16x8xf32>
    %154 = vector.extract_strided_slice %109 {offsets = [0, 16], sizes = [16, 8], strides = [1, 1]} : vector<16x32xf32> to vector<16x8xf32>
    %155 = vector.shape_cast %154 : vector<16x8xf32> to vector<2x8x8xf32>
    %156 = vector.extract_strided_slice %110 {offsets = [0, 16], sizes = [16, 8], strides = [1, 1]} : vector<16x32xf32> to vector<16x8xf32>
    %157 = vector.shape_cast %156 : vector<16x8xf32> to vector<2x8x8xf32>
    %158 = vector.extract_strided_slice %111 {offsets = [0, 16], sizes = [16, 8], strides = [1, 1]} : vector<16x32xf32> to vector<16x8xf32>
    %159 = vector.shape_cast %158 : vector<16x8xf32> to vector<2x8x8xf32>
    "tpu.trace_start"() <{level = 10 : i32, message = "bnd,bmd->bnm"}> : () -> ()
    %cst_41 = arith.constant dense<0.000000e+00> : vector<2x8x8xf32>
    %160 = tpu.matmul %155, %157, %cst_41 {dimension_numbers = #tpu.dot_dimension_numbers<[2], [2], [1], [1], [0, 0, 0, 1, 1, 1], [0], [0]>} : vector<2x8x8xf32>, vector<2x8x8xf32>, vector<2x8x8xf32> -> vector<2x8x8xf32>
    "tpu.trace_stop"() : () -> ()
    %cst_42 = arith.constant 0.353553385 : f32
    %161 = vector.broadcast %cst_42 : f32 to vector<2x8x8xf32>
    %162 = arith.mulf %160, %161 : vector<2x8x8xf32>
    %cst_43 = arith.constant dense<0xFF800000> : vector<2x8xf32>
    %163 = vector.multi_reduction <maximumf>, %162, %cst_43 [2] : vector<2x8x8xf32> to vector<2x8xf32>
    %164 = vector.shape_cast %163 : vector<2x8xf32> to vector<2x8x1xf32>
    %165 = vector.broadcast %164 : vector<2x8x1xf32> to vector<2x8x8xf32>
    %166 = arith.subf %162, %165 : vector<2x8x8xf32>
    %167 = math.exp %166 : vector<2x8x8xf32>
    %cst_44 = arith.constant dense<0.000000e+00> : vector<2x8xf32>
    %168 = vector.multi_reduction <add>, %167, %cst_44 [2] : vector<2x8x8xf32> to vector<2x8xf32>
    %169 = vector.shape_cast %168 : vector<2x8xf32> to vector<2x8x1xf32>
    %170 = vector.broadcast %169 : vector<2x8x1xf32> to vector<2x8x8xf32>
    %171 = arith.divf %167, %170 : vector<2x8x8xf32>
    "tpu.trace_start"() <{level = 10 : i32, message = "bnm,bmd->bnd"}> : () -> ()
    %cst_45 = arith.constant dense<0.000000e+00> : vector<2x8x8xf32>
    %172 = tpu.matmul %171, %159, %cst_45 {dimension_numbers = #tpu.dot_dimension_numbers<[2], [1], [1], [2], [0, 0, 0, 1, 1, 2], [0], [0]>} : vector<2x8x8xf32>, vector<2x8x8xf32>, vector<2x8x8xf32> -> vector<2x8x8xf32>
    "tpu.trace_stop"() : () -> ()
    %173 = vector.shape_cast %172 : vector<2x8x8xf32> to vector<16x8xf32>
    %174 = vector.extract_strided_slice %109 {offsets = [0, 24], sizes = [16, 8], strides = [1, 1]} : vector<16x32xf32> to vector<16x8xf32>
    %175 = vector.shape_cast %174 : vector<16x8xf32> to vector<2x8x8xf32>
    %176 = vector.extract_strided_slice %110 {offsets = [0, 24], sizes = [16, 8], strides = [1, 1]} : vector<16x32xf32> to vector<16x8xf32>
    %177 = vector.shape_cast %176 : vector<16x8xf32> to vector<2x8x8xf32>
    %178 = vector.extract_strided_slice %111 {offsets = [0, 24], sizes = [16, 8], strides = [1, 1]} : vector<16x32xf32> to vector<16x8xf32>
    %179 = vector.shape_cast %178 : vector<16x8xf32> to vector<2x8x8xf32>
    "tpu.trace_start"() <{level = 10 : i32, message = "bnd,bmd->bnm"}> : () -> ()
    %cst_46 = arith.constant dense<0.000000e+00> : vector<2x8x8xf32>
    %180 = tpu.matmul %175, %177, %cst_46 {dimension_numbers = #tpu.dot_dimension_numbers<[2], [2], [1], [1], [0, 0, 0, 1, 1, 1], [0], [0]>} : vector<2x8x8xf32>, vector<2x8x8xf32>, vector<2x8x8xf32> -> vector<2x8x8xf32>
    "tpu.trace_stop"() : () -> ()
    %cst_47 = arith.constant 0.353553385 : f32
    %181 = vector.broadcast %cst_47 : f32 to vector<2x8x8xf32>
    %182 = arith.mulf %180, %181 : vector<2x8x8xf32>
    %cst_48 = arith.constant dense<0xFF800000> : vector<2x8xf32>
    %183 = vector.multi_reduction <maximumf>, %182, %cst_48 [2] : vector<2x8x8xf32> to vector<2x8xf32>
    %184 = vector.shape_cast %183 : vector<2x8xf32> to vector<2x8x1xf32>
    %185 = vector.broadcast %184 : vector<2x8x1xf32> to vector<2x8x8xf32>
    %186 = arith.subf %182, %185 : vector<2x8x8xf32>
    %187 = math.exp %186 : vector<2x8x8xf32>
    %cst_49 = arith.constant dense<0.000000e+00> : vector<2x8xf32>
    %188 = vector.multi_reduction <add>, %187, %cst_49 [2] : vector<2x8x8xf32> to vector<2x8xf32>
    %189 = vector.shape_cast %188 : vector<2x8xf32> to vector<2x8x1xf32>
    %190 = vector.broadcast %189 : vector<2x8x1xf32> to vector<2x8x8xf32>
    %191 = arith.divf %187, %190 : vector<2x8x8xf32>
    "tpu.trace_start"() <{level = 10 : i32, message = "bnm,bmd->bnd"}> : () -> ()
    %cst_50 = arith.constant dense<0.000000e+00> : vector<2x8x8xf32>
    %192 = tpu.matmul %191, %179, %cst_50 {dimension_numbers = #tpu.dot_dimension_numbers<[2], [1], [1], [2], [0, 0, 0, 1, 1, 2], [0], [0]>} : vector<2x8x8xf32>, vector<2x8x8xf32>, vector<2x8x8xf32> -> vector<2x8x8xf32>
    "tpu.trace_stop"() : () -> ()
    %193 = vector.shape_cast %192 : vector<2x8x8xf32> to vector<16x8xf32>
    %194 = tpu.concatenate %133, %153, %173, %193 in 1 : vector<16x8xf32>, vector<16x8xf32>, vector<16x8xf32>, vector<16x8xf32> -> vector<16x32xf32>
    %cst_51 = arith.constant dense<0.000000e+00> : vector<16x32xf32>
    %195 = tpu.matmul %194, %112, %cst_51 {dimension_numbers = #tpu.dot_dimension_numbers<[1], [0], [0], [1], [0, 0, 1, 1], [], []>} : vector<16x32xf32>, vector<32x32xf32>, vector<16x32xf32> -> vector<16x32xf32>
    %196 = vector.broadcast %113 : vector<1x32xf32> to vector<16x32xf32>
    %197 = arith.addf %195, %196 : vector<16x32xf32>
    %198 = arith.addf %54, %197 : vector<16x32xf32>
    %199 = vector.extract_strided_slice %0 {offsets = [13, 0], sizes = [1, 32], strides = [1, 1]} : vector<32x128xf32> to vector<1x32xf32>
    %200 = vector.extract_strided_slice %0 {offsets = [14, 0], sizes = [1, 32], strides = [1, 1]} : vector<32x128xf32> to vector<1x32xf32>
    %cst_52 = arith.constant dense<0.000000e+00> : vector<16xf32>
    %201 = vector.multi_reduction <add>, %198, %cst_52 [1] : vector<16x32xf32> to vector<16xf32>
    %202 = vector.shape_cast %201 : vector<16xf32> to vector<16x1xf32>
    %cst_53 = arith.constant 3.200000e+01 : f32
    %203 = vector.broadcast %cst_53 : f32 to vector<16x1xf32>
    %204 = arith.divf %202, %203 : vector<16x1xf32>
    %205 = vector.broadcast %204 : vector<16x1xf32> to vector<16x32xf32>
    %206 = arith.subf %198, %205 : vector<16x32xf32>
    %207 = arith.mulf %206, %206 : vector<16x32xf32>
    %cst_54 = arith.constant dense<0.000000e+00> : vector<16xf32>
    %208 = vector.multi_reduction <add>, %207, %cst_54 [1] : vector<16x32xf32> to vector<16xf32>
    %209 = vector.shape_cast %208 : vector<16xf32> to vector<16x1xf32>
    %cst_55 = arith.constant 3.200000e+01 : f32
    %210 = vector.broadcast %cst_55 : f32 to vector<16x1xf32>
    %211 = arith.divf %209, %210 : vector<16x1xf32>
    %cst_56 = arith.constant 9.99999974E-6 : f32
    %212 = vector.broadcast %cst_56 : f32 to vector<16x1xf32>
    %213 = arith.addf %211, %212 : vector<16x1xf32>
    %214 = math.rsqrt %213 : vector<16x1xf32>
    %215 = vector.broadcast %214 : vector<16x1xf32> to vector<16x32xf32>
    %216 = arith.mulf %206, %215 : vector<16x32xf32>
    %217 = vector.broadcast %199 : vector<1x32xf32> to vector<16x32xf32>
    %218 = arith.mulf %216, %217 : vector<16x32xf32>
    %219 = vector.broadcast %200 : vector<1x32xf32> to vector<16x32xf32>
    %220 = arith.addf %218, %219 : vector<16x32xf32>
    %221 = vector.extract_strided_slice %84 {offsets = [0, 128], sizes = [32, 32], strides = [1, 1]} : vector<32x320xf32> to vector<32x32xf32>
    %cst_57 = arith.constant dense<0.000000e+00> : vector<16x32xf32>
    %222 = tpu.matmul %220, %221, %cst_57 {dimension_numbers = #tpu.dot_dimension_numbers<[1], [0], [0], [1], [0, 0, 1, 1], [], []>} : vector<16x32xf32>, vector<32x32xf32>, vector<16x32xf32> -> vector<16x32xf32>
    %223 = vector.extract_strided_slice %82 {offsets = [0, 0], sizes = [32, 32], strides = [1, 1]} : vector<32x128xf32> to vector<32x32xf32>
    %224 = vector.extract_strided_slice %82 {offsets = [0, 32], sizes = [32, 32], strides = [1, 1]} : vector<32x128xf32> to vector<32x32xf32>
    %225 = vector.extract_strided_slice %84 {offsets = [0, 160], sizes = [32, 32], strides = [1, 1]} : vector<32x320xf32> to vector<32x32xf32>
    %226 = vector.extract_strided_slice %0 {offsets = [18, 0], sizes = [1, 32], strides = [1, 1]} : vector<32x128xf32> to vector<1x32xf32>
    %227 = vector.extract_strided_slice %222 {offsets = [0, 0], sizes = [16, 8], strides = [1, 1]} : vector<16x32xf32> to vector<16x8xf32>
    %228 = vector.shape_cast %227 : vector<16x8xf32> to vector<2x8x8xf32>
    %229 = vector.extract_strided_slice %223 {offsets = [0, 0], sizes = [32, 8], strides = [1, 1]} : vector<32x32xf32> to vector<32x8xf32>
    %230 = vector.shape_cast %229 : vector<32x8xf32> to vector<2x16x8xf32>
    %231 = vector.extract_strided_slice %224 {offsets = [0, 0], sizes = [32, 8], strides = [1, 1]} : vector<32x32xf32> to vector<32x8xf32>
    %232 = vector.shape_cast %231 : vector<32x8xf32> to vector<2x16x8xf32>
    "tpu.trace_start"() <{level = 10 : i32, message = "bnd,bmd->bnm"}> : () -> ()
    %cst_58 = arith.constant dense<0.000000e+00> : vector<2x8x16xf32>
    %233 = tpu.matmul %228, %230, %cst_58 {dimension_numbers = #tpu.dot_dimension_numbers<[2], [2], [1], [1], [0, 0, 0, 1, 1, 1], [0], [0]>} : vector<2x8x8xf32>, vector<2x16x8xf32>, vector<2x8x16xf32> -> vector<2x8x16xf32>
    "tpu.trace_stop"() : () -> ()
    %cst_59 = arith.constant 0.353553385 : f32
    %234 = vector.broadcast %cst_59 : f32 to vector<2x8x16xf32>
    %235 = arith.mulf %233, %234 : vector<2x8x16xf32>
    %cst_60 = arith.constant dense<0xFF800000> : vector<2x8xf32>
    %236 = vector.multi_reduction <maximumf>, %235, %cst_60 [2] : vector<2x8x16xf32> to vector<2x8xf32>
    %237 = vector.shape_cast %236 : vector<2x8xf32> to vector<2x8x1xf32>
    %238 = vector.broadcast %237 : vector<2x8x1xf32> to vector<2x8x16xf32>
    %239 = arith.subf %235, %238 : vector<2x8x16xf32>
    %240 = math.exp %239 : vector<2x8x16xf32>
    %cst_61 = arith.constant dense<0.000000e+00> : vector<2x8xf32>
    %241 = vector.multi_reduction <add>, %240, %cst_61 [2] : vector<2x8x16xf32> to vector<2x8xf32>
    %242 = vector.shape_cast %241 : vector<2x8xf32> to vector<2x8x1xf32>
    %243 = vector.broadcast %242 : vector<2x8x1xf32> to vector<2x8x16xf32>
    %244 = arith.divf %240, %243 : vector<2x8x16xf32>
    "tpu.trace_start"() <{level = 10 : i32, message = "bnm,bmd->bnd"}> : () -> ()
    %cst_62 = arith.constant dense<0.000000e+00> : vector<2x8x8xf32>
    %245 = tpu.matmul %244, %232, %cst_62 {dimension_numbers = #tpu.dot_dimension_numbers<[2], [1], [1], [2], [0, 0, 0, 1, 1, 2], [0], [0]>} : vector<2x8x16xf32>, vector<2x16x8xf32>, vector<2x8x8xf32> -> vector<2x8x8xf32>
    "tpu.trace_stop"() : () -> ()
    %246 = vector.shape_cast %245 : vector<2x8x8xf32> to vector<16x8xf32>
    %247 = vector.extract_strided_slice %222 {offsets = [0, 8], sizes = [16, 8], strides = [1, 1]} : vector<16x32xf32> to vector<16x8xf32>
    %248 = vector.shape_cast %247 : vector<16x8xf32> to vector<2x8x8xf32>
    %249 = vector.extract_strided_slice %223 {offsets = [0, 8], sizes = [32, 8], strides = [1, 1]} : vector<32x32xf32> to vector<32x8xf32>
    %250 = vector.shape_cast %249 : vector<32x8xf32> to vector<2x16x8xf32>
    %251 = vector.extract_strided_slice %224 {offsets = [0, 8], sizes = [32, 8], strides = [1, 1]} : vector<32x32xf32> to vector<32x8xf32>
    %252 = vector.shape_cast %251 : vector<32x8xf32> to vector<2x16x8xf32>
    "tpu.trace_start"() <{level = 10 : i32, message = "bnd,bmd->bnm"}> : () -> ()
    %cst_63 = arith.constant dense<0.000000e+00> : vector<2x8x16xf32>
    %253 = tpu.matmul %248, %250, %cst_63 {dimension_numbers = #tpu.dot_dimension_numbers<[2], [2], [1], [1], [0, 0, 0, 1, 1, 1], [0], [0]>} : vector<2x8x8xf32>, vector<2x16x8xf32>, vector<2x8x16xf32> -> vector<2x8x16xf32>
    "tpu.trace_stop"() : () -> ()
    %cst_64 = arith.constant 0.353553385 : f32
    %254 = vector.broadcast %cst_64 : f32 to vector<2x8x16xf32>
    %255 = arith.mulf %253, %254 : vector<2x8x16xf32>
    %cst_65 = arith.constant dense<0xFF800000> : vector<2x8xf32>
    %256 = vector.multi_reduction <maximumf>, %255, %cst_65 [2] : vector<2x8x16xf32> to vector<2x8xf32>
    %257 = vector.shape_cast %256 : vector<2x8xf32> to vector<2x8x1xf32>
    %258 = vector.broadcast %257 : vector<2x8x1xf32> to vector<2x8x16xf32>
    %259 = arith.subf %255, %258 : vector<2x8x16xf32>
    %260 = math.exp %259 : vector<2x8x16xf32>
    %cst_66 = arith.constant dense<0.000000e+00> : vector<2x8xf32>
    %261 = vector.multi_reduction <add>, %260, %cst_66 [2] : vector<2x8x16xf32> to vector<2x8xf32>
    %262 = vector.shape_cast %261 : vector<2x8xf32> to vector<2x8x1xf32>
    %263 = vector.broadcast %262 : vector<2x8x1xf32> to vector<2x8x16xf32>
    %264 = arith.divf %260, %263 : vector<2x8x16xf32>
    "tpu.trace_start"() <{level = 10 : i32, message = "bnm,bmd->bnd"}> : () -> ()
    %cst_67 = arith.constant dense<0.000000e+00> : vector<2x8x8xf32>
    %265 = tpu.matmul %264, %252, %cst_67 {dimension_numbers = #tpu.dot_dimension_numbers<[2], [1], [1], [2], [0, 0, 0, 1, 1, 2], [0], [0]>} : vector<2x8x16xf32>, vector<2x16x8xf32>, vector<2x8x8xf32> -> vector<2x8x8xf32>
    "tpu.trace_stop"() : () -> ()
    %266 = vector.shape_cast %265 : vector<2x8x8xf32> to vector<16x8xf32>
    %267 = vector.extract_strided_slice %222 {offsets = [0, 16], sizes = [16, 8], strides = [1, 1]} : vector<16x32xf32> to vector<16x8xf32>
    %268 = vector.shape_cast %267 : vector<16x8xf32> to vector<2x8x8xf32>
    %269 = vector.extract_strided_slice %223 {offsets = [0, 16], sizes = [32, 8], strides = [1, 1]} : vector<32x32xf32> to vector<32x8xf32>
    %270 = vector.shape_cast %269 : vector<32x8xf32> to vector<2x16x8xf32>
    %271 = vector.extract_strided_slice %224 {offsets = [0, 16], sizes = [32, 8], strides = [1, 1]} : vector<32x32xf32> to vector<32x8xf32>
    %272 = vector.shape_cast %271 : vector<32x8xf32> to vector<2x16x8xf32>
    "tpu.trace_start"() <{level = 10 : i32, message = "bnd,bmd->bnm"}> : () -> ()
    %cst_68 = arith.constant dense<0.000000e+00> : vector<2x8x16xf32>
    %273 = tpu.matmul %268, %270, %cst_68 {dimension_numbers = #tpu.dot_dimension_numbers<[2], [2], [1], [1], [0, 0, 0, 1, 1, 1], [0], [0]>} : vector<2x8x8xf32>, vector<2x16x8xf32>, vector<2x8x16xf32> -> vector<2x8x16xf32>
    "tpu.trace_stop"() : () -> ()
    %cst_69 = arith.constant 0.353553385 : f32
    %274 = vector.broadcast %cst_69 : f32 to vector<2x8x16xf32>
    %275 = arith.mulf %273, %274 : vector<2x8x16xf32>
    %cst_70 = arith.constant dense<0xFF800000> : vector<2x8xf32>
    %276 = vector.multi_reduction <maximumf>, %275, %cst_70 [2] : vector<2x8x16xf32> to vector<2x8xf32>
    %277 = vector.shape_cast %276 : vector<2x8xf32> to vector<2x8x1xf32>
    %278 = vector.broadcast %277 : vector<2x8x1xf32> to vector<2x8x16xf32>
    %279 = arith.subf %275, %278 : vector<2x8x16xf32>
    %280 = math.exp %279 : vector<2x8x16xf32>
    %cst_71 = arith.constant dense<0.000000e+00> : vector<2x8xf32>
    %281 = vector.multi_reduction <add>, %280, %cst_71 [2] : vector<2x8x16xf32> to vector<2x8xf32>
    %282 = vector.shape_cast %281 : vector<2x8xf32> to vector<2x8x1xf32>
    %283 = vector.broadcast %282 : vector<2x8x1xf32> to vector<2x8x16xf32>
    %284 = arith.divf %280, %283 : vector<2x8x16xf32>
    "tpu.trace_start"() <{level = 10 : i32, message = "bnm,bmd->bnd"}> : () -> ()
    %cst_72 = arith.constant dense<0.000000e+00> : vector<2x8x8xf32>
    %285 = tpu.matmul %284, %272, %cst_72 {dimension_numbers = #tpu.dot_dimension_numbers<[2], [1], [1], [2], [0, 0, 0, 1, 1, 2], [0], [0]>} : vector<2x8x16xf32>, vector<2x16x8xf32>, vector<2x8x8xf32> -> vector<2x8x8xf32>
    "tpu.trace_stop"() : () -> ()
    %286 = vector.shape_cast %285 : vector<2x8x8xf32> to vector<16x8xf32>
    %287 = vector.extract_strided_slice %222 {offsets = [0, 24], sizes = [16, 8], strides = [1, 1]} : vector<16x32xf32> to vector<16x8xf32>
    %288 = vector.shape_cast %287 : vector<16x8xf32> to vector<2x8x8xf32>
    %289 = vector.extract_strided_slice %223 {offsets = [0, 24], sizes = [32, 8], strides = [1, 1]} : vector<32x32xf32> to vector<32x8xf32>
    %290 = vector.shape_cast %289 : vector<32x8xf32> to vector<2x16x8xf32>
    %291 = vector.extract_strided_slice %224 {offsets = [0, 24], sizes = [32, 8], strides = [1, 1]} : vector<32x32xf32> to vector<32x8xf32>
    %292 = vector.shape_cast %291 : vector<32x8xf32> to vector<2x16x8xf32>
    "tpu.trace_start"() <{level = 10 : i32, message = "bnd,bmd->bnm"}> : () -> ()
    %cst_73 = arith.constant dense<0.000000e+00> : vector<2x8x16xf32>
    %293 = tpu.matmul %288, %290, %cst_73 {dimension_numbers = #tpu.dot_dimension_numbers<[2], [2], [1], [1], [0, 0, 0, 1, 1, 1], [0], [0]>} : vector<2x8x8xf32>, vector<2x16x8xf32>, vector<2x8x16xf32> -> vector<2x8x16xf32>
    "tpu.trace_stop"() : () -> ()
    %cst_74 = arith.constant 0.353553385 : f32
    %294 = vector.broadcast %cst_74 : f32 to vector<2x8x16xf32>
    %295 = arith.mulf %293, %294 : vector<2x8x16xf32>
    %cst_75 = arith.constant dense<0xFF800000> : vector<2x8xf32>
    %296 = vector.multi_reduction <maximumf>, %295, %cst_75 [2] : vector<2x8x16xf32> to vector<2x8xf32>
    %297 = vector.shape_cast %296 : vector<2x8xf32> to vector<2x8x1xf32>
    %298 = vector.broadcast %297 : vector<2x8x1xf32> to vector<2x8x16xf32>
    %299 = arith.subf %295, %298 : vector<2x8x16xf32>
    %300 = math.exp %299 : vector<2x8x16xf32>
    %cst_76 = arith.constant dense<0.000000e+00> : vector<2x8xf32>
    %301 = vector.multi_reduction <add>, %300, %cst_76 [2] : vector<2x8x16xf32> to vector<2x8xf32>
    %302 = vector.shape_cast %301 : vector<2x8xf32> to vector<2x8x1xf32>
    %303 = vector.broadcast %302 : vector<2x8x1xf32> to vector<2x8x16xf32>
    %304 = arith.divf %300, %303 : vector<2x8x16xf32>
    "tpu.trace_start"() <{level = 10 : i32, message = "bnm,bmd->bnd"}> : () -> ()
    %cst_77 = arith.constant dense<0.000000e+00> : vector<2x8x8xf32>
    %305 = tpu.matmul %304, %292, %cst_77 {dimension_numbers = #tpu.dot_dimension_numbers<[2], [1], [1], [2], [0, 0, 0, 1, 1, 2], [0], [0]>} : vector<2x8x16xf32>, vector<2x16x8xf32>, vector<2x8x8xf32> -> vector<2x8x8xf32>
    "tpu.trace_stop"() : () -> ()
    %306 = vector.shape_cast %305 : vector<2x8x8xf32> to vector<16x8xf32>
    %307 = tpu.concatenate %246, %266, %286, %306 in 1 : vector<16x8xf32>, vector<16x8xf32>, vector<16x8xf32>, vector<16x8xf32> -> vector<16x32xf32>
    %cst_78 = arith.constant dense<0.000000e+00> : vector<16x32xf32>
    %308 = tpu.matmul %307, %225, %cst_78 {dimension_numbers = #tpu.dot_dimension_numbers<[1], [0], [0], [1], [0, 0, 1, 1], [], []>} : vector<16x32xf32>, vector<32x32xf32>, vector<16x32xf32> -> vector<16x32xf32>
    %309 = vector.broadcast %226 : vector<1x32xf32> to vector<16x32xf32>
    %310 = arith.addf %308, %309 : vector<16x32xf32>
    %311 = arith.addf %198, %310 : vector<16x32xf32>
    %312 = vector.extract_strided_slice %0 {offsets = [15, 0], sizes = [1, 32], strides = [1, 1]} : vector<32x128xf32> to vector<1x32xf32>
    %313 = vector.extract_strided_slice %0 {offsets = [16, 0], sizes = [1, 32], strides = [1, 1]} : vector<32x128xf32> to vector<1x32xf32>
    %cst_79 = arith.constant dense<0.000000e+00> : vector<16xf32>
    %314 = vector.multi_reduction <add>, %311, %cst_79 [1] : vector<16x32xf32> to vector<16xf32>
    %315 = vector.shape_cast %314 : vector<16xf32> to vector<16x1xf32>
    %cst_80 = arith.constant 3.200000e+01 : f32
    %316 = vector.broadcast %cst_80 : f32 to vector<16x1xf32>
    %317 = arith.divf %315, %316 : vector<16x1xf32>
    %318 = vector.broadcast %317 : vector<16x1xf32> to vector<16x32xf32>
    %319 = arith.subf %311, %318 : vector<16x32xf32>
    %320 = arith.mulf %319, %319 : vector<16x32xf32>
    %cst_81 = arith.constant dense<0.000000e+00> : vector<16xf32>
    %321 = vector.multi_reduction <add>, %320, %cst_81 [1] : vector<16x32xf32> to vector<16xf32>
    %322 = vector.shape_cast %321 : vector<16xf32> to vector<16x1xf32>
    %cst_82 = arith.constant 3.200000e+01 : f32
    %323 = vector.broadcast %cst_82 : f32 to vector<16x1xf32>
    %324 = arith.divf %322, %323 : vector<16x1xf32>
    %cst_83 = arith.constant 9.99999974E-6 : f32
    %325 = vector.broadcast %cst_83 : f32 to vector<16x1xf32>
    %326 = arith.addf %324, %325 : vector<16x1xf32>
    %327 = math.rsqrt %326 : vector<16x1xf32>
    %328 = vector.broadcast %327 : vector<16x1xf32> to vector<16x32xf32>
    %329 = arith.mulf %319, %328 : vector<16x32xf32>
    %330 = vector.broadcast %312 : vector<1x32xf32> to vector<16x32xf32>
    %331 = arith.mulf %329, %330 : vector<16x32xf32>
    %332 = vector.broadcast %313 : vector<1x32xf32> to vector<16x32xf32>
    %333 = arith.addf %331, %332 : vector<16x32xf32>
    %334 = vector.extract_strided_slice %84 {offsets = [0, 192], sizes = [32, 128], strides = [1, 1]} : vector<32x320xf32> to vector<32x128xf32>
    %cst_84 = arith.constant dense<0.000000e+00> : vector<16x128xf32>
    %335 = tpu.matmul %333, %334, %cst_84 {dimension_numbers = #tpu.dot_dimension_numbers<[1], [0], [0], [1], [0, 0, 1, 1], [], []>} : vector<16x32xf32>, vector<32x128xf32>, vector<16x128xf32> -> vector<16x128xf32>
    %336 = vector.extract_strided_slice %0 {offsets = [20, 0], sizes = [1, 128], strides = [1, 1]} : vector<32x128xf32> to vector<1x128xf32>
    %337 = vector.broadcast %336 : vector<1x128xf32> to vector<16x128xf32>
    %338 = arith.addf %335, %337 : vector<16x128xf32>
    %cst_85 = arith.constant 5.000000e-01 : f32
    %339 = vector.broadcast %cst_85 : f32 to vector<16x128xf32>
    %340 = arith.mulf %339, %338 : vector<16x128xf32>
    %cst_86 = arith.constant 0.707106769 : f32
    %341 = vector.broadcast %cst_86 : f32 to vector<16x128xf32>
    %342 = arith.mulf %338, %341 : vector<16x128xf32>
    %343 = math.absf %342 : vector<16x128xf32>
    %cst_87 = arith.constant 0.327591091 : f32
    %344 = vector.broadcast %cst_87 : f32 to vector<16x128xf32>
    %345 = arith.mulf %344, %343 : vector<16x128xf32>
    %cst_88 = arith.constant 1.000000e+00 : f32
    %346 = vector.broadcast %cst_88 : f32 to vector<16x128xf32>
    %347 = arith.addf %346, %345 : vector<16x128xf32>
    %cst_89 = arith.constant 1.000000e+00 : f32
    %348 = vector.broadcast %cst_89 : f32 to vector<16x128xf32>
    %349 = arith.divf %348, %347 : vector<16x128xf32>
    %cst_90 = arith.constant 1.06140542 : f32
    %350 = vector.broadcast %cst_90 : f32 to vector<16x128xf32>
    %351 = arith.mulf %350, %349 : vector<16x128xf32>
    %cst_91 = arith.constant -1.45315206 : f32
    %352 = vector.broadcast %cst_91 : f32 to vector<16x128xf32>
    %353 = arith.addf %351, %352 : vector<16x128xf32>
    %354 = arith.mulf %353, %349 : vector<16x128xf32>
    %cst_92 = arith.constant 1.42141378 : f32
    %355 = vector.broadcast %cst_92 : f32 to vector<16x128xf32>
    %356 = arith.addf %354, %355 : vector<16x128xf32>
    %357 = arith.mulf %356, %349 : vector<16x128xf32>
    %cst_93 = arith.constant -0.284496725 : f32
    %358 = vector.broadcast %cst_93 : f32 to vector<16x128xf32>
    %359 = arith.addf %357, %358 : vector<16x128xf32>
    %360 = arith.mulf %359, %349 : vector<16x128xf32>
    %cst_94 = arith.constant 0.254829586 : f32
    %361 = vector.broadcast %cst_94 : f32 to vector<16x128xf32>
    %362 = arith.addf %360, %361 : vector<16x128xf32>
    %363 = arith.mulf %362, %349 : vector<16x128xf32>
    %cst_95 = arith.constant 0.000000e+00 : f32
    %364 = vector.broadcast %cst_95 : f32 to vector<16x128xf32>
    %365 = arith.subf %364, %343 : vector<16x128xf32>
    %366 = arith.mulf %365, %343 : vector<16x128xf32>
    %367 = math.exp %366 : vector<16x128xf32>
    %368 = arith.mulf %363, %367 : vector<16x128xf32>
    %cst_96 = arith.constant 1.000000e+00 : f32
    %369 = vector.broadcast %cst_96 : f32 to vector<16x128xf32>
    %370 = arith.subf %369, %368 : vector<16x128xf32>
    %cst_97 = arith.constant 0.000000e+00 : f32
    %371 = vector.broadcast %cst_97 : f32 to vector<16x128xf32>
    %372 = arith.cmpf olt, %342, %371 : vector<16x128xf32>
    %cst_98 = arith.constant 0.000000e+00 : f32
    %373 = vector.broadcast %cst_98 : f32 to vector<16x128xf32>
    %374 = arith.subf %373, %370 : vector<16x128xf32>
    %375 = arith.select %372, %374, %370 : vector<16x128xi1>, vector<16x128xf32>
    %cst_99 = arith.constant 1.000000e+00 : f32
    %376 = vector.broadcast %cst_99 : f32 to vector<16x128xf32>
    %377 = arith.addf %376, %375 : vector<16x128xf32>
    %378 = arith.mulf %340, %377 : vector<16x128xf32>
    %c0_100 = arith.constant 0 : index
    %c0_101 = arith.constant 0 : index
    %c0_102 = arith.constant 0 : index
    %379 = vector.load %arg4[%c0_100, %c0_101, %c0_102] : memref<2x128x32xf32, #tpu.memory_space<vmem>>, vector<1x128x32xf32>
    %380 = vector.shape_cast %379 : vector<1x128x32xf32> to vector<128x32xf32>
    %cst_103 = arith.constant dense<0.000000e+00> : vector<16x32xf32>
    %381 = tpu.matmul %378, %380, %cst_103 {dimension_numbers = #tpu.dot_dimension_numbers<[1], [0], [0], [1], [0, 0, 1, 1], [], []>} : vector<16x128xf32>, vector<128x32xf32>, vector<16x32xf32> -> vector<16x32xf32>
    %382 = arith.addf %311, %381 : vector<16x32xf32>
    %383 = vector.extract_strided_slice %0 {offsets = [19, 0], sizes = [1, 32], strides = [1, 1]} : vector<32x128xf32> to vector<1x32xf32>
    %384 = vector.broadcast %383 : vector<1x32xf32> to vector<16x32xf32>
    %385 = arith.addf %382, %384 : vector<16x32xf32>
    %c1 = arith.constant 1 : index
    %c0_104 = arith.constant 0 : index
    %c0_105 = arith.constant 0 : index
    %386 = vector.load %arg3[%c1, %c0_104, %c0_105] : memref<2x32x320xf32, #tpu.memory_space<vmem>>, vector<1x32x320xf32>
    %387 = vector.shape_cast %386 : vector<1x32x320xf32> to vector<32x320xf32>
    %388 = vector.extract_strided_slice %0 {offsets = [21, 0], sizes = [1, 32], strides = [1, 1]} : vector<32x128xf32> to vector<1x32xf32>
    %389 = vector.extract_strided_slice %0 {offsets = [22, 0], sizes = [1, 32], strides = [1, 1]} : vector<32x128xf32> to vector<1x32xf32>
    %cst_106 = arith.constant dense<0.000000e+00> : vector<16xf32>
    %390 = vector.multi_reduction <add>, %385, %cst_106 [1] : vector<16x32xf32> to vector<16xf32>
    %391 = vector.shape_cast %390 : vector<16xf32> to vector<16x1xf32>
    %cst_107 = arith.constant 3.200000e+01 : f32
    %392 = vector.broadcast %cst_107 : f32 to vector<16x1xf32>
    %393 = arith.divf %391, %392 : vector<16x1xf32>
    %394 = vector.broadcast %393 : vector<16x1xf32> to vector<16x32xf32>
    %395 = arith.subf %385, %394 : vector<16x32xf32>
    %396 = arith.mulf %395, %395 : vector<16x32xf32>
    %cst_108 = arith.constant dense<0.000000e+00> : vector<16xf32>
    %397 = vector.multi_reduction <add>, %396, %cst_108 [1] : vector<16x32xf32> to vector<16xf32>
    %398 = vector.shape_cast %397 : vector<16xf32> to vector<16x1xf32>
    %cst_109 = arith.constant 3.200000e+01 : f32
    %399 = vector.broadcast %cst_109 : f32 to vector<16x1xf32>
    %400 = arith.divf %398, %399 : vector<16x1xf32>
    %cst_110 = arith.constant 9.99999974E-6 : f32
    %401 = vector.broadcast %cst_110 : f32 to vector<16x1xf32>
    %402 = arith.addf %400, %401 : vector<16x1xf32>
    %403 = math.rsqrt %402 : vector<16x1xf32>
    %404 = vector.broadcast %403 : vector<16x1xf32> to vector<16x32xf32>
    %405 = arith.mulf %395, %404 : vector<16x32xf32>
    %406 = vector.broadcast %388 : vector<1x32xf32> to vector<16x32xf32>
    %407 = arith.mulf %405, %406 : vector<16x32xf32>
    %408 = vector.broadcast %389 : vector<1x32xf32> to vector<16x32xf32>
    %409 = arith.addf %407, %408 : vector<16x32xf32>
    %410 = vector.extract_strided_slice %387 {offsets = [0, 0], sizes = [32, 96], strides = [1, 1]} : vector<32x320xf32> to vector<32x96xf32>
    %cst_111 = arith.constant dense<0.000000e+00> : vector<16x96xf32>
    %411 = tpu.matmul %409, %410, %cst_111 {dimension_numbers = #tpu.dot_dimension_numbers<[1], [0], [0], [1], [0, 0, 1, 1], [], []>} : vector<16x32xf32>, vector<32x96xf32>, vector<16x96xf32> -> vector<16x96xf32>
    %412 = vector.extract_strided_slice %411 {offsets = [0, 0], sizes = [16, 32], strides = [1, 1]} : vector<16x96xf32> to vector<16x32xf32>
    %413 = vector.extract_strided_slice %411 {offsets = [0, 32], sizes = [16, 32], strides = [1, 1]} : vector<16x96xf32> to vector<16x32xf32>
    %414 = vector.extract_strided_slice %411 {offsets = [0, 64], sizes = [16, 32], strides = [1, 1]} : vector<16x96xf32> to vector<16x32xf32>
    %415 = vector.extract_strided_slice %387 {offsets = [0, 96], sizes = [32, 32], strides = [1, 1]} : vector<32x320xf32> to vector<32x32xf32>
    %416 = vector.extract_strided_slice %0 {offsets = [27, 0], sizes = [1, 32], strides = [1, 1]} : vector<32x128xf32> to vector<1x32xf32>
    %417 = vector.extract_strided_slice %412 {offsets = [0, 0], sizes = [16, 8], strides = [1, 1]} : vector<16x32xf32> to vector<16x8xf32>
    %418 = vector.shape_cast %417 : vector<16x8xf32> to vector<2x8x8xf32>
    %419 = vector.extract_strided_slice %413 {offsets = [0, 0], sizes = [16, 8], strides = [1, 1]} : vector<16x32xf32> to vector<16x8xf32>
    %420 = vector.shape_cast %419 : vector<16x8xf32> to vector<2x8x8xf32>
    %421 = vector.extract_strided_slice %414 {offsets = [0, 0], sizes = [16, 8], strides = [1, 1]} : vector<16x32xf32> to vector<16x8xf32>
    %422 = vector.shape_cast %421 : vector<16x8xf32> to vector<2x8x8xf32>
    "tpu.trace_start"() <{level = 10 : i32, message = "bnd,bmd->bnm"}> : () -> ()
    %cst_112 = arith.constant dense<0.000000e+00> : vector<2x8x8xf32>
    %423 = tpu.matmul %418, %420, %cst_112 {dimension_numbers = #tpu.dot_dimension_numbers<[2], [2], [1], [1], [0, 0, 0, 1, 1, 1], [0], [0]>} : vector<2x8x8xf32>, vector<2x8x8xf32>, vector<2x8x8xf32> -> vector<2x8x8xf32>
    "tpu.trace_stop"() : () -> ()
    %cst_113 = arith.constant 0.353553385 : f32
    %424 = vector.broadcast %cst_113 : f32 to vector<2x8x8xf32>
    %425 = arith.mulf %423, %424 : vector<2x8x8xf32>
    %cst_114 = arith.constant dense<0xFF800000> : vector<2x8xf32>
    %426 = vector.multi_reduction <maximumf>, %425, %cst_114 [2] : vector<2x8x8xf32> to vector<2x8xf32>
    %427 = vector.shape_cast %426 : vector<2x8xf32> to vector<2x8x1xf32>
    %428 = vector.broadcast %427 : vector<2x8x1xf32> to vector<2x8x8xf32>
    %429 = arith.subf %425, %428 : vector<2x8x8xf32>
    %430 = math.exp %429 : vector<2x8x8xf32>
    %cst_115 = arith.constant dense<0.000000e+00> : vector<2x8xf32>
    %431 = vector.multi_reduction <add>, %430, %cst_115 [2] : vector<2x8x8xf32> to vector<2x8xf32>
    %432 = vector.shape_cast %431 : vector<2x8xf32> to vector<2x8x1xf32>
    %433 = vector.broadcast %432 : vector<2x8x1xf32> to vector<2x8x8xf32>
    %434 = arith.divf %430, %433 : vector<2x8x8xf32>
    "tpu.trace_start"() <{level = 10 : i32, message = "bnm,bmd->bnd"}> : () -> ()
    %cst_116 = arith.constant dense<0.000000e+00> : vector<2x8x8xf32>
    %435 = tpu.matmul %434, %422, %cst_116 {dimension_numbers = #tpu.dot_dimension_numbers<[2], [1], [1], [2], [0, 0, 0, 1, 1, 2], [0], [0]>} : vector<2x8x8xf32>, vector<2x8x8xf32>, vector<2x8x8xf32> -> vector<2x8x8xf32>
    "tpu.trace_stop"() : () -> ()
    %436 = vector.shape_cast %435 : vector<2x8x8xf32> to vector<16x8xf32>
    %437 = vector.extract_strided_slice %412 {offsets = [0, 8], sizes = [16, 8], strides = [1, 1]} : vector<16x32xf32> to vector<16x8xf32>
    %438 = vector.shape_cast %437 : vector<16x8xf32> to vector<2x8x8xf32>
    %439 = vector.extract_strided_slice %413 {offsets = [0, 8], sizes = [16, 8], strides = [1, 1]} : vector<16x32xf32> to vector<16x8xf32>
    %440 = vector.shape_cast %439 : vector<16x8xf32> to vector<2x8x8xf32>
    %441 = vector.extract_strided_slice %414 {offsets = [0, 8], sizes = [16, 8], strides = [1, 1]} : vector<16x32xf32> to vector<16x8xf32>
    %442 = vector.shape_cast %441 : vector<16x8xf32> to vector<2x8x8xf32>
    "tpu.trace_start"() <{level = 10 : i32, message = "bnd,bmd->bnm"}> : () -> ()
    %cst_117 = arith.constant dense<0.000000e+00> : vector<2x8x8xf32>
    %443 = tpu.matmul %438, %440, %cst_117 {dimension_numbers = #tpu.dot_dimension_numbers<[2], [2], [1], [1], [0, 0, 0, 1, 1, 1], [0], [0]>} : vector<2x8x8xf32>, vector<2x8x8xf32>, vector<2x8x8xf32> -> vector<2x8x8xf32>
    "tpu.trace_stop"() : () -> ()
    %cst_118 = arith.constant 0.353553385 : f32
    %444 = vector.broadcast %cst_118 : f32 to vector<2x8x8xf32>
    %445 = arith.mulf %443, %444 : vector<2x8x8xf32>
    %cst_119 = arith.constant dense<0xFF800000> : vector<2x8xf32>
    %446 = vector.multi_reduction <maximumf>, %445, %cst_119 [2] : vector<2x8x8xf32> to vector<2x8xf32>
    %447 = vector.shape_cast %446 : vector<2x8xf32> to vector<2x8x1xf32>
    %448 = vector.broadcast %447 : vector<2x8x1xf32> to vector<2x8x8xf32>
    %449 = arith.subf %445, %448 : vector<2x8x8xf32>
    %450 = math.exp %449 : vector<2x8x8xf32>
    %cst_120 = arith.constant dense<0.000000e+00> : vector<2x8xf32>
    %451 = vector.multi_reduction <add>, %450, %cst_120 [2] : vector<2x8x8xf32> to vector<2x8xf32>
    %452 = vector.shape_cast %451 : vector<2x8xf32> to vector<2x8x1xf32>
    %453 = vector.broadcast %452 : vector<2x8x1xf32> to vector<2x8x8xf32>
    %454 = arith.divf %450, %453 : vector<2x8x8xf32>
    "tpu.trace_start"() <{level = 10 : i32, message = "bnm,bmd->bnd"}> : () -> ()
    %cst_121 = arith.constant dense<0.000000e+00> : vector<2x8x8xf32>
    %455 = tpu.matmul %454, %442, %cst_121 {dimension_numbers = #tpu.dot_dimension_numbers<[2], [1], [1], [2], [0, 0, 0, 1, 1, 2], [0], [0]>} : vector<2x8x8xf32>, vector<2x8x8xf32>, vector<2x8x8xf32> -> vector<2x8x8xf32>
    "tpu.trace_stop"() : () -> ()
    %456 = vector.shape_cast %455 : vector<2x8x8xf32> to vector<16x8xf32>
    %457 = vector.extract_strided_slice %412 {offsets = [0, 16], sizes = [16, 8], strides = [1, 1]} : vector<16x32xf32> to vector<16x8xf32>
    %458 = vector.shape_cast %457 : vector<16x8xf32> to vector<2x8x8xf32>
    %459 = vector.extract_strided_slice %413 {offsets = [0, 16], sizes = [16, 8], strides = [1, 1]} : vector<16x32xf32> to vector<16x8xf32>
    %460 = vector.shape_cast %459 : vector<16x8xf32> to vector<2x8x8xf32>
    %461 = vector.extract_strided_slice %414 {offsets = [0, 16], sizes = [16, 8], strides = [1, 1]} : vector<16x32xf32> to vector<16x8xf32>
    %462 = vector.shape_cast %461 : vector<16x8xf32> to vector<2x8x8xf32>
    "tpu.trace_start"() <{level = 10 : i32, message = "bnd,bmd->bnm"}> : () -> ()
    %cst_122 = arith.constant dense<0.000000e+00> : vector<2x8x8xf32>
    %463 = tpu.matmul %458, %460, %cst_122 {dimension_numbers = #tpu.dot_dimension_numbers<[2], [2], [1], [1], [0, 0, 0, 1, 1, 1], [0], [0]>} : vector<2x8x8xf32>, vector<2x8x8xf32>, vector<2x8x8xf32> -> vector<2x8x8xf32>
    "tpu.trace_stop"() : () -> ()
    %cst_123 = arith.constant 0.353553385 : f32
    %464 = vector.broadcast %cst_123 : f32 to vector<2x8x8xf32>
    %465 = arith.mulf %463, %464 : vector<2x8x8xf32>
    %cst_124 = arith.constant dense<0xFF800000> : vector<2x8xf32>
    %466 = vector.multi_reduction <maximumf>, %465, %cst_124 [2] : vector<2x8x8xf32> to vector<2x8xf32>
    %467 = vector.shape_cast %466 : vector<2x8xf32> to vector<2x8x1xf32>
    %468 = vector.broadcast %467 : vector<2x8x1xf32> to vector<2x8x8xf32>
    %469 = arith.subf %465, %468 : vector<2x8x8xf32>
    %470 = math.exp %469 : vector<2x8x8xf32>
    %cst_125 = arith.constant dense<0.000000e+00> : vector<2x8xf32>
    %471 = vector.multi_reduction <add>, %470, %cst_125 [2] : vector<2x8x8xf32> to vector<2x8xf32>
    %472 = vector.shape_cast %471 : vector<2x8xf32> to vector<2x8x1xf32>
    %473 = vector.broadcast %472 : vector<2x8x1xf32> to vector<2x8x8xf32>
    %474 = arith.divf %470, %473 : vector<2x8x8xf32>
    "tpu.trace_start"() <{level = 10 : i32, message = "bnm,bmd->bnd"}> : () -> ()
    %cst_126 = arith.constant dense<0.000000e+00> : vector<2x8x8xf32>
    %475 = tpu.matmul %474, %462, %cst_126 {dimension_numbers = #tpu.dot_dimension_numbers<[2], [1], [1], [2], [0, 0, 0, 1, 1, 2], [0], [0]>} : vector<2x8x8xf32>, vector<2x8x8xf32>, vector<2x8x8xf32> -> vector<2x8x8xf32>
    "tpu.trace_stop"() : () -> ()
    %476 = vector.shape_cast %475 : vector<2x8x8xf32> to vector<16x8xf32>
    %477 = vector.extract_strided_slice %412 {offsets = [0, 24], sizes = [16, 8], strides = [1, 1]} : vector<16x32xf32> to vector<16x8xf32>
    %478 = vector.shape_cast %477 : vector<16x8xf32> to vector<2x8x8xf32>
    %479 = vector.extract_strided_slice %413 {offsets = [0, 24], sizes = [16, 8], strides = [1, 1]} : vector<16x32xf32> to vector<16x8xf32>
    %480 = vector.shape_cast %479 : vector<16x8xf32> to vector<2x8x8xf32>
    %481 = vector.extract_strided_slice %414 {offsets = [0, 24], sizes = [16, 8], strides = [1, 1]} : vector<16x32xf32> to vector<16x8xf32>
    %482 = vector.shape_cast %481 : vector<16x8xf32> to vector<2x8x8xf32>
    "tpu.trace_start"() <{level = 10 : i32, message = "bnd,bmd->bnm"}> : () -> ()
    %cst_127 = arith.constant dense<0.000000e+00> : vector<2x8x8xf32>
    %483 = tpu.matmul %478, %480, %cst_127 {dimension_numbers = #tpu.dot_dimension_numbers<[2], [2], [1], [1], [0, 0, 0, 1, 1, 1], [0], [0]>} : vector<2x8x8xf32>, vector<2x8x8xf32>, vector<2x8x8xf32> -> vector<2x8x8xf32>
    "tpu.trace_stop"() : () -> ()
    %cst_128 = arith.constant 0.353553385 : f32
    %484 = vector.broadcast %cst_128 : f32 to vector<2x8x8xf32>
    %485 = arith.mulf %483, %484 : vector<2x8x8xf32>
    %cst_129 = arith.constant dense<0xFF800000> : vector<2x8xf32>
    %486 = vector.multi_reduction <maximumf>, %485, %cst_129 [2] : vector<2x8x8xf32> to vector<2x8xf32>
    %487 = vector.shape_cast %486 : vector<2x8xf32> to vector<2x8x1xf32>
    %488 = vector.broadcast %487 : vector<2x8x1xf32> to vector<2x8x8xf32>
    %489 = arith.subf %485, %488 : vector<2x8x8xf32>
    %490 = math.exp %489 : vector<2x8x8xf32>
    %cst_130 = arith.constant dense<0.000000e+00> : vector<2x8xf32>
    %491 = vector.multi_reduction <add>, %490, %cst_130 [2] : vector<2x8x8xf32> to vector<2x8xf32>
    %492 = vector.shape_cast %491 : vector<2x8xf32> to vector<2x8x1xf32>
    %493 = vector.broadcast %492 : vector<2x8x1xf32> to vector<2x8x8xf32>
    %494 = arith.divf %490, %493 : vector<2x8x8xf32>
    "tpu.trace_start"() <{level = 10 : i32, message = "bnm,bmd->bnd"}> : () -> ()
    %cst_131 = arith.constant dense<0.000000e+00> : vector<2x8x8xf32>
    %495 = tpu.matmul %494, %482, %cst_131 {dimension_numbers = #tpu.dot_dimension_numbers<[2], [1], [1], [2], [0, 0, 0, 1, 1, 2], [0], [0]>} : vector<2x8x8xf32>, vector<2x8x8xf32>, vector<2x8x8xf32> -> vector<2x8x8xf32>
    "tpu.trace_stop"() : () -> ()
    %496 = vector.shape_cast %495 : vector<2x8x8xf32> to vector<16x8xf32>
    %497 = tpu.concatenate %436, %456, %476, %496 in 1 : vector<16x8xf32>, vector<16x8xf32>, vector<16x8xf32>, vector<16x8xf32> -> vector<16x32xf32>
    %cst_132 = arith.constant dense<0.000000e+00> : vector<16x32xf32>
    %498 = tpu.matmul %497, %415, %cst_132 {dimension_numbers = #tpu.dot_dimension_numbers<[1], [0], [0], [1], [0, 0, 1, 1], [], []>} : vector<16x32xf32>, vector<32x32xf32>, vector<16x32xf32> -> vector<16x32xf32>
    %499 = vector.broadcast %416 : vector<1x32xf32> to vector<16x32xf32>
    %500 = arith.addf %498, %499 : vector<16x32xf32>
    %501 = arith.addf %385, %500 : vector<16x32xf32>
    %502 = vector.extract_strided_slice %0 {offsets = [23, 0], sizes = [1, 32], strides = [1, 1]} : vector<32x128xf32> to vector<1x32xf32>
    %503 = vector.extract_strided_slice %0 {offsets = [24, 0], sizes = [1, 32], strides = [1, 1]} : vector<32x128xf32> to vector<1x32xf32>
    %cst_133 = arith.constant dense<0.000000e+00> : vector<16xf32>
    %504 = vector.multi_reduction <add>, %501, %cst_133 [1] : vector<16x32xf32> to vector<16xf32>
    %505 = vector.shape_cast %504 : vector<16xf32> to vector<16x1xf32>
    %cst_134 = arith.constant 3.200000e+01 : f32
    %506 = vector.broadcast %cst_134 : f32 to vector<16x1xf32>
    %507 = arith.divf %505, %506 : vector<16x1xf32>
    %508 = vector.broadcast %507 : vector<16x1xf32> to vector<16x32xf32>
    %509 = arith.subf %501, %508 : vector<16x32xf32>
    %510 = arith.mulf %509, %509 : vector<16x32xf32>
    %cst_135 = arith.constant dense<0.000000e+00> : vector<16xf32>
    %511 = vector.multi_reduction <add>, %510, %cst_135 [1] : vector<16x32xf32> to vector<16xf32>
    %512 = vector.shape_cast %511 : vector<16xf32> to vector<16x1xf32>
    %cst_136 = arith.constant 3.200000e+01 : f32
    %513 = vector.broadcast %cst_136 : f32 to vector<16x1xf32>
    %514 = arith.divf %512, %513 : vector<16x1xf32>
    %cst_137 = arith.constant 9.99999974E-6 : f32
    %515 = vector.broadcast %cst_137 : f32 to vector<16x1xf32>
    %516 = arith.addf %514, %515 : vector<16x1xf32>
    %517 = math.rsqrt %516 : vector<16x1xf32>
    %518 = vector.broadcast %517 : vector<16x1xf32> to vector<16x32xf32>
    %519 = arith.mulf %509, %518 : vector<16x32xf32>
    %520 = vector.broadcast %502 : vector<1x32xf32> to vector<16x32xf32>
    %521 = arith.mulf %519, %520 : vector<16x32xf32>
    %522 = vector.broadcast %503 : vector<1x32xf32> to vector<16x32xf32>
    %523 = arith.addf %521, %522 : vector<16x32xf32>
    %524 = vector.extract_strided_slice %387 {offsets = [0, 128], sizes = [32, 32], strides = [1, 1]} : vector<32x320xf32> to vector<32x32xf32>
    %cst_138 = arith.constant dense<0.000000e+00> : vector<16x32xf32>
    %525 = tpu.matmul %523, %524, %cst_138 {dimension_numbers = #tpu.dot_dimension_numbers<[1], [0], [0], [1], [0, 0, 1, 1], [], []>} : vector<16x32xf32>, vector<32x32xf32>, vector<16x32xf32> -> vector<16x32xf32>
    %526 = vector.extract_strided_slice %82 {offsets = [0, 64], sizes = [32, 32], strides = [1, 1]} : vector<32x128xf32> to vector<32x32xf32>
    %527 = vector.extract_strided_slice %82 {offsets = [0, 96], sizes = [32, 32], strides = [1, 1]} : vector<32x128xf32> to vector<32x32xf32>
    %528 = vector.extract_strided_slice %387 {offsets = [0, 160], sizes = [32, 32], strides = [1, 1]} : vector<32x320xf32> to vector<32x32xf32>
    %529 = vector.extract_strided_slice %0 {offsets = [28, 0], sizes = [1, 32], strides = [1, 1]} : vector<32x128xf32> to vector<1x32xf32>
    %530 = vector.extract_strided_slice %525 {offsets = [0, 0], sizes = [16, 8], strides = [1, 1]} : vector<16x32xf32> to vector<16x8xf32>
    %531 = vector.shape_cast %530 : vector<16x8xf32> to vector<2x8x8xf32>
    %532 = vector.extract_strided_slice %526 {offsets = [0, 0], sizes = [32, 8], strides = [1, 1]} : vector<32x32xf32> to vector<32x8xf32>
    %533 = vector.shape_cast %532 : vector<32x8xf32> to vector<2x16x8xf32>
    %534 = vector.extract_strided_slice %527 {offsets = [0, 0], sizes = [32, 8], strides = [1, 1]} : vector<32x32xf32> to vector<32x8xf32>
    %535 = vector.shape_cast %534 : vector<32x8xf32> to vector<2x16x8xf32>
    "tpu.trace_start"() <{level = 10 : i32, message = "bnd,bmd->bnm"}> : () -> ()
    %cst_139 = arith.constant dense<0.000000e+00> : vector<2x8x16xf32>
    %536 = tpu.matmul %531, %533, %cst_139 {dimension_numbers = #tpu.dot_dimension_numbers<[2], [2], [1], [1], [0, 0, 0, 1, 1, 1], [0], [0]>} : vector<2x8x8xf32>, vector<2x16x8xf32>, vector<2x8x16xf32> -> vector<2x8x16xf32>
    "tpu.trace_stop"() : () -> ()
    %cst_140 = arith.constant 0.353553385 : f32
    %537 = vector.broadcast %cst_140 : f32 to vector<2x8x16xf32>
    %538 = arith.mulf %536, %537 : vector<2x8x16xf32>
    %cst_141 = arith.constant dense<0xFF800000> : vector<2x8xf32>
    %539 = vector.multi_reduction <maximumf>, %538, %cst_141 [2] : vector<2x8x16xf32> to vector<2x8xf32>
    %540 = vector.shape_cast %539 : vector<2x8xf32> to vector<2x8x1xf32>
    %541 = vector.broadcast %540 : vector<2x8x1xf32> to vector<2x8x16xf32>
    %542 = arith.subf %538, %541 : vector<2x8x16xf32>
    %543 = math.exp %542 : vector<2x8x16xf32>
    %cst_142 = arith.constant dense<0.000000e+00> : vector<2x8xf32>
    %544 = vector.multi_reduction <add>, %543, %cst_142 [2] : vector<2x8x16xf32> to vector<2x8xf32>
    %545 = vector.shape_cast %544 : vector<2x8xf32> to vector<2x8x1xf32>
    %546 = vector.broadcast %545 : vector<2x8x1xf32> to vector<2x8x16xf32>
    %547 = arith.divf %543, %546 : vector<2x8x16xf32>
    "tpu.trace_start"() <{level = 10 : i32, message = "bnm,bmd->bnd"}> : () -> ()
    %cst_143 = arith.constant dense<0.000000e+00> : vector<2x8x8xf32>
    %548 = tpu.matmul %547, %535, %cst_143 {dimension_numbers = #tpu.dot_dimension_numbers<[2], [1], [1], [2], [0, 0, 0, 1, 1, 2], [0], [0]>} : vector<2x8x16xf32>, vector<2x16x8xf32>, vector<2x8x8xf32> -> vector<2x8x8xf32>
    "tpu.trace_stop"() : () -> ()
    %549 = vector.shape_cast %548 : vector<2x8x8xf32> to vector<16x8xf32>
    %550 = vector.extract_strided_slice %525 {offsets = [0, 8], sizes = [16, 8], strides = [1, 1]} : vector<16x32xf32> to vector<16x8xf32>
    %551 = vector.shape_cast %550 : vector<16x8xf32> to vector<2x8x8xf32>
    %552 = vector.extract_strided_slice %526 {offsets = [0, 8], sizes = [32, 8], strides = [1, 1]} : vector<32x32xf32> to vector<32x8xf32>
    %553 = vector.shape_cast %552 : vector<32x8xf32> to vector<2x16x8xf32>
    %554 = vector.extract_strided_slice %527 {offsets = [0, 8], sizes = [32, 8], strides = [1, 1]} : vector<32x32xf32> to vector<32x8xf32>
    %555 = vector.shape_cast %554 : vector<32x8xf32> to vector<2x16x8xf32>
    "tpu.trace_start"() <{level = 10 : i32, message = "bnd,bmd->bnm"}> : () -> ()
    %cst_144 = arith.constant dense<0.000000e+00> : vector<2x8x16xf32>
    %556 = tpu.matmul %551, %553, %cst_144 {dimension_numbers = #tpu.dot_dimension_numbers<[2], [2], [1], [1], [0, 0, 0, 1, 1, 1], [0], [0]>} : vector<2x8x8xf32>, vector<2x16x8xf32>, vector<2x8x16xf32> -> vector<2x8x16xf32>
    "tpu.trace_stop"() : () -> ()
    %cst_145 = arith.constant 0.353553385 : f32
    %557 = vector.broadcast %cst_145 : f32 to vector<2x8x16xf32>
    %558 = arith.mulf %556, %557 : vector<2x8x16xf32>
    %cst_146 = arith.constant dense<0xFF800000> : vector<2x8xf32>
    %559 = vector.multi_reduction <maximumf>, %558, %cst_146 [2] : vector<2x8x16xf32> to vector<2x8xf32>
    %560 = vector.shape_cast %559 : vector<2x8xf32> to vector<2x8x1xf32>
    %561 = vector.broadcast %560 : vector<2x8x1xf32> to vector<2x8x16xf32>
    %562 = arith.subf %558, %561 : vector<2x8x16xf32>
    %563 = math.exp %562 : vector<2x8x16xf32>
    %cst_147 = arith.constant dense<0.000000e+00> : vector<2x8xf32>
    %564 = vector.multi_reduction <add>, %563, %cst_147 [2] : vector<2x8x16xf32> to vector<2x8xf32>
    %565 = vector.shape_cast %564 : vector<2x8xf32> to vector<2x8x1xf32>
    %566 = vector.broadcast %565 : vector<2x8x1xf32> to vector<2x8x16xf32>
    %567 = arith.divf %563, %566 : vector<2x8x16xf32>
    "tpu.trace_start"() <{level = 10 : i32, message = "bnm,bmd->bnd"}> : () -> ()
    %cst_148 = arith.constant dense<0.000000e+00> : vector<2x8x8xf32>
    %568 = tpu.matmul %567, %555, %cst_148 {dimension_numbers = #tpu.dot_dimension_numbers<[2], [1], [1], [2], [0, 0, 0, 1, 1, 2], [0], [0]>} : vector<2x8x16xf32>, vector<2x16x8xf32>, vector<2x8x8xf32> -> vector<2x8x8xf32>
    "tpu.trace_stop"() : () -> ()
    %569 = vector.shape_cast %568 : vector<2x8x8xf32> to vector<16x8xf32>
    %570 = vector.extract_strided_slice %525 {offsets = [0, 16], sizes = [16, 8], strides = [1, 1]} : vector<16x32xf32> to vector<16x8xf32>
    %571 = vector.shape_cast %570 : vector<16x8xf32> to vector<2x8x8xf32>
    %572 = vector.extract_strided_slice %526 {offsets = [0, 16], sizes = [32, 8], strides = [1, 1]} : vector<32x32xf32> to vector<32x8xf32>
    %573 = vector.shape_cast %572 : vector<32x8xf32> to vector<2x16x8xf32>
    %574 = vector.extract_strided_slice %527 {offsets = [0, 16], sizes = [32, 8], strides = [1, 1]} : vector<32x32xf32> to vector<32x8xf32>
    %575 = vector.shape_cast %574 : vector<32x8xf32> to vector<2x16x8xf32>
    "tpu.trace_start"() <{level = 10 : i32, message = "bnd,bmd->bnm"}> : () -> ()
    %cst_149 = arith.constant dense<0.000000e+00> : vector<2x8x16xf32>
    %576 = tpu.matmul %571, %573, %cst_149 {dimension_numbers = #tpu.dot_dimension_numbers<[2], [2], [1], [1], [0, 0, 0, 1, 1, 1], [0], [0]>} : vector<2x8x8xf32>, vector<2x16x8xf32>, vector<2x8x16xf32> -> vector<2x8x16xf32>
    "tpu.trace_stop"() : () -> ()
    %cst_150 = arith.constant 0.353553385 : f32
    %577 = vector.broadcast %cst_150 : f32 to vector<2x8x16xf32>
    %578 = arith.mulf %576, %577 : vector<2x8x16xf32>
    %cst_151 = arith.constant dense<0xFF800000> : vector<2x8xf32>
    %579 = vector.multi_reduction <maximumf>, %578, %cst_151 [2] : vector<2x8x16xf32> to vector<2x8xf32>
    %580 = vector.shape_cast %579 : vector<2x8xf32> to vector<2x8x1xf32>
    %581 = vector.broadcast %580 : vector<2x8x1xf32> to vector<2x8x16xf32>
    %582 = arith.subf %578, %581 : vector<2x8x16xf32>
    %583 = math.exp %582 : vector<2x8x16xf32>
    %cst_152 = arith.constant dense<0.000000e+00> : vector<2x8xf32>
    %584 = vector.multi_reduction <add>, %583, %cst_152 [2] : vector<2x8x16xf32> to vector<2x8xf32>
    %585 = vector.shape_cast %584 : vector<2x8xf32> to vector<2x8x1xf32>
    %586 = vector.broadcast %585 : vector<2x8x1xf32> to vector<2x8x16xf32>
    %587 = arith.divf %583, %586 : vector<2x8x16xf32>
    "tpu.trace_start"() <{level = 10 : i32, message = "bnm,bmd->bnd"}> : () -> ()
    %cst_153 = arith.constant dense<0.000000e+00> : vector<2x8x8xf32>
    %588 = tpu.matmul %587, %575, %cst_153 {dimension_numbers = #tpu.dot_dimension_numbers<[2], [1], [1], [2], [0, 0, 0, 1, 1, 2], [0], [0]>} : vector<2x8x16xf32>, vector<2x16x8xf32>, vector<2x8x8xf32> -> vector<2x8x8xf32>
    "tpu.trace_stop"() : () -> ()
    %589 = vector.shape_cast %588 : vector<2x8x8xf32> to vector<16x8xf32>
    %590 = vector.extract_strided_slice %525 {offsets = [0, 24], sizes = [16, 8], strides = [1, 1]} : vector<16x32xf32> to vector<16x8xf32>
    %591 = vector.shape_cast %590 : vector<16x8xf32> to vector<2x8x8xf32>
    %592 = vector.extract_strided_slice %526 {offsets = [0, 24], sizes = [32, 8], strides = [1, 1]} : vector<32x32xf32> to vector<32x8xf32>
    %593 = vector.shape_cast %592 : vector<32x8xf32> to vector<2x16x8xf32>
    %594 = vector.extract_strided_slice %527 {offsets = [0, 24], sizes = [32, 8], strides = [1, 1]} : vector<32x32xf32> to vector<32x8xf32>
    %595 = vector.shape_cast %594 : vector<32x8xf32> to vector<2x16x8xf32>
    "tpu.trace_start"() <{level = 10 : i32, message = "bnd,bmd->bnm"}> : () -> ()
    %cst_154 = arith.constant dense<0.000000e+00> : vector<2x8x16xf32>
    %596 = tpu.matmul %591, %593, %cst_154 {dimension_numbers = #tpu.dot_dimension_numbers<[2], [2], [1], [1], [0, 0, 0, 1, 1, 1], [0], [0]>} : vector<2x8x8xf32>, vector<2x16x8xf32>, vector<2x8x16xf32> -> vector<2x8x16xf32>
    "tpu.trace_stop"() : () -> ()
    %cst_155 = arith.constant 0.353553385 : f32
    %597 = vector.broadcast %cst_155 : f32 to vector<2x8x16xf32>
    %598 = arith.mulf %596, %597 : vector<2x8x16xf32>
    %cst_156 = arith.constant dense<0xFF800000> : vector<2x8xf32>
    %599 = vector.multi_reduction <maximumf>, %598, %cst_156 [2] : vector<2x8x16xf32> to vector<2x8xf32>
    %600 = vector.shape_cast %599 : vector<2x8xf32> to vector<2x8x1xf32>
    %601 = vector.broadcast %600 : vector<2x8x1xf32> to vector<2x8x16xf32>
    %602 = arith.subf %598, %601 : vector<2x8x16xf32>
    %603 = math.exp %602 : vector<2x8x16xf32>
    %cst_157 = arith.constant dense<0.000000e+00> : vector<2x8xf32>
    %604 = vector.multi_reduction <add>, %603, %cst_157 [2] : vector<2x8x16xf32> to vector<2x8xf32>
    %605 = vector.shape_cast %604 : vector<2x8xf32> to vector<2x8x1xf32>
    %606 = vector.broadcast %605 : vector<2x8x1xf32> to vector<2x8x16xf32>
    %607 = arith.divf %603, %606 : vector<2x8x16xf32>
    "tpu.trace_start"() <{level = 10 : i32, message = "bnm,bmd->bnd"}> : () -> ()
    %cst_158 = arith.constant dense<0.000000e+00> : vector<2x8x8xf32>
    %608 = tpu.matmul %607, %595, %cst_158 {dimension_numbers = #tpu.dot_dimension_numbers<[2], [1], [1], [2], [0, 0, 0, 1, 1, 2], [0], [0]>} : vector<2x8x16xf32>, vector<2x16x8xf32>, vector<2x8x8xf32> -> vector<2x8x8xf32>
    "tpu.trace_stop"() : () -> ()
    %609 = vector.shape_cast %608 : vector<2x8x8xf32> to vector<16x8xf32>
    %610 = tpu.concatenate %549, %569, %589, %609 in 1 : vector<16x8xf32>, vector<16x8xf32>, vector<16x8xf32>, vector<16x8xf32> -> vector<16x32xf32>
    %cst_159 = arith.constant dense<0.000000e+00> : vector<16x32xf32>
    %611 = tpu.matmul %610, %528, %cst_159 {dimension_numbers = #tpu.dot_dimension_numbers<[1], [0], [0], [1], [0, 0, 1, 1], [], []>} : vector<16x32xf32>, vector<32x32xf32>, vector<16x32xf32> -> vector<16x32xf32>
    %612 = vector.broadcast %529 : vector<1x32xf32> to vector<16x32xf32>
    %613 = arith.addf %611, %612 : vector<16x32xf32>
    %614 = arith.addf %501, %613 : vector<16x32xf32>
    %615 = vector.extract_strided_slice %0 {offsets = [25, 0], sizes = [1, 32], strides = [1, 1]} : vector<32x128xf32> to vector<1x32xf32>
    %616 = vector.extract_strided_slice %0 {offsets = [26, 0], sizes = [1, 32], strides = [1, 1]} : vector<32x128xf32> to vector<1x32xf32>
    %cst_160 = arith.constant dense<0.000000e+00> : vector<16xf32>
    %617 = vector.multi_reduction <add>, %614, %cst_160 [1] : vector<16x32xf32> to vector<16xf32>
    %618 = vector.shape_cast %617 : vector<16xf32> to vector<16x1xf32>
    %cst_161 = arith.constant 3.200000e+01 : f32
    %619 = vector.broadcast %cst_161 : f32 to vector<16x1xf32>
    %620 = arith.divf %618, %619 : vector<16x1xf32>
    %621 = vector.broadcast %620 : vector<16x1xf32> to vector<16x32xf32>
    %622 = arith.subf %614, %621 : vector<16x32xf32>
    %623 = arith.mulf %622, %622 : vector<16x32xf32>
    %cst_162 = arith.constant dense<0.000000e+00> : vector<16xf32>
    %624 = vector.multi_reduction <add>, %623, %cst_162 [1] : vector<16x32xf32> to vector<16xf32>
    %625 = vector.shape_cast %624 : vector<16xf32> to vector<16x1xf32>
    %cst_163 = arith.constant 3.200000e+01 : f32
    %626 = vector.broadcast %cst_163 : f32 to vector<16x1xf32>
    %627 = arith.divf %625, %626 : vector<16x1xf32>
    %cst_164 = arith.constant 9.99999974E-6 : f32
    %628 = vector.broadcast %cst_164 : f32 to vector<16x1xf32>
    %629 = arith.addf %627, %628 : vector<16x1xf32>
    %630 = math.rsqrt %629 : vector<16x1xf32>
    %631 = vector.broadcast %630 : vector<16x1xf32> to vector<16x32xf32>
    %632 = arith.mulf %622, %631 : vector<16x32xf32>
    %633 = vector.broadcast %615 : vector<1x32xf32> to vector<16x32xf32>
    %634 = arith.mulf %632, %633 : vector<16x32xf32>
    %635 = vector.broadcast %616 : vector<1x32xf32> to vector<16x32xf32>
    %636 = arith.addf %634, %635 : vector<16x32xf32>
    %637 = vector.extract_strided_slice %387 {offsets = [0, 192], sizes = [32, 128], strides = [1, 1]} : vector<32x320xf32> to vector<32x128xf32>
    %cst_165 = arith.constant dense<0.000000e+00> : vector<16x128xf32>
    %638 = tpu.matmul %636, %637, %cst_165 {dimension_numbers = #tpu.dot_dimension_numbers<[1], [0], [0], [1], [0, 0, 1, 1], [], []>} : vector<16x32xf32>, vector<32x128xf32>, vector<16x128xf32> -> vector<16x128xf32>
    %639 = vector.extract_strided_slice %0 {offsets = [30, 0], sizes = [1, 128], strides = [1, 1]} : vector<32x128xf32> to vector<1x128xf32>
    %640 = vector.broadcast %639 : vector<1x128xf32> to vector<16x128xf32>
    %641 = arith.addf %638, %640 : vector<16x128xf32>
    %cst_166 = arith.constant 5.000000e-01 : f32
    %642 = vector.broadcast %cst_166 : f32 to vector<16x128xf32>
    %643 = arith.mulf %642, %641 : vector<16x128xf32>
    %cst_167 = arith.constant 0.707106769 : f32
    %644 = vector.broadcast %cst_167 : f32 to vector<16x128xf32>
    %645 = arith.mulf %641, %644 : vector<16x128xf32>
    %646 = math.absf %645 : vector<16x128xf32>
    %cst_168 = arith.constant 0.327591091 : f32
    %647 = vector.broadcast %cst_168 : f32 to vector<16x128xf32>
    %648 = arith.mulf %647, %646 : vector<16x128xf32>
    %cst_169 = arith.constant 1.000000e+00 : f32
    %649 = vector.broadcast %cst_169 : f32 to vector<16x128xf32>
    %650 = arith.addf %649, %648 : vector<16x128xf32>
    %cst_170 = arith.constant 1.000000e+00 : f32
    %651 = vector.broadcast %cst_170 : f32 to vector<16x128xf32>
    %652 = arith.divf %651, %650 : vector<16x128xf32>
    %cst_171 = arith.constant 1.06140542 : f32
    %653 = vector.broadcast %cst_171 : f32 to vector<16x128xf32>
    %654 = arith.mulf %653, %652 : vector<16x128xf32>
    %cst_172 = arith.constant -1.45315206 : f32
    %655 = vector.broadcast %cst_172 : f32 to vector<16x128xf32>
    %656 = arith.addf %654, %655 : vector<16x128xf32>
    %657 = arith.mulf %656, %652 : vector<16x128xf32>
    %cst_173 = arith.constant 1.42141378 : f32
    %658 = vector.broadcast %cst_173 : f32 to vector<16x128xf32>
    %659 = arith.addf %657, %658 : vector<16x128xf32>
    %660 = arith.mulf %659, %652 : vector<16x128xf32>
    %cst_174 = arith.constant -0.284496725 : f32
    %661 = vector.broadcast %cst_174 : f32 to vector<16x128xf32>
    %662 = arith.addf %660, %661 : vector<16x128xf32>
    %663 = arith.mulf %662, %652 : vector<16x128xf32>
    %cst_175 = arith.constant 0.254829586 : f32
    %664 = vector.broadcast %cst_175 : f32 to vector<16x128xf32>
    %665 = arith.addf %663, %664 : vector<16x128xf32>
    %666 = arith.mulf %665, %652 : vector<16x128xf32>
    %cst_176 = arith.constant 0.000000e+00 : f32
    %667 = vector.broadcast %cst_176 : f32 to vector<16x128xf32>
    %668 = arith.subf %667, %646 : vector<16x128xf32>
    %669 = arith.mulf %668, %646 : vector<16x128xf32>
    %670 = math.exp %669 : vector<16x128xf32>
    %671 = arith.mulf %666, %670 : vector<16x128xf32>
    %cst_177 = arith.constant 1.000000e+00 : f32
    %672 = vector.broadcast %cst_177 : f32 to vector<16x128xf32>
    %673 = arith.subf %672, %671 : vector<16x128xf32>
    %cst_178 = arith.constant 0.000000e+00 : f32
    %674 = vector.broadcast %cst_178 : f32 to vector<16x128xf32>
    %675 = arith.cmpf olt, %645, %674 : vector<16x128xf32>
    %cst_179 = arith.constant 0.000000e+00 : f32
    %676 = vector.broadcast %cst_179 : f32 to vector<16x128xf32>
    %677 = arith.subf %676, %673 : vector<16x128xf32>
    %678 = arith.select %675, %677, %673 : vector<16x128xi1>, vector<16x128xf32>
    %cst_180 = arith.constant 1.000000e+00 : f32
    %679 = vector.broadcast %cst_180 : f32 to vector<16x128xf32>
    %680 = arith.addf %679, %678 : vector<16x128xf32>
    %681 = arith.mulf %643, %680 : vector<16x128xf32>
    %c1_181 = arith.constant 1 : index
    %c0_182 = arith.constant 0 : index
    %c0_183 = arith.constant 0 : index
    %682 = vector.load %arg4[%c1_181, %c0_182, %c0_183] : memref<2x128x32xf32, #tpu.memory_space<vmem>>, vector<1x128x32xf32>
    %683 = vector.shape_cast %682 : vector<1x128x32xf32> to vector<128x32xf32>
    %cst_184 = arith.constant dense<0.000000e+00> : vector<16x32xf32>
    %684 = tpu.matmul %681, %683, %cst_184 {dimension_numbers = #tpu.dot_dimension_numbers<[1], [0], [0], [1], [0, 0, 1, 1], [], []>} : vector<16x128xf32>, vector<128x32xf32>, vector<16x32xf32> -> vector<16x32xf32>
    %685 = arith.addf %614, %684 : vector<16x32xf32>
    %686 = vector.extract_strided_slice %0 {offsets = [29, 0], sizes = [1, 32], strides = [1, 1]} : vector<32x128xf32> to vector<1x32xf32>
    %687 = vector.broadcast %686 : vector<1x32xf32> to vector<16x32xf32>
    %688 = arith.addf %685, %687 : vector<16x32xf32>
    %689 = vector.extract_strided_slice %0 {offsets = [6, 0], sizes = [1, 32], strides = [1, 1]} : vector<32x128xf32> to vector<1x32xf32>
    %690 = vector.extract_strided_slice %0 {offsets = [7, 0], sizes = [1, 32], strides = [1, 1]} : vector<32x128xf32> to vector<1x32xf32>
    %cst_185 = arith.constant dense<0.000000e+00> : vector<16xf32>
    %691 = vector.multi_reduction <add>, %688, %cst_185 [1] : vector<16x32xf32> to vector<16xf32>
    %692 = vector.shape_cast %691 : vector<16xf32> to vector<16x1xf32>
    %cst_186 = arith.constant 3.200000e+01 : f32
    %693 = vector.broadcast %cst_186 : f32 to vector<16x1xf32>
    %694 = arith.divf %692, %693 : vector<16x1xf32>
    %695 = vector.broadcast %694 : vector<16x1xf32> to vector<16x32xf32>
    %696 = arith.subf %688, %695 : vector<16x32xf32>
    %697 = arith.mulf %696, %696 : vector<16x32xf32>
    %cst_187 = arith.constant dense<0.000000e+00> : vector<16xf32>
    %698 = vector.multi_reduction <add>, %697, %cst_187 [1] : vector<16x32xf32> to vector<16xf32>
    %699 = vector.shape_cast %698 : vector<16xf32> to vector<16x1xf32>
    %cst_188 = arith.constant 3.200000e+01 : f32
    %700 = vector.broadcast %cst_188 : f32 to vector<16x1xf32>
    %701 = arith.divf %699, %700 : vector<16x1xf32>
    %cst_189 = arith.constant 9.99999974E-6 : f32
    %702 = vector.broadcast %cst_189 : f32 to vector<16x1xf32>
    %703 = arith.addf %701, %702 : vector<16x1xf32>
    %704 = math.rsqrt %703 : vector<16x1xf32>
    %705 = vector.broadcast %704 : vector<16x1xf32> to vector<16x32xf32>
    %706 = arith.mulf %696, %705 : vector<16x32xf32>
    %707 = vector.broadcast %689 : vector<1x32xf32> to vector<16x32xf32>
    %708 = arith.mulf %706, %707 : vector<16x32xf32>
    %709 = vector.broadcast %690 : vector<1x32xf32> to vector<16x32xf32>
    %710 = arith.addf %708, %709 : vector<16x32xf32>
    %c96 = arith.constant 96 : index
    %c0_190 = arith.constant 0 : index
    %711 = vector.load %arg2[%c96, %c0_190] : memref<128x128xf32, #tpu.memory_space<vmem>>, vector<32x64xf32>
    %cst_191 = arith.constant dense<0.000000e+00> : vector<16x64xf32>
    %712 = tpu.matmul %710, %711, %cst_191 {dimension_numbers = #tpu.dot_dimension_numbers<[1], [0], [0], [1], [0, 0, 1, 1], [], []>} : vector<16x32xf32>, vector<32x64xf32>, vector<16x64xf32> -> vector<16x64xf32>
    %713 = vector.extract_strided_slice %0 {offsets = [10, 0], sizes = [1, 64], strides = [1, 1]} : vector<32x128xf32> to vector<1x64xf32>
    %714 = vector.broadcast %713 : vector<1x64xf32> to vector<16x64xf32>
    %715 = arith.addf %712, %714 : vector<16x64xf32>
    %c0_192 = arith.constant 0 : index
    %c0_193 = arith.constant 0 : index
    %716 = vector.load %arg5[%c0_192, %c0_193] : memref<16x64xf32, #tpu.memory_space<vmem>>, vector<16x64xf32>
    tpu.vector_store %arg5[%c0_192, %c0_193], %715 {strides = array<i32>} : memref<16x64xf32, #tpu.memory_space<vmem>>, vector<16x64xf32>,
    return
  }
}

</mosaic_0001>

<bundles_post_ra>
// kernel: _context_decoder_impl.1
= control target key start
LH: loop header
LB: loop body
LE: loop exit
PB: predicated region body
PF: predicated region fallthrough
CT: control target
= control target key end

     0   :  { %vm31_vm0 = vcmask 523264   ;;  %s10961_s0 = inlined_call_operand.vmem [shape: f32[48,64], index: 0, kind: input, shape index: {}]   ;;  %s10962_s1 = inlined_call_operand.vmem [shape: f32[32,128], index: 1, kind: input, shape index: {}]   ;;  %s10963_s2 = inlined_call_operand.vmem [shape: f32[128,128], index: 2, kind: input, shape index: {}]   ;;  %s10964_s3 = inlined_call_operand.vmem [shape: f32[2,32,320], index: 3, kind: input, shape index: {}]   ;;  %s10965_s4 = inlined_call_operand.vmem [shape: f32[2,128,32], index: 4, kind: input, shape index: {}]   ;;  %s10966_s5 = inlined_call_operand.hbm [shape: f32[16,64], index: 5, kind: output, shape index: {}]  }
   0x1   :  { %v27_v0 = vld [vmem:[%s10961_s0 + $0x10] sm:$0xff]  ;;  %v29_v1 = vld [vmem:[%s10961_s0 + $0x20] sm:$0xff]  ;;  %v28_v2 = vld [vmem:[%s10961_s0 + $0x18] sm:$0xff] }
   0x2   :  { %v71_v3 = vsel %vm31_vm0, %v27_v0, 0.0  ;;  %v77_v4 = vsel %vm31_vm0, %v29_v1, 0.0  ;;  %v30_v5 = vld [vmem:[%s10961_s0 + $0x28] sm:$0xff] }
   0x3   :  { %10 = vsyncpa [#allocation3], 0  ;;  %72 = vadd.xlane.f32.xlu0 %v71_v3  ;;  %78 = vadd.xlane.f32.xlu1 %v77_v4  ;;  %v74_v6 = vsel %vm31_vm0, %v28_v2, 0.0  ;;  %v80_v7 = vsel %vm31_vm0, %v30_v5, 0.0  ;;  %v25_v26 = vld [vmem:[%s10961_s0] sm:$0xff]  ;;  %v9629_v30 = vld [vmem:[%s10961_s0 + $0x8] sm:$0xff]  ;;  %v59_v46 = vlaneseq }
   0x4   :  { %v32_v29 = vsel %vm31_vm0, %v25_v26, 0.0  ;;  %v35_v31 = vsel %vm31_vm0, %v9629_v30, 0.0  ;;  %v139_v32 = vld [vmem:[%s10963_s2] sm:$0xff]  ;;  %v140_v33 = vld [vmem:[%s10963_s2 + $0x8] sm:$0xff]  ;;  %v141_v35 = vld [vmem:[%s10963_s2 + $0x10] sm:$0xff]  ;;  %s9536_s24 = smov 32  }
   0x5   :  { %v8769_v34 = vpack.c.bf16 %v140_v33, %v139_v32  ;;  %v142_v36 = vld [vmem:[%s10963_s2 + $0x18] sm:$0xff]  ;;  %v143_v38 = vld [vmem:[%s10963_s2 + $0x20] sm:$0xff]  ;;  %v144_v39 = vld [vmem:[%s10963_s2 + $0x28] sm:$0xff]  ;;  %v9657_v52 = vshrl.u32 %v59_v46, 7  ;;  %s9537_s25 = smov 96   ;;  %vm294_vm1 = vcmask 261120  }
   0x6   :  { %v8773_v37 = vpack.c.bf16 %v142_v36, %v141_v35  ;;  %v145_v40 = vld [vmem:[%s10963_s2 + $0x30] sm:$0xff]  ;;  %v8777_v41 = vpack.c.bf16 %v144_v39, %v143_v38  ;;  %v146_v42 = vld [vmem:[%s10963_s2 + $0x38] sm:$0xff]  ;;  %v9665_v62 = vld [vmem:[%s10962_s1] sm:$0xff]  ;;  %vm9539_vm2 = vmmov 0   ;;  %vm631_vm3 = vcmask 64512   ;;  %s9540_s16 = smov 64  }
   0x7   :  { %75 = vadd.xlane.f32.xlu0 %v74_v6  ;;  %81 = vadd.xlane.f32.xlu1 %v80_v7  ;;  %v8781_v43 = vpack.c.bf16 %v146_v42, %v145_v40  ;;  %v9660_v59 = vsub.s32 0, %v9657_v52  ;;  %v9668_v63 = vsub.s32 1, %v9657_v52  ;;  %v9694_v33 = vsub.s32 2, %v9657_v52  ;;  %s9541_s17 = smov 88   ;;  %s9542_s18 = smov 120   ;;  %vm10018_vm6 = vmpackc.low %vm631_vm3, %vm631_vm3 }
   0x8   :  { %9057 = vmatprep.subr.bf16.mxu1 %v8769_v34  ;;  %8770 = vmatprep.subr.bf16.mxu0 %v8769_v34  ;;  %s9543_s19 = smov 56   ;;  %s9544_s20 = smov 80   ;;  %vm1981_vm4 = vcmask 130048   ;;  %vm1984_vm5 = vcmask 195584  }
   0x9   :  { %9061 = vmatpush3.bf16.msra.mxu1 %v8769_v34  ;;  %8772 = vmatpush3.bf16.msra.mxu0 %v8769_v34  ;;  %v126_v3 = vrot.slane %v9665_v62, %v9660_v59  ;;  %v9697_v34 = vsub.s32 3, %v9657_v52  ;;  %v62_v35 = vrot.slane %v9665_v62, %v9694_v33  ;;  %s9545_s21 = smov 112   ;;  %s9546_s22 = smov 48  }
   0xa   :  { %9058 = vmatprep.subr.bf16.mxu1 %v8773_v37  ;;  %8774 = vmatprep.subr.bf16.mxu0 %v8773_v37  ;;  %s9547_s23 = smov 72   ;;  %s9548_s26 = smov 104  }
   0xb   :  { %v68_v38 = vrot.slane %v9665_v62, %v9697_v34  ;;  %s9549_s27 = smov 40   ;;  %s9550_s28 = smov 8  }
   0xc   :  { %s9551_s29 = smov 16   ;;  %s9553_s30 = smov 24  }
   0xd   :  { %9062 = vmatpush3.bf16.msra.mxu1 %v8773_v37  ;;  %8776 = vmatpush3.bf16.msra.mxu0 %v8773_v37 }
   0xe   :  { %9059 = vmatprep.subr.bf16.mxu1 %v8777_v41  ;;  %8778 = vmatprep.subr.bf16.mxu0 %v8777_v41 }
  0x11   :  { %9063 = vmatpush3.bf16.msra.mxu1 %v8777_v41  ;;  %8780 = vmatpush3.bf16.msra.mxu0 %v8777_v41 }
  0x12   :  { %9060 = vmatprep.subr.bf16.mxu1 %v8781_v43  ;;  %8782 = vmatprep.subr.bf16.mxu0 %v8781_v43 }
  0x15   :  { %9064 = vmatpush3.bf16.msra.mxu1 %v8781_v43  ;;  %8784 = vmatpush3.bf16.msra.mxu0 %v8781_v43 }
  0x90   :  { %v73_v8 = vpop.xlane.xlu0 %72  ;;  %v79_v9 = vpop.xlane.xlu1 %78 }
  0x91   :  { %v83_v10 = vmul.f32 0.015625, %v73_v8  ;;  %v85_v11 = vmul.f32 0.015625, %v79_v9  ;;  %v134_v8 = vrot.slane %v9665_v62, %v9668_v63 }
  0x93   :  { %v9602_v12 = vsub.f32 %v27_v0, %v83_v10  ;;  %v9604_v13 = vsub.f32 %v29_v1, %v85_v11 }
  0x94   :  { %v76_v14 = vpop.xlane.xlu0 %75  ;;  %v82_v15 = vpop.xlane.xlu1 %81 }
  0x95   :  { %v84_v16 = vmul.f32 0.015625, %v76_v14  ;;  %v86_v17 = vmul.f32 0.015625, %v82_v15  ;;  %v91_v18 = vmul.f32 %v9602_v12, %v9602_v12  ;;  %v93_v19 = vmul.f32 %v9604_v13, %v9604_v13 }
  0x97   :  { %v9610_v20 = vsub.f32 %v28_v2, %v84_v16  ;;  %v9612_v21 = vsub.f32 %v30_v5, %v86_v17  ;;  %v95_v22 = vsel %vm31_vm0, %v91_v18, 0.0  ;;  %v101_v23 = vsel %vm31_vm0, %v93_v19, 0.0 }
  0x98   :  { %96 = vadd.xlane.f32.xlu0 %v95_v22 }
  0x99   :  { %v92_v24 = vmul.f32 %v9610_v20, %v9610_v20  ;;  %v94_v25 = vmul.f32 %v9612_v21, %v9612_v21 }
  0x9b   :  { %v98_v27 = vsel %vm31_vm0, %v92_v24, 0.0  ;;  %v104_v28 = vsel %vm31_vm0, %v94_v25, 0.0 }
  0x9c   :  { %102 = vadd.xlane.f32.xlu0 %v101_v23  ;;  %99 = vadd.xlane.f32.xlu1 %v98_v27 }
  0xa0   :  { %105 = vadd.xlane.f32.xlu1 %v104_v28  ;;  %33 = vadd.xlane.f32.xlu0 %v32_v29 }
  0xa4   :  { %36 = vadd.xlane.f32.xlu1 %v35_v31 }
 0x125   :  { %v97_v44 = vpop.xlane.xlu0 %96 }
 0x126   :  { %v107_v45 = vmul.f32 0.015625, %v97_v44 }
 0x128   :  { %v111_v47 = vadd.f32 1e-05, %v107_v45 }
 0x129   :  { %v100_v48 = vpop.xlane.xlu1 %99  ;;  %v103_v49 = vpop.xlane.xlu0 %102 }
 0x12a   :  { %9315 = vrsqrt.f32 %v111_v47  ;;  %v108_v50 = vmul.f32 0.015625, %v100_v48  ;;  %v109_v51 = vmul.f32 0.015625, %v103_v49 }
 0x12c   :  { %v112_v53 = vadd.f32 1e-05, %v108_v50  ;;  %v113_v54 = vadd.f32 1e-05, %v109_v51 }
 0x12d   :  { %v106_v55 = vpop.xlane.xlu1 %105  ;;  %v34_v56 = vpop.xlane.xlu0 %33 }
 0x12e   :  { %9317 = vrsqrt.f32 %v112_v53  ;;  %v110_v57 = vmul.f32 0.015625, %v106_v55  ;;  %v39_v58 = vmul.f32 0.015625, %v34_v56 }
 0x12f   :  { %9319 = vrsqrt.f32 %v113_v54 }
 0x130   :  { %v114_v60 = vadd.f32 1e-05, %v110_v57  ;;  %v41_v61 = vsub.f32 %v25_v26, %v39_v58 }
 0x131   :  { %v37_v0 = vpop.xlane.xlu1 %36 }
 0x132   :  { %9321 = vrsqrt.f32 %v114_v60  ;;  %v43_v1 = vmul.f32 %v41_v61, %v41_v61  ;;  %v40_v2 = vmul.f32 0.015625, %v37_v0 }
 0x134   :  { %v9316_v4 = vpop.eup %9315  ;;  %v45_v5 = vsel %vm31_vm0, %v43_v1, 0.0  ;;  %v42_v6 = vsub.f32 %v9629_v30, %v40_v2 }
 0x135   :  { %46 = vadd.xlane.f32.xlu0 %v45_v5  ;;  %v119_v7 = vmul.f32 %v9316_v4, %v9602_v12 }
 0x136   :  { %v44_v9 = vmul.f32 %v42_v6, %v42_v6 }
 0x137   :  { %v127_v10 = vmul.f32 %v126_v3, %v119_v7 }
 0x138   :  { %v9318_v11 = vpop.eup %9317  ;;  %v48_v14 = vsel %vm31_vm0, %v44_v9, 0.0 }
 0x139   :  { %v9320_v15 = vpop.eup %9319  ;;  %v135_v16 = vadd.f32 %v134_v8, %v127_v10  ;;  %v120_v17 = vmul.f32 %v9318_v11, %v9610_v20  ;;  %49 = vadd.xlane.f32.xlu1 %v48_v14 }
 0x13a   :  { %v121_v18 = vmul.f32 %v9320_v15, %v9604_v13  ;;  %v9688_v13 = vld [vmem:[%s10962_s1 + $0x8] sm:$0xff] }
 0x13b   :  { %8174 = vmatprep.mubr.msk.f32.mxu1 %vm31_vm0, %v135_v16  ;;  %v128_v19 = vmul.f32 %v126_v3, %v120_v17  ;;  %v269_v20 = vrot.slane %v9688_v13, %v9660_v59 }
 0x13c   :  { %v9322_v22 = vpop.eup %9321  ;;  %v129_v12 = vmul.f32 %v126_v3, %v121_v18 }
 0x13d   :  { %v136_v23 = vadd.f32 %v134_v8, %v128_v19  ;;  %v122_v24 = vmul.f32 %v9322_v22, %v9612_v21 }
 0x13e   :  { %v137_v25 = vadd.f32 %v134_v8, %v129_v12 }
 0x13f   :  { %8175 = vmatmul.mubr.msk.f32.vlgmr.msra.gmra.mrb[0].mxu1 %vm31_vm0, %v136_v23  ;;  %v130_v26 = vmul.f32 %v126_v3, %v122_v24  ;;  %v263_v23 = vrot.slane %v9688_v13, %v9668_v63 }
 0x140   :  { %8177 = vmatprep.mubr.msk.f32.mxu1 %vm31_vm0, %v137_v25 }
 0x141   :  { %v138_v27 = vadd.f32 %v134_v8, %v130_v26 }
 0x143   :  { %8178 = vmatmul.mubr.msk.f32.gmra.mrb[2].mxu1 %vm31_vm0, %v138_v27 }
 0x14b   :  { %271 = vrot.lane.b32.xlu0 %v269_v20, %s9536_s24 }
 0x1c2   :  { %v47_v21 = vpop.xlane.xlu0 %46 }
 0x1c3   :  { %v51_v28 = vmul.f32 0.015625, %v47_v21 }
 0x1c5   :  { %v53_v29 = vadd.f32 1e-05, %v51_v28 }
 0x1c6   :  { %v50_v30 = vpop.xlane.xlu1 %49  ;;  %v272_v45 = vpop.permute.xlu0 %271 }
 0x1c7   :  { %9323 = vrsqrt.f32 %v53_v29  ;;  %v52_v31 = vmul.f32 0.015625, %v50_v30 }
 0x1c9   :  { %v54_v32 = vadd.f32 1e-05, %v52_v31 }
 0x1cb   :  { %9325 = vrsqrt.f32 %v54_v32 }
 0x1d1   :  { %v9324_v36 = vpop.eup %9323 }
 0x1d2   :  { %v57_v37 = vmul.f32 %v9324_v36, %v41_v61  ;;  %v9748_v36 = vsub.s32 4, %v9657_v52 }
 0x1d4   :  { %v63_v39 = vmul.f32 %v62_v35, %v57_v37  ;;  %v367_v37 = vrot.slane %v9665_v62, %v9748_v36 }
 0x1d5   :  { %v9326_v40 = vpop.eup %9325 }
 0x1d6   :  { %v69_v41 = vadd.f32 %v68_v38, %v63_v39  ;;  %v58_v42 = vmul.f32 %v9326_v40, %v42_v6 }
 0x1d8   :  { %8171 = vmatprep.mubr.msk.f32.mxu0 %vm31_vm0, %v69_v41  ;;  %v64_v43 = vmul.f32 %v62_v35, %v58_v42 }
 0x1da   :  { %v70_v44 = vadd.f32 %v68_v38, %v64_v43  ;;  %v9754_v38 = vsub.s32 5, %v9657_v52 }
 0x1dc   :  { %8172 = vmatmul.mubr.msk.f32.vlgmr.msra.gmra.mrb[0].mxu0 %vm31_vm0, %v70_v44  ;;  %v379_v39 = vrot.slane %v9665_v62, %v9754_v38 }
 0x212   :  { %v8176_v46 = vpop.f32.mrb[0].mxu1 }
 0x213   :  { %v275_v47 = vadd.f32 %v8176_v46, %v272_v45  ;;  %v241_v48 = vpop.f32.mrb[1].mxu1 }
 0x214   :  { %v274_v50 = vadd.f32 %v272_v45, %v241_v48 }
 0x215   :  { %284 = vrot.lane.b32.xlu1 %v275_v47, %s9537_s25 }
 0x216   :  { %v8179_v49 = vpop.f32.mrb[2].mxu1 }
 0x217   :  { %v277_v51 = vadd.f32 %v8179_v49, %v272_v45  ;;  %v251_v53 = vpop.f32.mrb[3].mxu1  ;;  %v388_v49 = vld [vmem:[%s10963_s2 + $0x40] sm:$0xff] }
 0x218   :  { %v276_v54 = vadd.f32 %v272_v45, %v251_v53 }
 0x219   :  { %282 = vrot.lane.b32.xlu1 %v274_v50, %s9537_s25  ;;  %288 = vrot.lane.b32.xlu0 %v277_v51, %s9537_s25 }
 0x21d   :  { %286 = vrot.lane.b32.xlu1 %v276_v54, %s9537_s25 }
 0x287   :  { %v285_v55 = vpop.permute.xlu1 %284 }
 0x288   :  { %v298_v56 = vsel %vm294_vm1, %v285_v55, 0.0 }
 0x289   :  { %299 = vadd.xlane.f32.xlu0 %v298_v56 }
 0x28b   :  { %v283_v57 = vpop.permute.xlu1 %282  ;;  %v289_v0 = vpop.permute.xlu0 %288 }
 0x28c   :  { %v295_v58 = vsel %vm294_vm1, %v283_v57, 0.0  ;;  %v304_v1 = vsel %vm294_vm1, %v289_v0, 0.0  ;;  %v391_v0 = vld [vmem:[%s10963_s2 + $0x58] sm:$0xff] }
 0x28d   :  { %296 = vadd.xlane.f32.xlu1 %v295_v58 }
 0x28f   :  { %v287_v60 = vpop.permute.xlu1 %286 }
 0x290   :  { %v301_v61 = vsel %vm294_vm1, %v287_v60, 0.0 }
 0x291   :  { %302 = vadd.xlane.f32.xlu0 %v301_v61  ;;  %v390_v61 = vld [vmem:[%s10963_s2 + $0x50] sm:$0xff] }
 0x295   :  { %305 = vadd.xlane.f32.xlu0 %v304_v1 }
 0x2af   :  { %v8173_v2 = vpop.f32.mrb[0].mxu0 }
 0x2b0   :  { %v231_v3 = vpop.f32.mrb[1].mxu0  ;;  %v9735_v24 = vadd.f32 %v8173_v2, %v263_v23  ;;  %v8789_v2 = vpack.c.bf16 %v391_v0, %v390_v61 }
 0x2b1   :  { %v9739_v26 = vadd.f32 %v263_v23, %v231_v3 }
 0x2b2   :  { %v512_v25 = vsel %vm294_vm1, %v9735_v24, 0.0 }
 0x2b3   :  { %v509_v27 = vsel %vm294_vm1, %v9739_v26, 0.0 }
 0x316   :  { %v300_v4 = vpop.xlane.xlu0 %299 }
 0x317   :  { %v309_v5 = vmul.f32 0.03125, %v300_v4 }
 0x319   :  { %v9713_v6 = vsub.f32 %v275_v47, %v309_v5 }
 0x31a   :  { %v297_v7 = vpop.xlane.xlu1 %296 }
 0x31b   :  { %v308_v8 = vmul.f32 0.03125, %v297_v7  ;;  %v317_v9 = vmul.f32 %v9713_v6, %v9713_v6 }
 0x31d   :  { %v9717_v10 = vsub.f32 %v274_v50, %v308_v8  ;;  %326 = vrot.lane.b32.xlu0 %v317_v9, %s9537_s25  ;;  %v389_v50 = vld [vmem:[%s10963_s2 + $0x48] sm:$0xff] }
 0x31e   :  { %v303_v11 = vpop.xlane.xlu0 %302 }
 0x31f   :  { %v310_v14 = vmul.f32 0.03125, %v303_v11  ;;  %v316_v15 = vmul.f32 %v9717_v10, %v9717_v10  ;;  %v9786_v11 = vld [vmem:[%s10964_s3] sm:$0xff] }
 0x321   :  { %v9722_v16 = vsub.f32 %v276_v54, %v310_v14  ;;  %324 = vrot.lane.b32.xlu1 %v316_v15, %s9537_s25  ;;  %v9791_v14 = vld [vmem:[%s10964_s3 + $0x18] sm:$0xff] }
 0x322   :  { %v306_v17 = vpop.xlane.xlu0 %305 }
 0x323   :  { %v311_v18 = vmul.f32 0.03125, %v306_v17  ;;  %v318_v19 = vmul.f32 %v9722_v16, %v9722_v16  ;;  %v8793_v17 = vpack.c.bf16 %v9791_v14, %v9786_v11 }
 0x325   :  { %v9727_v22 = vsub.f32 %v277_v51, %v311_v18  ;;  %328 = vrot.lane.b32.xlu1 %v318_v19, %s9537_s25  ;;  %v8785_v51 = vpack.c.bf16 %v389_v50, %v388_v49  ;;  %v538_v50 = vrot.slane %v9688_v13, %v9697_v34 }
 0x327   :  { %v319_v12 = vmul.f32 %v9727_v22, %v9727_v22  ;;  %8786 = vmatprep.subr.bf16.mxu1 %v8785_v51 }
 0x328   :  { %8788 = vmatpush3.bf16.msra.mxu1 %v8785_v51 }
 0x329   :  { %330 = vrot.lane.b32.xlu1 %v319_v12, %s9537_s25  ;;  %8790 = vmatprep.subr.bf16.mxu1 %v8789_v2 }
 0x32c   :  { %8792 = vmatpush3.bf16.msra.mxu1 %v8789_v2 }
 0x32d   :  { %8794 = vmatprep.subr.bf16.mxu1 %v8793_v17 }
 0x33c   :  { %513 = vadd.xlane.f32.xlu0 %v512_v25 }
 0x34d   :  { %510 = vadd.xlane.f32.xlu1 %v509_v27 }
 0x38f   :  { %v327_v20 = vpop.permute.xlu0 %326 }
 0x390   :  { %v339_v21 = vsel %vm294_vm1, %v327_v20, 0.0 }
 0x391   :  { %340 = vadd.xlane.f32.xlu0 %v339_v21 }
 0x393   :  { %v325_v28 = vpop.permute.xlu1 %324 }
 0x394   :  { %v336_v29 = vsel %vm294_vm1, %v325_v28, 0.0 }
 0x395   :  { %337 = vadd.xlane.f32.xlu0 %v336_v29 }
 0x397   :  { %v329_v30 = vpop.permute.xlu1 %328 }
 0x398   :  { %v342_v31 = vsel %vm294_vm1, %v329_v30, 0.0 }
 0x399   :  { %343 = vadd.xlane.f32.xlu1 %v342_v31 }
 0x39b   :  { %v331_v32 = vpop.permute.xlu1 %330 }
 0x39c   :  { %v345_v35 = vsel %vm294_vm1, %v331_v32, 0.0 }
 0x39d   :  { %346 = vadd.xlane.f32.xlu0 %v345_v35 }
 0x3aa   :  { %369 = vrot.lane.b32.xlu1 %v367_v37, %s9536_s24 }
 0x3b3   :  { %381 = vrot.lane.b32.xlu0 %v379_v39, %s9536_s24 }
 0x3c9   :  { %v514_v40 = vpop.xlane.xlu0 %513 }
 0x3ca   :  { %v516_v41 = vmul.f32 0.03125, %v514_v40 }
 0x3cc   :  { %v9760_v42 = vsub.f32 %v9735_v24, %v516_v41 }
 0x3ce   :  { %v520_v43 = vmul.f32 %v9760_v42, %v9760_v42 }
 0x3d0   :  { %v524_v44 = vsel %vm294_vm1, %v520_v43, 0.0 }
 0x3d2   :  { %525 = vadd.xlane.f32.xlu0 %v524_v44  ;;  %v9806_v44 = vld [vmem:[%s10964_s3 + $0x30] sm:$0xff] }
 0x3da   :  { %v511_v45 = vpop.xlane.xlu1 %510 }
 0x3db   :  { %v515_v46 = vmul.f32 0.03125, %v511_v45 }
 0x3dd   :  { %v9766_v47 = vsub.f32 %v9739_v26, %v515_v46 }
 0x3df   :  { %v519_v62 = vmul.f32 %v9766_v47, %v9766_v47 }
 0x3e1   :  { %v521_v48 = vsel %vm294_vm1, %v519_v62, 0.0 }
 0x3e2   :  { %522 = vadd.xlane.f32.xlu1 %v521_v48 }
 0x41e   :  { %v341_v53 = vpop.xlane.xlu0 %340 }
 0x41f   :  { %v349_v54 = vmul.f32 0.03125, %v341_v53 }
 0x421   :  { %v353_v55 = vadd.f32 1e-05, %v349_v54 }
 0x422   :  { %v338_v56 = vpop.xlane.xlu0 %337 }
 0x423   :  { %9327 = vrsqrt.f32 %v353_v55  ;;  %v348_v57 = vmul.f32 0.03125, %v338_v56  ;;  %v544_v55 = vrot.slane %v9688_v13, %v9748_v36 }
 0x425   :  { %v352_v58 = vadd.f32 1e-05, %v348_v57 }
 0x426   :  { %v344_v60 = vpop.xlane.xlu1 %343 }
 0x427   :  { %9329 = vrsqrt.f32 %v352_v58  ;;  %v350_v1 = vmul.f32 0.03125, %v344_v60 }
 0x429   :  { %v354_v3 = vadd.f32 1e-05, %v350_v1 }
 0x42a   :  { %v347_v4 = vpop.xlane.xlu0 %346  ;;  %v370_v9 = vpop.permute.xlu1 %369 }
 0x42b   :  { %9331 = vrsqrt.f32 %v354_v3  ;;  %v351_v5 = vmul.f32 0.03125, %v347_v4 }
 0x42d   :  { %v9328_v7 = vpop.eup %9327  ;;  %v355_v8 = vadd.f32 1e-05, %v351_v5 }
 0x42e   :  { %v361_v15 = vmul.f32 %v9328_v7, %v9713_v6  ;;  %v382_v18 = vpop.permute.xlu0 %381 }
 0x42f   :  { %9333 = vrsqrt.f32 %v355_v8 }
 0x430   :  { %v373_v19 = vmul.f32 %v370_v9, %v361_v15 }
 0x431   :  { %v9330_v12 = vpop.eup %9329 }
 0x432   :  { %v385_v23 = vadd.f32 %v382_v18, %v373_v19  ;;  %v360_v25 = vmul.f32 %v9330_v12, %v9717_v10 }
 0x434   :  { %398 = vrot.lane.b32.xlu0 %v385_v23, %s9537_s25  ;;  %v372_v27 = vmul.f32 %v370_v9, %v360_v25 }
 0x435   :  { %v9332_v20 = vpop.eup %9331 }
 0x436   :  { %v384_v21 = vadd.f32 %v382_v18, %v372_v27  ;;  %v362_v28 = vmul.f32 %v9332_v20, %v9722_v16 }
 0x438   :  { %396 = vrot.lane.b32.xlu1 %v384_v21, %s9537_s25  ;;  %v374_v6 = vmul.f32 %v370_v9, %v362_v28 }
 0x439   :  { %v9334_v29 = vpop.eup %9333 }
 0x43a   :  { %v386_v30 = vadd.f32 %v382_v18, %v374_v6  ;;  %v363_v31 = vmul.f32 %v9334_v29, %v9727_v22  ;;  %v9811_v22 = vld [vmem:[%s10964_s3 + $0x48] sm:$0xff] }
 0x43b   :  { %v8797_v62 = vpack.c.bf16 %v9811_v22, %v9806_v44 }
 0x43c   :  { %400 = vrot.lane.b32.xlu1 %v386_v30, %s9537_s25  ;;  %v375_v32 = vmul.f32 %v370_v9, %v363_v31 }
 0x43e   :  { %v387_v35 = vadd.f32 %v382_v18, %v375_v32 }
 0x440   :  { %402 = vrot.lane.b32.xlu1 %v387_v35, %s9537_s25 }
 0x45f   :  { %v526_v37 = vpop.xlane.xlu0 %525 }
 0x460   :  { %v528_v40 = vmul.f32 0.03125, %v526_v37 }
 0x462   :  { %v530_v43 = vadd.f32 1e-05, %v528_v40 }
 0x46f   :  { %v523_v10 = vpop.xlane.xlu1 %522 }
 0x470   :  { %v527_v39 = vmul.f32 0.03125, %v523_v10 }
 0x472   :  { %v529_v41 = vadd.f32 1e-05, %v527_v39 }
 0x474   :  { %9335 = vrsqrt.f32 %v529_v41 }
 0x475   :  { %9337 = vrsqrt.f32 %v530_v43 }
 0x47e   :  { %v9336_v16 = vpop.eup %9335 }
 0x47f   :  { %v9338_v45 = vpop.eup %9337  ;;  %v533_v48 = vmul.f32 %v9336_v16, %v9766_v47 }
 0x480   :  { %v534_v51 = vmul.f32 %v9338_v45, %v9760_v42  ;;  %v9538_v42 = vmov 0.0  }
 0x481   :  { %v539_v54 = vmul.f32 %v538_v50, %v533_v48  ;;  %8215 = vmatprep.subr.mxu0 %v9538_v42  ;;  %8217 = vmatprep.mubr.msk.f32.mxu0 %vm9539_vm2, %v9538_v42 }
 0x482   :  { %v540_v47 = vmul.f32 %v538_v50, %v534_v51 }
 0x483   :  { %v545_v57 = vadd.f32 %v544_v55, %v539_v54 }
 0x484   :  { %v546_v58 = vadd.f32 %v544_v55, %v540_v47 }
 0x4a6   :  { %v399_v49 = vpop.permute.xlu0 %398 }
 0x4aa   :  { %v397_v46 = vpop.permute.xlu1 %396 }
 0x4ab   :  { %8188 = vmatprep.mubr.msk.f32.mxu1 %vm294_vm1, %v397_v46 }
 0x4ac   :  { %8189 = vmatmul.mubr.msk.f32.vlgmr.msra.gmra.mrb[4].mxu1 %vm294_vm1, %v399_v49 }
 0x4ad   :  { %8796 = vmatpush3.bf16.msra.mxu1 %v8793_v17 }
 0x4ae   :  { %v401_v53 = vpop.permute.xlu1 %400  ;;  %8798 = vmatprep.subr.bf16.mxu1 %v8797_v62 }
 0x4af   :  { %8191 = vmatprep.mubr.msk.f32.mxu1 %vm294_vm1, %v401_v53 }
 0x4b1   :  { %8800 = vmatpush3.bf16.msra.mxu1 %v8797_v62 }
 0x4b2   :  { %v403_v56 = vpop.permute.xlu1 %402  ;;  %8205 = vmatprep.subr.mxu1 %v9538_v42 }
 0x4b3   :  { %8192 = vmatmul.mubr.msk.f32.gmra.mrb[6].mxu1 %vm294_vm1, %v403_v56 }
 0x4b4   :  { %8202 = vmatprep.mubr.msk.f32.mxu1 %vm294_vm1, %v545_v57 }
 0x4b7   :  { %8203 = vmatmul.mubr.msk.f32.vlgmr.msra.gmra.mrb[8].mxu1 %vm294_vm1, %v546_v58 }
 0x4b8   :  { %8207 = vmatprep.mubr.msk.f32.mxu1 %vm9539_vm2, %v9538_v42 }
 0x57f   :  { %v9829_v60 = vpop.f32.mrb[4].mxu1 }
 0x580   :  { %v9831_v61 = vpop.f32.mrb[5].mxu1 }
 0x581   :  { %v8818_v13 = vpack.c.bf16 %v9829_v60, %v9831_v61  ;;  %v9841_v0 = vpack.i.bf16 %v9829_v60, %v9831_v61 }
 0x586   :  { %v9843_v1 = vpop.f32.mrb[6].mxu1 }
 0x587   :  { %v9845_v2 = vpop.f32.mrb[7].mxu1 }
 0x588   :  { %v8822_v3 = vpack.c.bf16 %v9843_v1, %v9845_v2  ;;  %v9851_v4 = vpack.i.bf16 %v9843_v1, %v9845_v2 }
 0x58a   :  { %v9853_v5 = vpop.f32.mrb[8].mxu1 }
 0x58b   :  { %707 = vrot.lane.b32.xlu0 %v9853_v5, %s9537_s25  ;;  %v9857_v7 = vpop.f32.mrb[9].mxu1 }
 0x58c   :  { %629 = vrot.lane.b32.xlu1 %v9857_v7, %s9537_s25 }
 0x5fd   :  { %v708_v9 = vpop.permute.xlu0 %707 }
 0x5fe   :  { %v630_v8 = vpop.permute.xlu1 %629 }
 0x5ff   :  { %8206 = vmatpush3.xpose.msk.msra.mxu1 %vm631_vm3, %v630_v8 }
 0x600   :  { %8210 = vmatprep.subr.mxu1 %v9538_v42 }
 0x602   :  { %8208 = vmatmul.mubr.msk.f32.vlgmr.msra.gmra.mrb[10].mxu1 %vm631_vm3, %v9857_v7 }
 0x603   :  { %8211 = vmatpush3.xpose.msk.msra.mxu1 %vm631_vm3, %v708_v9  ;;  %8212 = vmatprep.mubr.msk.f32.mxu1 %vm9539_vm2, %v9538_v42 }
 0x604   :  { %8220 = vmatprep.subr.mxu1 %v9538_v42 }
 0x606   :  { %8213 = vmatmul.mubr.msk.f32.vlgmr.msra.gmra.mrb[12].mxu1 %vm631_vm3, %v9853_v5 }
 0x607   :  { %8222 = vmatprep.mubr.msk.f32.mxu1 %vm9539_vm2, %v9538_v42 }
 0x6d5   :  { %v702_v15 = vpop.f32.mrb[10].mxu1 }
 0x6d6   :  { %v783_v17 = vmul.f32 0.35355338, %v702_v15  ;;  %v8209_v18 = vpop.f32.mrb[11].mxu1 }
 0x6d8   :  { %v785_v19 = vsel %vm631_vm3, %v783_v17, -inf }
 0x6d9   :  { %786 = vmax.xlane.f32.xlu1 %v785_v19  ;;  %v779_v12 = vpop.f32.mrb[12].mxu1 }
 0x6da   :  { %v784_v23 = vmul.f32 0.35355338, %v779_v12  ;;  %v8214_v25 = vpop.f32.mrb[13].mxu1 }
 0x6dc   :  { %v788_v27 = vsel %vm631_vm3, %v784_v23, -inf }
 0x6dd   :  { %789 = vmax.xlane.f32.xlu0 %v788_v27 }
 0x6ea   :  { %807 = vrot.lane.b32.xlu1 %v9857_v7, %s9540_s16 }
 0x6ee   :  { %961 = vrot.lane.b32.xlu1 %v9857_v7, %s9541_s17 }
 0x6f2   :  { %1039 = vrot.lane.b32.xlu1 %v9853_v5, %s9541_s17 }
 0x6f3   :  { %883 = vrot.lane.b32.xlu0 %v9853_v5, %s9540_s16 }
 0x6f6   :  { %959 = vrot.lane.b32.xlu1 %v9857_v7, %s9542_s18 }
 0x766   :  { %v787_v20 = vpop.xlane.xlu1 %786 }
 0x767   :  { %v791_v21 = vsub.f32 %v783_v17, %v787_v20 }
 0x769   :  { %v793_v28 = vmul.f32 1.442695, %v791_v21 }
 0x76a   :  { %v808_v6 = vpop.permute.xlu1 %807  ;;  %v790_v29 = vpop.xlane.xlu0 %789 }
 0x76b   :  { %9339 = vpow2.f32 %v793_v28  ;;  %v792_v30 = vsub.f32 %v784_v23, %v790_v29  ;;  %8216 = vmatpush3.msra.mxu0 %v808_v6 }
 0x76c   :  { %8225 = vmatprep.subr.mxu0 %v9538_v42 }
 0x76d   :  { %v795_v31 = vmul.f32 1.442695, %v792_v30 }
 0x76e   :  { %v884_v32 = vpop.permute.xlu0 %883  ;;  %v962_v43 = vpop.permute.xlu1 %961 }
 0x76f   :  { %9341 = vpow2.f32 %v795_v31  ;;  %8221 = vmatpush3.msra.mxu1 %v884_v32 }
 0x770   :  { %8230 = vmatprep.subr.mxu1 %v9538_v42 }
 0x772   :  { %v1040_v45 = vpop.permute.xlu1 %1039 }
 0x775   :  { %v9340_v35 = vpop.eup %9339 }
 0x776   :  { %v797_v10 = vsel %vm631_vm3, %v9340_v35, 0.0  ;;  %v960_v49 = vpop.permute.xlu1 %959 }
 0x777   :  { %798 = vadd.xlane.f32.xlu0 %v797_v10 }
 0x779   :  { %v9342_v37 = vpop.eup %9341 }
 0x77a   :  { %v800_v39 = vsel %vm631_vm3, %v9342_v37, 0.0 }
 0x77b   :  { %801 = vadd.xlane.f32.xlu0 %v800_v39 }
 0x791   :  { %1037 = vrot.lane.b32.xlu0 %v9853_v5, %s9542_s18 }
 0x804   :  { %v799_v40 = vpop.xlane.xlu0 %798 }
 0x805   :  { %9343 = vrcp.f32 %v799_v40 }
 0x808   :  { %v802_v41 = vpop.xlane.xlu0 %801 }
 0x809   :  { %9345 = vrcp.f32 %v802_v41 }
 0x80c   :  { %v1038_v50 = vpop.permute.xlu0 %1037 }
 0x80f   :  { %v9344_v16 = vpop.eup %9343 }
 0x810   :  { %v804_v46 = vmul.f32 %v9344_v16, %v9340_v35 }
 0x812   :  { %8218 = vmatmul.mubr.msk.f32.vlgmr.msra.gmra.mrb[2].mxu0 %vm631_vm3, %v804_v46 }
 0x813   :  { %v9346_v62 = vpop.eup %9345  ;;  %8226 = vmatpush3.xpose.msk.msra.mxu0 %vm631_vm3, %v962_v43  ;;  %8227 = vmatprep.mubr.msk.f32.mxu0 %vm9539_vm2, %v9538_v42 }
 0x814   :  { %v806_v48 = vmul.f32 %v9346_v62, %v9342_v37  ;;  %8235 = vmatprep.subr.mxu0 %v9538_v42 }
 0x816   :  { %8223 = vmatmul.mubr.msk.f32.vlgmr.msra.gmra.mrb[14].mxu1 %vm631_vm3, %v806_v48  ;;  %8228 = vmatmul.mubr.msk.f32.vlgmr.msra.gmra.mrb[4].mxu0 %vm631_vm3, %v960_v49 }
 0x817   :  { %8231 = vmatpush3.xpose.msk.msra.mxu1 %vm631_vm3, %v1040_v45  ;;  %8232 = vmatprep.mubr.msk.f32.mxu1 %vm9539_vm2, %v9538_v42 }
 0x818   :  { %8240 = vmatprep.subr.mxu1 %v9538_v42  ;;  %8237 = vmatprep.mubr.msk.f32.mxu0 %vm9539_vm2, %v9538_v42 }
 0x81a   :  { %8233 = vmatmul.mubr.msk.f32.vlgmr.msra.gmra.mrb[16].mxu1 %vm631_vm3, %v1038_v50 }
 0x81b   :  { %8242 = vmatprep.mubr.msk.f32.mxu1 %vm9539_vm2, %v9538_v42 }
 0x8e5   :  { %v9907_v51 = vpop.f32.mrb[2].mxu0 }
 0x8e6   :  { %v8219_v53 = vpop.f32.mrb[3].mxu0 }
 0x8e9   :  { %v9909_v54 = vpop.f32.mrb[14].mxu1  ;;  %v1033_v55 = vpop.f32.mrb[4].mxu0 }
 0x8ea   :  { %v1115_v47 = vmul.f32 0.35355338, %v1033_v55  ;;  %v8224_v56 = vpop.f32.mrb[15].mxu1  ;;  %v8229_v57 = vpop.f32.mrb[5].mxu0 }
 0x8ec   :  { %v1117_v58 = vsel %vm631_vm3, %v1115_v47, -inf }
 0x8ed   :  { %1118 = vmax.xlane.f32.xlu1 %v1117_v58  ;;  %v1111_v8 = vpop.f32.mrb[16].mxu1 }
 0x8ee   :  { %v1116_v9 = vmul.f32 0.35355338, %v1111_v8  ;;  %v8234_v15 = vpop.f32.mrb[17].mxu1 }
 0x8f0   :  { %v1120_v17 = vsel %vm631_vm3, %v1116_v9, -inf }
 0x8f1   :  { %1121 = vmax.xlane.f32.xlu0 %v1120_v17 }
 0x8fe   :  { %1139 = vrot.lane.b32.xlu1 %v9857_v7, %s9543_s19 }
 0x902   :  { %1293 = vrot.lane.b32.xlu1 %v9857_v7, %s9544_s20 }
 0x906   :  { %1371 = vrot.lane.b32.xlu1 %v9853_v5, %s9544_s20 }
 0x907   :  { %1215 = vrot.lane.b32.xlu0 %v9853_v5, %s9543_s19 }
 0x90a   :  { %1291 = vrot.lane.b32.xlu1 %v9857_v7, %s9545_s21 }
 0x97a   :  { %v1119_v18 = vpop.xlane.xlu1 %1118 }
 0x97b   :  { %v1123_v19 = vsub.f32 %v1115_v47, %v1119_v18 }
 0x97d   :  { %v1125_v12 = vmul.f32 1.442695, %v1123_v19 }
 0x97e   :  { %v1140_v23 = vpop.permute.xlu1 %1139  ;;  %v1122_v25 = vpop.xlane.xlu0 %1121 }
 0x97f   :  { %9347 = vpow2.f32 %v1125_v12  ;;  %v1124_v27 = vsub.f32 %v1116_v9, %v1122_v25  ;;  %8236 = vmatpush3.msra.mxu0 %v1140_v23 }
 0x980   :  { %8245 = vmatprep.subr.mxu0 %v9538_v42 }
 0x981   :  { %v1127_v20 = vmul.f32 1.442695, %v1124_v27 }
 0x982   :  { %v1216_v21 = vpop.permute.xlu0 %1215  ;;  %v1294_v35 = vpop.permute.xlu1 %1293 }
 0x983   :  { %9349 = vpow2.f32 %v1127_v20  ;;  %8241 = vmatpush3.msra.mxu1 %v1216_v21 }
 0x984   :  { %8250 = vmatprep.subr.mxu1 %v9538_v42 }
 0x986   :  { %v1372_v37 = vpop.permute.xlu1 %1371 }
 0x989   :  { %v9348_v28 = vpop.eup %9347 }
 0x98a   :  { %v1129_v6 = vsel %vm631_vm3, %v9348_v28, 0.0  ;;  %v1292_v43 = vpop.permute.xlu1 %1291 }
 0x98b   :  { %1130 = vadd.xlane.f32.xlu0 %v1129_v6 }
 0x98d   :  { %v9350_v29 = vpop.eup %9349 }
 0x98e   :  { %v1132_v30 = vsel %vm631_vm3, %v9350_v29, 0.0 }
 0x98f   :  { %1133 = vadd.xlane.f32.xlu0 %v1132_v30 }
 0x9a5   :  { %1369 = vrot.lane.b32.xlu0 %v9853_v5, %s9545_s21 }
 0xa18   :  { %v1131_v31 = vpop.xlane.xlu0 %1130 }
 0xa19   :  { %9351 = vrcp.f32 %v1131_v31 }
 0xa1c   :  { %v1134_v32 = vpop.xlane.xlu0 %1133 }
 0xa1d   :  { %9353 = vrcp.f32 %v1134_v32 }
 0xa20   :  { %v1370_v16 = vpop.permute.xlu0 %1369 }
 0xa23   :  { %v9352_v10 = vpop.eup %9351 }
 0xa24   :  { %v1136_v39 = vmul.f32 %v9352_v10, %v9348_v28 }
 0xa26   :  { %8238 = vmatmul.mubr.msk.f32.vlgmr.msra.gmra.mrb[6].mxu0 %vm631_vm3, %v1136_v39 }
 0xa27   :  { %v9354_v40 = vpop.eup %9353  ;;  %8246 = vmatpush3.xpose.msk.msra.mxu0 %vm631_vm3, %v1294_v35  ;;  %8247 = vmatprep.mubr.msk.f32.mxu0 %vm9539_vm2, %v9538_v42 }
 0xa28   :  { %v1138_v41 = vmul.f32 %v9354_v40, %v9350_v29  ;;  %8255 = vmatprep.subr.mxu0 %v9538_v42 }
 0xa2a   :  { %8243 = vmatmul.mubr.msk.f32.vlgmr.msra.gmra.mrb[18].mxu1 %vm631_vm3, %v1138_v41  ;;  %8248 = vmatmul.mubr.msk.f32.vlgmr.msra.gmra.mrb[8].mxu0 %vm631_vm3, %v1292_v43 }
 0xa2b   :  { %8251 = vmatpush3.xpose.msk.msra.mxu1 %vm631_vm3, %v1372_v37  ;;  %8252 = vmatprep.mubr.msk.f32.mxu1 %vm9539_vm2, %v9538_v42 }
 0xa2c   :  { %8260 = vmatprep.subr.mxu1 %v9538_v42  ;;  %8257 = vmatprep.mubr.msk.f32.mxu0 %vm9539_vm2, %v9538_v42 }
 0xa2e   :  { %8253 = vmatmul.mubr.msk.f32.vlgmr.msra.gmra.mrb[20].mxu1 %vm631_vm3, %v1370_v16 }
 0xa2f   :  { %8262 = vmatprep.mubr.msk.f32.mxu1 %vm9539_vm2, %v9538_v42 }
 0xaf9   :  { %v9945_v45 = vpop.f32.mrb[6].mxu0 }
 0xafa   :  { %v8239_v46 = vpop.f32.mrb[7].mxu0 }
 0xafd   :  { %v9947_v62 = vpop.f32.mrb[18].mxu1  ;;  %v1365_v48 = vpop.f32.mrb[8].mxu0 }
 0xafe   :  { %v1447_v49 = vmul.f32 0.35355338, %v1365_v48  ;;  %v8244_v50 = vpop.f32.mrb[19].mxu1  ;;  %v8249_v53 = vpop.f32.mrb[9].mxu0 }
 0xb00   :  { %v1449_v55 = vsel %vm631_vm3, %v1447_v49, -inf }
 0xb01   :  { %1450 = vmax.xlane.f32.xlu1 %v1449_v55  ;;  %v1443_v47 = vpop.f32.mrb[20].mxu1 }
 0xb02   :  { %v1448_v56 = vmul.f32 0.35355338, %v1443_v47  ;;  %v8254_v57 = vpop.f32.mrb[21].mxu1 }
 0xb03   :  { %v9085_v57 = vpack.i.bf16 %v9791_v14, %v9786_v11 }
 0xb04   :  { %v1452_v58 = vsel %vm631_vm3, %v1448_v56, -inf }
 0xb05   :  { %1453 = vmax.xlane.f32.xlu0 %v1452_v58  ;;  %v9090_v58 = vpack.i.bf16 %v9811_v22, %v9806_v44 }
 0xb12   :  { %1471 = vrot.lane.b32.xlu1 %v9857_v7, %s9546_s22 }
 0xb16   :  { %1625 = vrot.lane.b32.xlu1 %v9857_v7, %s9547_s23 }
 0xb1a   :  { %1703 = vrot.lane.b32.xlu1 %v9853_v5, %s9547_s23 }
 0xb1b   :  { %1547 = vrot.lane.b32.xlu0 %v9853_v5, %s9546_s22 }
 0xb1e   :  { %1623 = vrot.lane.b32.xlu1 %v9857_v7, %s9548_s26 }
 0xb8e   :  { %v1451_v8 = vpop.xlane.xlu1 %1450 }
 0xb8f   :  { %v1455_v9 = vsub.f32 %v1447_v49, %v1451_v8 }
 0xb91   :  { %v1457_v15 = vmul.f32 1.442695, %v1455_v9 }
 0xb92   :  { %v1472_v17 = vpop.permute.xlu1 %1471  ;;  %v1454_v18 = vpop.xlane.xlu0 %1453 }
 0xb93   :  { %9355 = vpow2.f32 %v1457_v15  ;;  %v1456_v19 = vsub.f32 %v1448_v56, %v1454_v18  ;;  %8256 = vmatpush3.msra.mxu0 %v1472_v17 }
 0xb94   :  { %8265 = vmatprep.subr.mxu0 %v9538_v42 }
 0xb95   :  { %v1459_v12 = vmul.f32 1.442695, %v1456_v19 }
 0xb96   :  { %v1548_v23 = vpop.permute.xlu0 %1547  ;;  %v1626_v29 = vpop.permute.xlu1 %1625 }
 0xb97   :  { %9357 = vpow2.f32 %v1459_v12  ;;  %8261 = vmatpush3.msra.mxu1 %v1548_v23 }
 0xb98   :  { %8270 = vmatprep.subr.mxu1 %v9538_v42 }
 0xb9a   :  { %v1704_v31 = vpop.permute.xlu1 %1703 }
 0xb9d   :  { %v9356_v25 = vpop.eup %9355 }
 0xb9e   :  { %v1461_v27 = vsel %vm631_vm3, %v9356_v25, 0.0  ;;  %v1624_v37 = vpop.permute.xlu1 %1623 }
 0xb9f   :  { %1462 = vadd.xlane.f32.xlu0 %v1461_v27 }
 0xba1   :  { %v9358_v20 = vpop.eup %9357 }
 0xba2   :  { %v1464_v21 = vsel %vm631_vm3, %v9358_v20, 0.0 }
 0xba3   :  { %1465 = vadd.xlane.f32.xlu0 %v1464_v21 }
 0xbb9   :  { %1701 = vrot.lane.b32.xlu0 %v9853_v5, %s9548_s26 }
 0xc2c   :  { %v1463_v28 = vpop.xlane.xlu0 %1462 }
 0xc2d   :  { %9359 = vrcp.f32 %v1463_v28 }
 0xc30   :  { %v1466_v6 = vpop.xlane.xlu0 %1465 }
 0xc31   :  { %9361 = vrcp.f32 %v1466_v6 }
 0xc34   :  { %v1702_v39 = vpop.permute.xlu0 %1701 }
 0xc37   :  { %v9360_v30 = vpop.eup %9359 }
 0xc38   :  { %v1468_v32 = vmul.f32 %v9360_v30, %v9356_v25 }
 0xc3a   :  { %8258 = vmatmul.mubr.msk.f32.vlgmr.msra.gmra.mrb[10].mxu0 %vm631_vm3, %v1468_v32 }
 0xc3b   :  { %v9362_v35 = vpop.eup %9361  ;;  %8266 = vmatpush3.xpose.msk.msra.mxu0 %vm631_vm3, %v1626_v29  ;;  %8267 = vmatprep.mubr.msk.f32.mxu0 %vm9539_vm2, %v9538_v42 }
 0xc3c   :  { %v1470_v10 = vmul.f32 %v9362_v35, %v9358_v20  ;;  %8275 = vmatprep.subr.mxu0 %v9538_v42  ;;  %v9552_v35 = vmov 0.0|0.0  }
 0xc3e   :  { %8263 = vmatmul.mubr.msk.f32.vlgmr.msra.gmra.mrb[22].mxu1 %vm631_vm3, %v1470_v10  ;;  %8268 = vmatmul.mubr.msk.f32.vlgmr.msra.gmra.mrb[12].mxu0 %vm631_vm3, %v1624_v37 }
 0xc3f   :  { %8271 = vmatpush3.xpose.msk.msra.mxu1 %vm631_vm3, %v1704_v31  ;;  %8272 = vmatprep.mubr.msk.f32.mxu1 %vm9539_vm2, %v9538_v42 }
 0xc40   :  { %8280 = vmatprep.subr.mxu1 %v9538_v42  ;;  %8277 = vmatprep.mubr.msk.f32.mxu0 %vm9539_vm2, %v9538_v42 }
 0xc42   :  { %8273 = vmatmul.mubr.msk.f32.vlgmr.msra.gmra.mrb[24].mxu1 %vm631_vm3, %v1702_v39 }
 0xc43   :  { %8282 = vmatprep.mubr.msk.f32.mxu1 %vm9539_vm2, %v9538_v42 }
 0xd0d   :  { %v1543_v40 = vpop.f32.mrb[10].mxu0 }
 0xd0e   :  { %v8259_v41 = vpop.f32.mrb[11].mxu0 }
 0xd11   :  { %v1619_v43 = vpop.f32.mrb[22].mxu1  ;;  %v1697_v16 = vpop.f32.mrb[12].mxu0 }
 0xd12   :  { %v1779_v46 = vmul.f32 0.35355338, %v1697_v16  ;;  %v8264_v48 = vpop.f32.mrb[23].mxu1  ;;  %v8269_v49 = vpop.f32.mrb[13].mxu0 }
 0xd14   :  { %v1781_v50 = vsel %vm631_vm3, %v1779_v46, -inf }
 0xd15   :  { %1782 = vmax.xlane.f32.xlu1 %v1781_v50  ;;  %v1775_v53 = vpop.f32.mrb[24].mxu1 }
 0xd16   :  { %v1780_v55 = vmul.f32 0.35355338, %v1775_v53  ;;  %v8274_v47 = vpop.f32.mrb[25].mxu1 }
 0xd18   :  { %v1784_v56 = vsel %vm631_vm3, %v1780_v55, -inf }
 0xd19   :  { %1785 = vmax.xlane.f32.xlu0 %v1784_v56 }
 0xd26   :  { %1803 = vrot.lane.b32.xlu1 %v9857_v7, %s9549_s27 }
 0xd2a   :  { %9086 = vrot.lane.b32.xlu1 %v9085_v57, %s9536_s24 }
 0xd2e   :  { %9091 = vrot.lane.b32.xlu1 %v9090_v58, %s9536_s24 }
 0xd32   :  { %1957 = vrot.lane.b32.xlu1 %v9945_v45, %s9550_s28 }
 0xd36   :  { %1965 = vrot.lane.b32.xlu1 %v1543_v40, %s9551_s29 }
 0xda2   :  { %v1783_v8 = vpop.xlane.xlu1 %1782 }
 0xda3   :  { %v1787_v9 = vsub.f32 %v1779_v46, %v1783_v8 }
 0xda5   :  { %v1789_v7 = vmul.f32 1.442695, %v1787_v9 }
 0xda6   :  { %v1804_v15 = vpop.permute.xlu1 %1803  ;;  %v1786_v17 = vpop.xlane.xlu0 %1785 }
 0xda7   :  { %9363 = vpow2.f32 %v1789_v7  ;;  %v1788_v11 = vsub.f32 %v1780_v55, %v1786_v17  ;;  %8276 = vmatpush3.msra.mxu0 %v1804_v15 }
 0xda9   :  { %v1791_v14 = vmul.f32 1.442695, %v1788_v11 }
 0xdab   :  { %9365 = vpow2.f32 %v1791_v14 }
 0xdb1   :  { %v9364_v44 = vpop.eup %9363 }
 0xdb2   :  { %v1793_v22 = vsel %vm631_vm3, %v9364_v44, 0.0 }
 0xdb3   :  { %1794 = vadd.xlane.f32.xlu0 %v1793_v22 }
 0xdb5   :  { %v9366_v18 = vpop.eup %9365 }
 0xdb6   :  { %v1796_v45 = vsel %vm631_vm3, %v9366_v18, 0.0 }
 0xdb7   :  { %1797 = vadd.xlane.f32.xlu0 %v1796_v45 }
 0xdcd   :  { %1879 = vrot.lane.b32.xlu0 %v9853_v5, %s9549_s27  ;;  %v9087_v5 = vpop.permute.xlu1 %9086 }
 0xdce   :  { %v9089_v6 = vunpack.i.h.bf16 %v9087_v5 }
 0xdd1   :  { %1959 = vrot.lane.b32.xlu0 %v9947_v62, %s9550_s28  ;;  %v9092_v28 = vpop.permute.xlu1 %9091  ;;  %v9088_v62 = vunpack.i.l.bf16 %v9087_v5 }
 0xdd2   :  { %v9094_v29 = vunpack.i.h.bf16 %v9092_v28  ;;  %v9093_v30 = vunpack.i.l.bf16 %v9092_v28 }
 0xdd3   :  { %v8801_v31 = vpack.c.bf16 %v9089_v6, %v9088_v62 }
 0xdd4   :  { %v8805_v32 = vpack.c.bf16 %v9094_v29, %v9093_v30 }
 0xdd5   :  { %1967 = vrot.lane.b32.xlu0 %v1619_v43, %s9551_s29  ;;  %8802 = vmatprep.subr.bf16.mxu0 %v8801_v31  ;;  %v1958_v41 = vpop.permute.xlu1 %1957 }
 0xdd6   :  { %v1979_v46 = vsel %vm631_vm3, %v9907_v51, %v1958_v41 }
 0xdd9   :  { %v1966_v16 = vpop.permute.xlu1 %1965 }
 0xdda   :  { %v1982_v48 = vsel %vm1981_vm4, %v1979_v46, %v1966_v16 }
 0xe40   :  { %v1795_v19 = vpop.xlane.xlu0 %1794 }
 0xe41   :  { %9367 = vrcp.f32 %v1795_v19 }
 0xe44   :  { %v1798_v12 = vpop.xlane.xlu0 %1797 }
 0xe45   :  { %9369 = vrcp.f32 %v1798_v12 }
 0xe48   :  { %v1880_v23 = vpop.permute.xlu0 %1879 }
 0xe49   :  { %8281 = vmatpush3.msra.mxu1 %v1880_v23  ;;  %v10056_v23 = vld [vmem:[%s10964_s3 + $0x8] sm:$0xff] }
 0xe4b   :  { %v9368_v25 = vpop.eup %9367 }
 0xe4c   :  { %v1800_v27 = vmul.f32 %v9368_v25, %v9364_v44  ;;  %v1960_v43 = vpop.permute.xlu0 %1959  ;;  %v10061_v25 = vld [vmem:[%s10964_s3 + $0x20] sm:$0xff] }
 0xe4d   :  { %v1980_v55 = vsel %vm631_vm3, %v9909_v54, %v1960_v43  ;;  %v10035_v54 = vld [vmem:[%s10962_s1 + $0x10] sm:$0xff] }
 0xe4e   :  { %8278 = vmatmul.mubr.msk.f32.vlgmr.msra.gmra.mrb[14].mxu0 %vm631_vm3, %v1800_v27  ;;  %v1990_v58 = vrot.slane %v10035_v54, %v9668_v63  ;;  %v8809_v27 = vpack.c.bf16 %v10061_v25, %v10056_v23 }
 0xe4f   :  { %v9370_v20 = vpop.eup %9369  ;;  %8804 = vmatpush3.bf16.msra.mxu0 %v8801_v31 }
 0xe50   :  { %v1802_v21 = vmul.f32 %v9370_v20, %v9366_v18  ;;  %8806 = vmatprep.subr.bf16.mxu0 %v8805_v32  ;;  %v1968_v49 = vpop.permute.xlu0 %1967  ;;  %8810 = vmatprep.subr.bf16.mxu1 %v8809_v27  ;;  %v10068_v20 = vld [vmem:[%s10964_s3 + $0x38] sm:$0xff] }
 0xe51   :  { %v1983_v47 = vsel %vm1981_vm4, %v1980_v55, %v1968_v49 }
 0xe52   :  { %8283 = vmatmul.mubr.msk.f32.vlgmr.msra.gmra.mrb[26].mxu1 %vm631_vm3, %v1802_v21  ;;  %v10073_v21 = vld [vmem:[%s10964_s3 + $0x50] sm:$0xff] }
 0xe53   :  { %8808 = vmatpush3.bf16.msra.mxu0 %v8805_v32  ;;  %8812 = vmatpush3.bf16.msra.mxu1 %v8809_v27  ;;  %v8813_v5 = vpack.c.bf16 %v10073_v21, %v10068_v20  ;;  %v10079_v32 = vsub.s32 6, %v9657_v52 }
 0xe54   :  { %8817 = vmatprep.subr.bf16.mxu0 %v9552_v35 }
 0xe55   :  { %8814 = vmatprep.subr.bf16.mxu1 %v8813_v5 }
 0xe57   :  { %8816 = vmatpush3.bf16.msra.mxu1 %v8813_v5 }
 0xe58   :  { %8821 = vmatprep.subr.bf16.mxu1 %v9552_v35 }
 0xf21   :  { %v1875_v10 = vpop.f32.mrb[14].mxu0 }
 0xf22   :  { %1973 = vrot.lane.b32.xlu1 %v1875_v10, %s9553_s30  ;;  %v8279_v37 = vpop.f32.mrb[15].mxu0  ;;  %v10084_v10 = vld [vmem:[%s10962_s1 + $0x8] sm:$0xff] }
 0xf23   :  { %v2119_v37 = vrot.slane %v10084_v10, %v9754_v38  ;;  %v2125_v41 = vrot.slane %v10084_v10, %v10079_v32 }
 0xf25   :  { %v1951_v39 = vpop.f32.mrb[26].mxu1 }
 0xf26   :  { %1975 = vrot.lane.b32.xlu0 %v1951_v39, %s9553_s30  ;;  %v8284_v40 = vpop.f32.mrb[27].mxu1 }
 0xf94   :  { %v1974_v50 = vpop.permute.xlu1 %1973 }
 0xf95   :  { %v1985_v53 = vsel %vm1984_vm5, %v1982_v48, %v1974_v50 }
 0xf96   :  { %8293 = vmatprep.mubr.msk.f32.mxu0 %vm294_vm1, %v1985_v53 }
 0xf98   :  { %v1976_v56 = vpop.permute.xlu0 %1975 }
 0xf99   :  { %v1986_v51 = vsel %vm1984_vm5, %v1983_v47, %v1976_v56 }
 0xf9a   :  { %8294 = vmatmul.mubr.msk.f32.vlgmr.msra.gmra.mrb[16].mxu0 %vm294_vm1, %v1986_v51 }
 0xf9b   :  { %8820 = vmatpush3.bf16.xpose.msk.msra.mxu0 %vm10018_vm6, %v8818_v13  ;;  %8311 = vmatprep.mubr.msk.f32.mxu0 %vm9539_vm2, %v9538_v42 }
 0xf9c   :  { %8825 = vmatprep.subr.bf16.mxu0 %v9552_v35 }
0x106d   :  { %v8295_v8 = vpop.f32.mrb[16].mxu0 }
0x106e   :  { %v2085_v9 = vadd.f32 %v8295_v8, %v1990_v58  ;;  %v2079_v7 = vpop.f32.mrb[17].mxu0 }
0x106f   :  { %v2080_v60 = vadd.f32 %v2079_v7, %v1990_v58 }
0x1070   :  { %v10040_v61 = vadd.f32 %v2085_v9, %v9735_v24 }
0x1071   :  { %v10043_v13 = vadd.f32 %v2080_v60, %v9739_v26 }
0x1072   :  { %v2093_v15 = vsel %vm294_vm1, %v10040_v61, 0.0 }
0x1073   :  { %2094 = vadd.xlane.f32.xlu0 %v2093_v15  ;;  %v2090_v17 = vsel %vm294_vm1, %v10043_v13, 0.0 }
0x1074   :  { %2091 = vadd.xlane.f32.xlu1 %v2090_v17 }
0x1100   :  { %v2095_v11 = vpop.xlane.xlu0 %2094 }
0x1101   :  { %v2097_v14 = vmul.f32 0.03125, %v2095_v11  ;;  %v2092_v44 = vpop.xlane.xlu1 %2091 }
0x1102   :  { %v2096_v22 = vmul.f32 0.03125, %v2092_v44 }
0x1103   :  { %v2099_v18 = vsub.f32 %v10040_v61, %v2097_v14 }
0x1104   :  { %v2098_v24 = vsub.f32 %v10043_v13, %v2096_v22 }
0x1105   :  { %v2101_v19 = vmul.f32 %v2099_v18, %v2099_v18 }
0x1106   :  { %v2100_v45 = vmul.f32 %v2098_v24, %v2098_v24 }
0x1107   :  { %v2105_v12 = vsel %vm294_vm1, %v2101_v19, 0.0 }
0x1108   :  { %v2102_v26 = vsel %vm294_vm1, %v2100_v45, 0.0 }
0x1109   :  { %2103 = vadd.xlane.f32.xlu0 %v2102_v26 }
0x110d   :  { %2106 = vadd.xlane.f32.xlu0 %v2105_v12 }
0x1196   :  { %v2104_v28 = vpop.xlane.xlu0 %2103 }
0x1197   :  { %v2108_v6 = vmul.f32 0.03125, %v2104_v28 }
0x1199   :  { %v2110_v62 = vadd.f32 1e-05, %v2108_v6 }
0x119a   :  { %v2107_v29 = vpop.xlane.xlu0 %2106 }
0x119b   :  { %9371 = vrsqrt.f32 %v2110_v62  ;;  %v2109_v30 = vmul.f32 0.03125, %v2107_v29 }
0x119d   :  { %v2111_v31 = vadd.f32 1e-05, %v2109_v30 }
0x119f   :  { %9373 = vrsqrt.f32 %v2111_v31 }
0x11a5   :  { %v9372_v39 = vpop.eup %9371 }
0x11a6   :  { %v2114_v40 = vmul.f32 %v9372_v39, %v2098_v24 }
0x11a8   :  { %v2120_v43 = vmul.f32 %v2119_v37, %v2114_v40 }
0x11a9   :  { %v9374_v16 = vpop.eup %9373 }
0x11aa   :  { %v2115_v46 = vmul.f32 %v9374_v16, %v2099_v18  ;;  %v2126_v48 = vadd.f32 %v2125_v41, %v2120_v43 }
0x11ac   :  { %v2121_v49 = vmul.f32 %v2119_v37, %v2115_v46  ;;  %8304 = vmatprep.mubr.msk.f32.mxu1 %vm294_vm1, %v2126_v48 }
0x11ae   :  { %v2127_v50 = vadd.f32 %v2125_v41, %v2121_v49 }
0x11b0   :  { %8305 = vmatmul.mubr.msk.f32.vlgmr.msra.gmra.mrb[28].mxu1 %vm294_vm1, %v2127_v50 }
0x11b1   :  { %8824 = vmatpush3.bf16.xpose.msk.msra.mxu1 %vm10018_vm6, %v8822_v3  ;;  %8318 = vmatprep.mubr.msk.f32.mxu1 %vm9539_vm2, %v9538_v42 }
0x11b2   :  { %8828 = vmatprep.subr.bf16.mxu1 %v9552_v35 }
0x1283   :  { %v10100_v53 = vpop.f32.mrb[28].mxu1 }
0x1284   :  { %v10102_v55 = vpop.f32.mrb[29].mxu1  ;;  %8319 = vmatmul.mubr.msk.f32.vlgmr.msra.gmra.mrb[30].mxu1 %vm631_vm3, %v10100_v53 }
0x1285   :  { %8312 = vmatmul.mubr.msk.f32.vlgmr.msra.gmra.mrb[18].mxu0 %vm631_vm3, %v10102_v55  ;;  %8332 = vmatprep.mubr.msk.f32.mxu1 %vm9539_vm2, %v9538_v42 }
0x1286   :  { %8325 = vmatprep.mubr.msk.f32.mxu0 %vm9539_vm2, %v9538_v42 }
0x1357   :  { %v2363_v1 = vpop.f32.mrb[30].mxu1 }
0x1358   :  { %v2368_v2 = vmul.f32 0.35355338, %v2363_v1  ;;  %v2284_v3 = vpop.f32.mrb[18].mxu0  ;;  %v8320_v47 = vpop.f32.mrb[31].mxu1 }
0x1359   :  { %v2367_v56 = vmul.f32 0.35355338, %v2284_v3  ;;  %v8313_v51 = vpop.f32.mrb[19].mxu0 }
0x135a   :  { %v2372_v58 = vsel %vm1981_vm4, %v2368_v2, -inf }
0x135b   :  { %2373 = vmax.xlane.f32.xlu0 %v2372_v58  ;;  %v2369_v8 = vsel %vm1981_vm4, %v2367_v56, -inf }
0x135c   :  { %2370 = vmax.xlane.f32.xlu1 %v2369_v8 }
0x136d   :  { %9096 = vrot.lane.b32.xlu1 %v9841_v0, %s9537_s25 }
0x1371   :  { %9106 = vrot.lane.b32.xlu1 %v9841_v0, %s9542_s18 }
0x1375   :  { %9111 = vrot.lane.b32.xlu1 %v9851_v4, %s9542_s18 }
0x13e8   :  { %v2374_v9 = vpop.xlane.xlu0 %2373 }
0x13e9   :  { %v2376_v7 = vsub.f32 %v2368_v2, %v2374_v9  ;;  %v2371_v60 = vpop.xlane.xlu1 %2370 }
0x13ea   :  { %v2375_v15 = vsub.f32 %v2367_v56, %v2371_v60 }
0x13eb   :  { %v2379_v17 = vmul.f32 1.442695, %v2376_v7 }
0x13ec   :  { %v2377_v11 = vmul.f32 1.442695, %v2375_v15 }
0x13ed   :  { %9375 = vpow2.f32 %v2379_v17  ;;  %v9097_v14 = vpop.permute.xlu1 %9096 }
0x13ee   :  { %9377 = vpow2.f32 %v2377_v11  ;;  %v9099_v44 = vunpack.i.h.bf16 %v9097_v14  ;;  %v9098_v22 = vunpack.i.l.bf16 %v9097_v14 }
0x13f0   :  { %v8826_v18 = vpack.c.bf16 %v9099_v44, %v9098_v22 }
0x13f1   :  { %v9107_v12 = vpop.permute.xlu1 %9106 }
0x13f2   :  { %8827 = vmatpush3.bf16.msra.mxu0 %v8826_v18  ;;  %v9109_v31 = vunpack.i.h.bf16 %v9107_v12  ;;  %v9108_v37 = vunpack.i.l.bf16 %v9107_v12 }
0x13f3   :  { %8831 = vmatprep.subr.bf16.mxu0 %v9552_v35 }
0x13f4   :  { %v8832_v48 = vpack.c.bf16 %v9109_v31, %v9108_v37 }
0x13f5   :  { %v9112_v27 = vpop.permute.xlu1 %9111 }
0x13f6   :  { %v9114_v41 = vunpack.i.h.bf16 %v9112_v27  ;;  %v9113_v43 = vunpack.i.l.bf16 %v9112_v27 }
0x13f7   :  { %v9376_v24 = vpop.eup %9375 }
0x13f8   :  { %v9378_v45 = vpop.eup %9377  ;;  %v2384_v26 = vsel %vm1981_vm4, %v9376_v24, 0.0  ;;  %v8836_v49 = vpack.c.bf16 %v9114_v41, %v9113_v43 }
0x13f9   :  { %2385 = vadd.xlane.f32.xlu0 %v2384_v26  ;;  %v2381_v19 = vsel %vm1981_vm4, %v9378_v45, 0.0 }
0x13fa   :  { %2382 = vadd.xlane.f32.xlu1 %v2381_v19 }
0x140b   :  { %2549 = vrot.lane.b32.xlu1 %v10102_v55, %s9542_s18 }
0x140f   :  { %9101 = vrot.lane.b32.xlu0 %v9851_v4, %s9537_s25 }
0x1413   :  { %2631 = vrot.lane.b32.xlu0 %v10100_v53, %s9542_s18 }
0x1486   :  { %v2386_v5 = vpop.xlane.xlu0 %2385 }
0x1487   :  { %9379 = vrcp.f32 %v2386_v5  ;;  %v2383_v28 = vpop.xlane.xlu1 %2382 }
0x1488   :  { %9381 = vrcp.f32 %v2383_v28 }
0x148a   :  { %v9102_v6 = vpop.permute.xlu0 %9101 }
0x148b   :  { %v9104_v62 = vunpack.i.h.bf16 %v9102_v6  ;;  %v9103_v29 = vunpack.i.l.bf16 %v9102_v6  ;;  %v2550_v50 = vpop.permute.xlu1 %2549 }
0x148d   :  { %v8829_v30 = vpack.c.bf16 %v9104_v62, %v9103_v29 }
0x148e   :  { %v2632_v1 = vpop.permute.xlu0 %2631 }
0x148f   :  { %8830 = vmatpush3.bf16.msra.mxu1 %v8829_v30 }
0x1490   :  { %8835 = vmatprep.subr.bf16.mxu1 %v9552_v35 }
0x1491   :  { %v9380_v39 = vpop.eup %9379 }
0x1492   :  { %v9382_v40 = vpop.eup %9381  ;;  %v2390_v16 = vmul.f32 %v9380_v39, %v9376_v24 }
0x1493   :  { %v2388_v46 = vmul.f32 %v9382_v40, %v9378_v45 }
0x1494   :  { %8333 = vmatmul.mubr.msk.f32.vlgmr.msra.gmra.mrb[32].mxu1 %vm1981_vm4, %v2390_v16 }
0x1495   :  { %8326 = vmatmul.mubr.msk.f32.vlgmr.msra.gmra.mrb[20].mxu0 %vm1981_vm4, %v2388_v46  ;;  %8346 = vmatprep.mubr.msk.f32.mxu1 %vm9539_vm2, %v9538_v42 }
0x1496   :  { %8834 = vmatpush3.bf16.xpose.msk.msra.mxu0 %vm10018_vm6, %v8832_v48  ;;  %8339 = vmatprep.mubr.msk.f32.mxu0 %vm9539_vm2, %v9538_v42 }
0x1497   :  { %8839 = vmatprep.subr.bf16.mxu0 %v9552_v35 }
0x1498   :  { %8838 = vmatpush3.bf16.xpose.msk.msra.mxu1 %vm10018_vm6, %v8836_v49 }
0x1499   :  { %8842 = vmatprep.subr.bf16.mxu1 %v9552_v35 }
0x149d   :  { %8340 = vmatmul.mubr.msk.f32.vlgmr.msra.gmra.mrb[22].mxu0 %vm631_vm3, %v2550_v50 }
0x149e   :  { %8353 = vmatprep.mubr.msk.f32.mxu0 %vm9539_vm2, %v9538_v42 }
0x149f   :  { %8347 = vmatmul.mubr.msk.f32.vlgmr.msra.gmra.mrb[34].mxu1 %vm631_vm3, %v2632_v1 }
0x14a0   :  { %8360 = vmatprep.mubr.msk.f32.mxu1 %vm9539_vm2, %v9538_v42 }
0x1567   :  { %v10148_v2 = vpop.f32.mrb[32].mxu1 }
0x1568   :  { %v10150_v3 = vpop.f32.mrb[20].mxu0  ;;  %v8334_v47 = vpop.f32.mrb[33].mxu1 }
0x1569   :  { %v8327_v56 = vpop.f32.mrb[21].mxu0 }
0x1570   :  { %v2627_v51 = vpop.f32.mrb[22].mxu0 }
0x1571   :  { %v2713_v58 = vmul.f32 0.35355338, %v2627_v51  ;;  %v8341_v8 = vpop.f32.mrb[23].mxu0 }
0x1572   :  { %v2709_v9 = vpop.f32.mrb[34].mxu1 }
0x1573   :  { %v2714_v7 = vmul.f32 0.35355338, %v2709_v9  ;;  %v8348_v60 = vpop.f32.mrb[35].mxu1  ;;  %v2715_v15 = vsel %vm1981_vm4, %v2713_v58, -inf }
0x1574   :  { %2716 = vmax.xlane.f32.xlu1 %v2715_v15 }
0x1575   :  { %v2718_v17 = vsel %vm1981_vm4, %v2714_v7, -inf }
0x1576   :  { %2719 = vmax.xlane.f32.xlu0 %v2718_v17 }
0x1585   :  { %9116 = vrot.lane.b32.xlu1 %v9841_v0, %s9541_s17 }
0x1589   :  { %9126 = vrot.lane.b32.xlu1 %v9841_v0, %s9545_s21 }
0x158d   :  { %9131 = vrot.lane.b32.xlu1 %v9851_v4, %s9545_s21 }
0x1591   :  { %2895 = vrot.lane.b32.xlu1 %v10102_v55, %s9545_s21 }
0x1601   :  { %v2717_v11 = vpop.xlane.xlu1 %2716 }
0x1602   :  { %v2721_v14 = vsub.f32 %v2713_v58, %v2717_v11 }
0x1603   :  { %v2720_v44 = vpop.xlane.xlu0 %2719 }
0x1604   :  { %v2722_v22 = vsub.f32 %v2714_v7, %v2720_v44  ;;  %v2723_v24 = vmul.f32 1.442695, %v2721_v14 }
0x1605   :  { %v9117_v18 = vpop.permute.xlu1 %9116 }
0x1606   :  { %v2725_v45 = vmul.f32 1.442695, %v2722_v22  ;;  %v9119_v26 = vunpack.i.h.bf16 %v9117_v18  ;;  %v9118_v19 = vunpack.i.l.bf16 %v9117_v18 }
0x1608   :  { %9383 = vpow2.f32 %v2725_v45  ;;  %v8840_v12 = vpack.c.bf16 %v9119_v26, %v9118_v19 }
0x1609   :  { %9385 = vpow2.f32 %v2723_v24  ;;  %v9127_v30 = vpop.permute.xlu1 %9126 }
0x160a   :  { %8841 = vmatpush3.bf16.msra.mxu0 %v8840_v12  ;;  %v9129_v43 = vunpack.i.h.bf16 %v9127_v30  ;;  %v9128_v16 = vunpack.i.l.bf16 %v9127_v30 }
0x160b   :  { %8845 = vmatprep.subr.bf16.mxu0 %v9552_v35 }
0x160c   :  { %v8846_v56 = vpack.c.bf16 %v9129_v43, %v9128_v16 }
0x160d   :  { %v9132_v46 = vpop.permute.xlu1 %9131 }
0x160e   :  { %v9134_v50 = vunpack.i.h.bf16 %v9132_v46  ;;  %v9133_v1 = vunpack.i.l.bf16 %v9132_v46 }
0x1610   :  { %v8850_v51 = vpack.c.bf16 %v9134_v50, %v9133_v1 }
0x1611   :  { %v2896_v58 = vpop.permute.xlu1 %2895 }
0x1612   :  { %v9384_v27 = vpop.eup %9383 }
0x1613   :  { %v2730_v5 = vsel %vm1981_vm4, %v9384_v27, 0.0  ;;  %v9386_v28 = vpop.eup %9385 }
0x1614   :  { %2731 = vadd.xlane.f32.xlu0 %v2730_v5  ;;  %v2727_v6 = vsel %vm1981_vm4, %v9386_v28, 0.0 }
0x1618   :  { %2728 = vadd.xlane.f32.xlu0 %v2727_v6 }
0x162e   :  { %9121 = vrot.lane.b32.xlu0 %v9851_v4, %s9541_s17 }
0x1632   :  { %2977 = vrot.lane.b32.xlu0 %v10100_v53, %s9545_s21 }
0x16a1   :  { %v2732_v62 = vpop.xlane.xlu0 %2731 }
0x16a2   :  { %9387 = vrcp.f32 %v2732_v62 }
0x16a5   :  { %v2729_v29 = vpop.xlane.xlu0 %2728 }
0x16a6   :  { %9389 = vrcp.f32 %v2729_v29 }
0x16a9   :  { %v9122_v31 = vpop.permute.xlu0 %9121 }
0x16aa   :  { %v9124_v37 = vunpack.i.h.bf16 %v9122_v31  ;;  %v9123_v39 = vunpack.i.l.bf16 %v9122_v31 }
0x16ac   :  { %v9388_v40 = vpop.eup %9387  ;;  %v8843_v41 = vpack.c.bf16 %v9124_v37, %v9123_v39 }
0x16ad   :  { %v2736_v48 = vmul.f32 %v9388_v40, %v9384_v27  ;;  %v2978_v8 = vpop.permute.xlu0 %2977 }
0x16ae   :  { %8844 = vmatpush3.bf16.msra.mxu1 %v8843_v41 }
0x16af   :  { %8849 = vmatprep.subr.bf16.mxu1 %v9552_v35 }
0x16b0   :  { %v9390_v49 = vpop.eup %9389 }
0x16b1   :  { %8361 = vmatmul.mubr.msk.f32.vlgmr.msra.gmra.mrb[36].mxu1 %vm1981_vm4, %v2736_v48  ;;  %v2734_v47 = vmul.f32 %v9390_v49, %v9386_v28 }
0x16b2   :  { %8374 = vmatprep.mubr.msk.f32.mxu1 %vm9539_vm2, %v9538_v42 }
0x16b3   :  { %8354 = vmatmul.mubr.msk.f32.vlgmr.msra.gmra.mrb[24].mxu0 %vm1981_vm4, %v2734_v47 }
0x16b4   :  { %8848 = vmatpush3.bf16.xpose.msk.msra.mxu0 %vm10018_vm6, %v8846_v56  ;;  %8367 = vmatprep.mubr.msk.f32.mxu0 %vm9539_vm2, %v9538_v42 }
0x16b5   :  { %8853 = vmatprep.subr.bf16.mxu0 %v9552_v35 }
0x16b7   :  { %8852 = vmatpush3.bf16.xpose.msk.msra.mxu1 %vm10018_vm6, %v8850_v51 }
0x16b8   :  { %8856 = vmatprep.subr.bf16.mxu1 %v9552_v35 }
0x16bb   :  { %8368 = vmatmul.mubr.msk.f32.vlgmr.msra.gmra.mrb[26].mxu0 %vm631_vm3, %v2896_v58 }
0x16bc   :  { %8381 = vmatprep.mubr.msk.f32.mxu0 %vm9539_vm2, %v9538_v42 }
0x16be   :  { %8375 = vmatmul.mubr.msk.f32.vlgmr.msra.gmra.mrb[38].mxu1 %vm631_vm3, %v2978_v8 }
0x16bf   :  { %8388 = vmatprep.mubr.msk.f32.mxu1 %vm9539_vm2, %v9538_v42 }
0x1784   :  { %v10188_v9 = vpop.f32.mrb[36].mxu1 }
0x1785   :  { %v8362_v7 = vpop.f32.mrb[37].mxu1 }
0x1786   :  { %v10190_v60 = vpop.f32.mrb[24].mxu0 }
0x1787   :  { %v8355_v15 = vpop.f32.mrb[25].mxu0 }
0x178e   :  { %v2973_v17 = vpop.f32.mrb[26].mxu0 }
0x178f   :  { %v3059_v11 = vmul.f32 0.35355338, %v2973_v17  ;;  %v8369_v14 = vpop.f32.mrb[27].mxu0 }
0x1791   :  { %v3055_v44 = vpop.f32.mrb[38].mxu1  ;;  %v3061_v22 = vsel %vm1981_vm4, %v3059_v11, -inf }
0x1792   :  { %v3060_v18 = vmul.f32 0.35355338, %v3055_v44  ;;  %3062 = vmax.xlane.f32.xlu1 %v3061_v22  ;;  %v8376_v24 = vpop.f32.mrb[39].mxu1 }
0x1794   :  { %v3064_v45 = vsel %vm1981_vm4, %v3060_v18, -inf }
0x1795   :  { %3065 = vmax.xlane.f32.xlu0 %v3064_v45 }
0x17a3   :  { %9136 = vrot.lane.b32.xlu1 %v9841_v0, %s9544_s20 }
0x17a7   :  { %9146 = vrot.lane.b32.xlu1 %v9841_v0, %s9548_s26 }
0x17ab   :  { %9151 = vrot.lane.b32.xlu1 %v9851_v4, %s9548_s26 }
0x17af   :  { %3241 = vrot.lane.b32.xlu1 %v10102_v55, %s9548_s26 }
0x181f   :  { %v3063_v26 = vpop.xlane.xlu1 %3062 }
0x1820   :  { %v3067_v19 = vsub.f32 %v3059_v11, %v3063_v26 }
0x1822   :  { %v3066_v12 = vpop.xlane.xlu0 %3065  ;;  %v3069_v62 = vmul.f32 1.442695, %v3067_v19 }
0x1823   :  { %v3068_v27 = vsub.f32 %v3060_v18, %v3066_v12  ;;  %v9137_v5 = vpop.permute.xlu1 %9136 }
0x1824   :  { %v9139_v28 = vunpack.i.h.bf16 %v9137_v5  ;;  %v9138_v6 = vunpack.i.l.bf16 %v9137_v5 }
0x1825   :  { %v3071_v29 = vmul.f32 1.442695, %v3068_v27 }
0x1826   :  { %v8854_v30 = vpack.c.bf16 %v9139_v28, %v9138_v6 }
0x1827   :  { %9391 = vpow2.f32 %v3071_v29  ;;  %v9147_v43 = vpop.permute.xlu1 %9146  ;;  %v9170_v29 = vpack.i.bf16 %v10073_v21, %v10068_v20 }
0x1828   :  { %8855 = vmatpush3.bf16.msra.mxu0 %v8854_v30  ;;  %9393 = vpow2.f32 %v3069_v62  ;;  %v9149_v1 = vunpack.i.h.bf16 %v9147_v43  ;;  %v9148_v47 = vunpack.i.l.bf16 %v9147_v43  ;;  %v9165_v62 = vpack.i.bf16 %v10061_v25, %v10056_v23 }
0x1829   :  { %8859 = vmatprep.subr.bf16.mxu0 %v9552_v35 }
0x182a   :  { %v8860_v15 = vpack.c.bf16 %v9149_v1, %v9148_v47 }
0x182b   :  { %v9152_v56 = vpop.permute.xlu1 %9151 }
0x182c   :  { %v9154_v8 = vunpack.i.h.bf16 %v9152_v56 }
0x182f   :  { %v3242_v11 = vpop.permute.xlu1 %3241 }
0x1831   :  { %v9392_v31 = vpop.eup %9391 }
0x1832   :  { %v3076_v37 = vsel %vm1981_vm4, %v9392_v31, 0.0  ;;  %v9394_v39 = vpop.eup %9393 }
0x1833   :  { %3077 = vadd.xlane.f32.xlu0 %v3076_v37  ;;  %v3073_v55 = vsel %vm1981_vm4, %v9394_v39, 0.0 }
0x1837   :  { %3074 = vadd.xlane.f32.xlu0 %v3073_v55 }
0x184d   :  { %9141 = vrot.lane.b32.xlu0 %v9851_v4, %s9544_s20 }
0x1851   :  { %3323 = vrot.lane.b32.xlu0 %v10100_v53, %s9548_s26  ;;  %v9153_v53 = vunpack.i.l.bf16 %v9152_v56 }
0x1853   :  { %v8864_v17 = vpack.c.bf16 %v9154_v8, %v9153_v53 }
0x18c0   :  { %v3078_v40 = vpop.xlane.xlu0 %3077 }
0x18c1   :  { %9395 = vrcp.f32 %v3078_v40 }
0x18c4   :  { %v3075_v41 = vpop.xlane.xlu0 %3074 }
0x18c5   :  { %9397 = vrcp.f32 %v3075_v41 }
0x18c8   :  { %v9142_v16 = vpop.permute.xlu0 %9141 }
0x18c9   :  { %v9144_v46 = vunpack.i.h.bf16 %v9142_v16  ;;  %v9143_v48 = vunpack.i.l.bf16 %v9142_v16 }
0x18cb   :  { %v9396_v49 = vpop.eup %9395  ;;  %v8857_v50 = vpack.c.bf16 %v9144_v46, %v9143_v48 }
0x18cc   :  { %v3082_v51 = vmul.f32 %v9396_v49, %v9392_v31  ;;  %v3324_v14 = vpop.permute.xlu0 %3323 }
0x18cd   :  { %8858 = vmatpush3.bf16.msra.mxu1 %v8857_v50 }
0x18ce   :  { %8863 = vmatprep.subr.bf16.mxu1 %v9552_v35 }
0x18cf   :  { %v9398_v58 = vpop.eup %9397 }
0x18d0   :  { %8389 = vmatmul.mubr.msk.f32.vlgmr.msra.gmra.mrb[40].mxu1 %vm1981_vm4, %v3082_v51  ;;  %v3080_v7 = vmul.f32 %v9398_v58, %v9394_v39 }
0x18d1   :  { %8402 = vmatprep.mubr.msk.f32.mxu1 %vm9539_vm2, %v9538_v42 }
0x18d2   :  { %8382 = vmatmul.mubr.msk.f32.vlgmr.msra.gmra.mrb[28].mxu0 %vm1981_vm4, %v3080_v7 }
0x18d3   :  { %8862 = vmatpush3.bf16.xpose.msk.msra.mxu0 %vm10018_vm6, %v8860_v15  ;;  %8395 = vmatprep.mubr.msk.f32.mxu0 %vm9539_vm2, %v9538_v42 }
0x18d4   :  { %8867 = vmatprep.subr.bf16.mxu0 %v9552_v35 }
0x18d6   :  { %8866 = vmatpush3.bf16.xpose.msk.msra.mxu1 %vm10018_vm6, %v8864_v17 }
0x18d7   :  { %8870 = vmatprep.subr.bf16.mxu1 %v9552_v35 }
0x18da   :  { %8396 = vmatmul.mubr.msk.f32.vlgmr.msra.gmra.mrb[30].mxu0 %vm631_vm3, %v3242_v11 }
0x18db   :  { %8409 = vmatprep.mubr.msk.f32.mxu0 %vm9539_vm2, %v9538_v42 }
0x18dd   :  { %8403 = vmatmul.mubr.msk.f32.vlgmr.msra.gmra.mrb[42].mxu1 %vm631_vm3, %v3324_v14 }
0x18de   :  { %8416 = vmatprep.mubr.msk.f32.mxu1 %vm9539_vm2, %v9538_v42 }
0x19a3   :  { %v3237_v44 = vpop.f32.mrb[40].mxu1 }
0x19a4   :  { %v8390_v22 = vpop.f32.mrb[41].mxu1 }
0x19a5   :  { %v3158_v18 = vpop.f32.mrb[28].mxu0 }
0x19a6   :  { %v8383_v24 = vpop.f32.mrb[29].mxu0 }
0x19ad   :  { %v3319_v45 = vpop.f32.mrb[30].mxu0 }
0x19ae   :  { %v3405_v26 = vmul.f32 0.35355338, %v3319_v45  ;;  %v8397_v19 = vpop.f32.mrb[31].mxu0 }
0x19b0   :  { %v3401_v12 = vpop.f32.mrb[42].mxu1  ;;  %v3407_v27 = vsel %vm1981_vm4, %v3405_v26, -inf }
0x19b1   :  { %v3406_v5 = vmul.f32 0.35355338, %v3401_v12  ;;  %3408 = vmax.xlane.f32.xlu1 %v3407_v27  ;;  %v8404_v28 = vpop.f32.mrb[43].mxu1 }
0x19b3   :  { %v3410_v6 = vsel %vm1981_vm4, %v3406_v5, -inf }
0x19b4   :  { %3411 = vmax.xlane.f32.xlu0 %v3410_v6 }
0x19c2   :  { %9156 = vrot.lane.b32.xlu1 %v9841_v0, %s9547_s23 }
0x19c6   :  { %9166 = vrot.lane.b32.xlu1 %v9165_v62, %s9537_s25 }
0x19ca   :  { %9171 = vrot.lane.b32.xlu1 %v9170_v29, %s9537_s25 }
0x19ce   :  { %3589 = vrot.lane.b32.xlu1 %v10190_v60, %s9550_s28 }
0x19d2   :  { %3597 = vrot.lane.b32.xlu1 %v3158_v18, %s9551_s29 }
0x1a3e   :  { %v3409_v30 = vpop.xlane.xlu1 %3408 }
0x1a3f   :  { %v3413_v31 = vsub.f32 %v3405_v26, %v3409_v30 }
0x1a41   :  { %v3412_v37 = vpop.xlane.xlu0 %3411  ;;  %v3415_v43 = vmul.f32 1.442695, %v3413_v31 }
0x1a42   :  { %v3414_v39 = vsub.f32 %v3406_v5, %v3412_v37  ;;  %v9157_v55 = vpop.permute.xlu1 %9156 }
0x1a43   :  { %v9159_v40 = vunpack.i.h.bf16 %v9157_v55  ;;  %v9158_v41 = vunpack.i.l.bf16 %v9157_v55 }
0x1a44   :  { %v3417_v16 = vmul.f32 1.442695, %v3414_v39 }
0x1a45   :  { %v8868_v46 = vpack.c.bf16 %v9159_v40, %v9158_v41 }
0x1a46   :  { %9399 = vpow2.f32 %v3417_v16 }
0x1a47   :  { %8869 = vmatpush3.bf16.msra.mxu0 %v8868_v46  ;;  %9401 = vpow2.f32 %v3415_v43 }
0x1a50   :  { %v9400_v48 = vpop.eup %9399 }
0x1a51   :  { %v3422_v49 = vsel %vm1981_vm4, %v9400_v48, 0.0  ;;  %v9402_v50 = vpop.eup %9401 }
0x1a52   :  { %3423 = vadd.xlane.f32.xlu0 %v3422_v49  ;;  %v3419_v60 = vsel %vm1981_vm4, %v9402_v50, 0.0 }
0x1a56   :  { %3420 = vadd.xlane.f32.xlu0 %v3419_v60 }
0x1a6c   :  { %9161 = vrot.lane.b32.xlu0 %v9851_v4, %s9547_s23 }
0x1a70   :  { %3591 = vrot.lane.b32.xlu0 %v10188_v9, %s9550_s28  ;;  %v9167_v9 = vpop.permute.xlu1 %9166 }
0x1a71   :  { %v9169_v14 = vunpack.i.h.bf16 %v9167_v9 }
0x1a74   :  { %3599 = vrot.lane.b32.xlu0 %v3237_v44, %s9551_s29  ;;  %v9172_v11 = vpop.permute.xlu1 %9171  ;;  %v9168_v44 = vunpack.i.l.bf16 %v9167_v9 }
0x1a75   :  { %v9174_v22 = vunpack.i.h.bf16 %v9172_v11  ;;  %v9173_v18 = vunpack.i.l.bf16 %v9172_v11 }
0x1a76   :  { %v8873_v24 = vpack.c.bf16 %v9169_v14, %v9168_v44 }
0x1a77   :  { %v8877_v45 = vpack.c.bf16 %v9174_v22, %v9173_v18 }
0x1a78   :  { %8874 = vmatprep.subr.bf16.mxu0 %v8873_v24  ;;  %v3590_v28 = vpop.permute.xlu1 %3589 }
0x1a79   :  { %v3611_v29 = vsel %vm631_vm3, %v10150_v3, %v3590_v28  ;;  %v3620_v3 = vrot.slane %v10035_v54, %v9694_v33 }
0x1a7c   :  { %v3598_v62 = vpop.permute.xlu1 %3597 }
0x1a7d   :  { %v3613_v31 = vsel %vm1981_vm4, %v3611_v29, %v3598_v62 }
0x1adf   :  { %v3424_v1 = vpop.xlane.xlu0 %3423 }
0x1ae0   :  { %9403 = vrcp.f32 %v3424_v1  ;;  %v499_v1 = vld [vmem:[%s10964_s3 + $0x10] sm:$0xff] }
0x1ae3   :  { %v3421_v47 = vpop.xlane.xlu0 %3420 }
0x1ae4   :  { %9405 = vrcp.f32 %v3421_v47  ;;  %v9175_v47 = vpack.i.bf16 %v499_v1, %v10056_v23 }
0x1ae7   :  { %v9162_v56 = vpop.permute.xlu0 %9161 }
0x1ae8   :  { %v9164_v51 = vunpack.i.h.bf16 %v9162_v56  ;;  %v9163_v58 = vunpack.i.l.bf16 %v9162_v56  ;;  %v508_v56 = vld [vmem:[%s10964_s3 + $0x58] sm:$0xff] }
0x1aea   :  { %v9404_v8 = vpop.eup %9403  ;;  %v8871_v53 = vpack.c.bf16 %v9164_v51, %v9163_v58  ;;  %v9190_v51 = vpack.i.bf16 %v508_v56, %v10073_v21  ;;  %v502_v21 = vld [vmem:[%s10964_s3 + $0x28] sm:$0xff] }
0x1aeb   :  { %v3428_v7 = vmul.f32 %v9404_v8, %v9400_v48  ;;  %v3592_v5 = vpop.permute.xlu0 %3591  ;;  %v9180_v14 = vpack.i.bf16 %v502_v21, %v10061_v25  ;;  %v3933_v21 = vld [vmem:[%s10965_s4 + $0x40] sm:$0xff] }
0x1aec   :  { %8872 = vmatpush3.bf16.msra.mxu1 %v8871_v53  ;;  %v3612_v37 = vsel %vm631_vm3, %v10148_v2, %v3592_v5 }
0x1aee   :  { %v9406_v15 = vpop.eup %9405 }
0x1aef   :  { %8417 = vmatmul.mubr.msk.f32.vlgmr.msra.gmra.mrb[44].mxu1 %vm1981_vm4, %v3428_v7  ;;  %v3426_v17 = vmul.f32 %v9406_v15, %v9402_v50  ;;  %v3600_v6 = vpop.permute.xlu0 %3599 }
0x1af0   :  { %v3614_v55 = vsel %vm1981_vm4, %v3612_v37, %v3600_v6 }
0x1af1   :  { %8410 = vmatmul.mubr.msk.f32.vlgmr.msra.gmra.mrb[32].mxu0 %vm1981_vm4, %v3426_v17 }
0x1af2   :  { %8876 = vmatpush3.bf16.msra.mxu0 %v8873_v24 }
0x1af3   :  { %8878 = vmatprep.subr.bf16.mxu0 %v8877_v45 }
0x1af6   :  { %8880 = vmatpush3.bf16.msra.mxu0 %v8877_v45 }
0x1bc2   :  { %v3583_v26 = vpop.f32.mrb[44].mxu1 }
0x1bc3   :  { %3607 = vrot.lane.b32.xlu0 %v3583_v26, %s9553_s30  ;;  %v8418_v19 = vpop.f32.mrb[45].mxu1 }
0x1bc4   :  { %v3504_v12 = vpop.f32.mrb[32].mxu0 }
0x1bc5   :  { %3605 = vrot.lane.b32.xlu1 %v3504_v12, %s9553_s30  ;;  %v8411_v27 = vpop.f32.mrb[33].mxu0 }
0x1c35   :  { %v3608_v30 = vpop.permute.xlu0 %3607 }
0x1c36   :  { %v3616_v41 = vsel %vm1984_vm5, %v3614_v55, %v3608_v30 }
0x1c37   :  { %v3606_v39 = vpop.permute.xlu1 %3605 }
0x1c38   :  { %v3615_v40 = vsel %vm1984_vm5, %v3613_v31, %v3606_v39 }
0x1c39   :  { %8427 = vmatprep.mubr.msk.f32.mxu0 %vm294_vm1, %v3615_v40 }
0x1c3a   :  { %8428 = vmatmul.mubr.msk.f32.vlgmr.msra.gmra.mrb[34].mxu0 %vm294_vm1, %v3616_v41 }
0x1d0d   :  { %v8429_v43 = vpop.f32.mrb[34].mxu0 }
0x1d0e   :  { %v3715_v16 = vadd.f32 %v8429_v43, %v3620_v3  ;;  %v3709_v46 = vpop.f32.mrb[35].mxu0 }
0x1d0f   :  { %v3710_v48 = vadd.f32 %v3709_v46, %v3620_v3 }
0x1d10   :  { %v10265_v2 = vadd.f32 %v3715_v16, %v10040_v61  ;;  %v505_v61 = vld [vmem:[%s10964_s3 + $0x40] sm:$0xff]  ;;  %v10303_v16 = vsub.s32 7, %v9657_v52 }
0x1d11   :  { %v10268_v49 = vadd.f32 %v3710_v48, %v10043_v13  ;;  %v9185_v13 = vpack.i.bf16 %v505_v61, %v10068_v20  ;;  %v3925_v52 = vld [vmem:[%s10965_s4] sm:$0xff] }
0x1d12   :  { %v3723_v50 = vsel %vm294_vm1, %v10265_v2, 0.0 }
0x1d13   :  { %3724 = vadd.xlane.f32.xlu0 %v3723_v50  ;;  %v3720_v60 = vsel %vm294_vm1, %v10268_v49, 0.0  ;;  %v3749_v50 = vrot.slane %v10084_v10, %v10303_v16  ;;  %v3926_v10 = vld [vmem:[%s10965_s4 + $0x8] sm:$0xff] }
0x1d14   :  { %3721 = vadd.xlane.f32.xlu1 %v3720_v60 }
0x1d25   :  { %9176 = vrot.lane.b32.xlu1 %v9175_v47, %s9540_s16  ;;  %v3755_v47 = vrot.slane %v10035_v54, %v9660_v59 }
0x1d29   :  { %9186 = vrot.lane.b32.xlu1 %v9185_v13, %s9540_s16 }
0x1d2d   :  { %9191 = vrot.lane.b32.xlu1 %v9190_v51, %s9540_s16 }
0x1da0   :  { %v3725_v58 = vpop.xlane.xlu0 %3724 }
0x1da1   :  { %v3727_v8 = vmul.f32 0.03125, %v3725_v58  ;;  %v3722_v53 = vpop.xlane.xlu1 %3721  ;;  %v8889_v58 = vpack.c.bf16 %v3926_v10, %v3925_v52 }
0x1da2   :  { %v3726_v7 = vmul.f32 0.03125, %v3722_v53  ;;  %v3928_v53 = vld [vmem:[%s10965_s4 + $0x18] sm:$0xff] }
0x1da3   :  { %v3729_v23 = vsub.f32 %v10265_v2, %v3727_v8  ;;  %8890 = vmatprep.subr.bf16.mxu0 %v8889_v58  ;;  %v3927_v8 = vld [vmem:[%s10965_s4 + $0x10] sm:$0xff] }
0x1da4   :  { %v3728_v15 = vsub.f32 %v10268_v49, %v3726_v7  ;;  %8892 = vmatpush3.bf16.msra.mxu0 %v8889_v58  ;;  %v8893_v7 = vpack.c.bf16 %v3928_v53, %v3927_v8 }
0x1da5   :  { %v3731_v17 = vmul.f32 %v3729_v23, %v3729_v23  ;;  %v9177_v44 = vpop.permute.xlu1 %9176 }
0x1da6   :  { %v3730_v9 = vmul.f32 %v3728_v15, %v3728_v15  ;;  %v9179_v12 = vunpack.i.h.bf16 %v9177_v44  ;;  %v9178_v27 = vunpack.i.l.bf16 %v9177_v44  ;;  %8894 = vmatprep.subr.bf16.mxu0 %v8893_v7 }
0x1da7   :  { %v3735_v20 = vsel %vm294_vm1, %v3731_v17, 0.0 }
0x1da8   :  { %3736 = vadd.xlane.f32.xlu0 %v3735_v20  ;;  %v3732_v11 = vsel %vm294_vm1, %v3730_v9, 0.0  ;;  %v3782_v25 = vsel %vm31_vm0, %v9178_v27, %v9179_v12  ;;  %8896 = vmatpush3.bf16.msra.mxu0 %v8893_v7  ;;  %v3931_v20 = vld [vmem:[%s10965_s4 + $0x30] sm:$0xff]  ;;  %v3932_v9 = vld [vmem:[%s10965_s4 + $0x38] sm:$0xff] }
0x1da9   :  { %v9187_v22 = vpop.permute.xlu1 %9186  ;;  %v3939_v12 = vld [vmem:[%s10965_s4 + $0x70] sm:$0xff]  ;;  %v3940_v27 = vld [vmem:[%s10965_s4 + $0x78] sm:$0xff] }
0x1daa   :  { %v9189_v5 = vunpack.i.h.bf16 %v9187_v22  ;;  %v9188_v28 = vunpack.i.l.bf16 %v9187_v22  ;;  %v3935_v22 = vld [vmem:[%s10965_s4 + $0x50] sm:$0xff] }
0x1dac   :  { %3733 = vadd.xlane.f32.xlu0 %v3732_v11  ;;  %v3784_v37 = vsel %vm31_vm0, %v9188_v28, %v9189_v5  ;;  %v8901_v11 = vpack.c.bf16 %v3932_v9, %v3931_v20  ;;  %v8917_v5 = vpack.c.bf16 %v3940_v27, %v3939_v12  ;;  %v3761_v28 = vrot.slane %v10035_v54, %v9748_v36 }
0x1dad   :  { %v9192_v45 = vpop.permute.xlu1 %9191 }
0x1dae   :  { %v9194_v62 = vunpack.i.h.bf16 %v9192_v45  ;;  %v9193_v29 = vunpack.i.l.bf16 %v9192_v45  ;;  %v3937_v45 = vld [vmem:[%s10965_s4 + $0x60] sm:$0xff] }
0x1db0   :  { %v3785_v40 = vsel %vm31_vm0, %v9193_v29, %v9194_v62 }
0x1db1   :  { %v8885_v43 = vpack.c.bf16 %v3785_v40, %v3784_v37 }
0x1dc2   :  { %9181 = vrot.lane.b32.xlu0 %v9180_v14, %s9540_s16  ;;  %v3934_v14 = vld [vmem:[%s10965_s4 + $0x48] sm:$0xff] }
0x1dc3   :  { %v8905_v44 = vpack.c.bf16 %v3934_v14, %v3933_v21 }
0x1e35   :  { %v3737_v18 = vpop.xlane.xlu0 %3736 }
0x1e36   :  { %v3739_v24 = vmul.f32 0.03125, %v3737_v18  ;;  %v3936_v18 = vld [vmem:[%s10965_s4 + $0x58] sm:$0xff] }
0x1e38   :  { %v3741_v26 = vadd.f32 1e-05, %v3739_v24  ;;  %v8909_v24 = vpack.c.bf16 %v3936_v18, %v3935_v22 }
0x1e39   :  { %v3734_v19 = vpop.xlane.xlu0 %3733 }
0x1e3a   :  { %9407 = vrsqrt.f32 %v3741_v26  ;;  %v3738_v6 = vmul.f32 0.03125, %v3734_v19  ;;  %v3938_v26 = vld [vmem:[%s10965_s4 + $0x68] sm:$0xff] }
0x1e3b   :  { %v8913_v19 = vpack.c.bf16 %v3938_v26, %v3937_v45 }
0x1e3c   :  { %v3740_v30 = vadd.f32 1e-05, %v3738_v6 }
0x1e3d   :  { %v9182_v31 = vpop.permute.xlu0 %9181 }
0x1e3e   :  { %9409 = vrsqrt.f32 %v3740_v30  ;;  %v9184_v39 = vunpack.i.h.bf16 %v9182_v31  ;;  %v9183_v55 = vunpack.i.l.bf16 %v9182_v31 }
0x1e40   :  { %v3783_v41 = vsel %vm31_vm0, %v9183_v55, %v9184_v39 }
0x1e41   :  { %v8881_v3 = vpack.c.bf16 %v3783_v41, %v3782_v25 }
0x1e43   :  { %8882 = vmatprep.subr.bf16.mxu1 %v8881_v3 }
0x1e44   :  { %v9408_v46 = vpop.eup %9407  ;;  %8884 = vmatpush3.bf16.msra.mxu1 %v8881_v3 }
0x1e45   :  { %8886 = vmatprep.subr.bf16.mxu1 %v8885_v43  ;;  %v3745_v48 = vmul.f32 %v9408_v46, %v3729_v23  ;;  %v3929_v23 = vld [vmem:[%s10965_s4 + $0x20] sm:$0xff] }
0x1e47   :  { %v3751_v61 = vmul.f32 %v3749_v50, %v3745_v48 }
0x1e48   :  { %v9410_v60 = vpop.eup %9409  ;;  %8888 = vmatpush3.bf16.msra.mxu1 %v8885_v43 }
0x1e49   :  { %v3744_v1 = vmul.f32 %v9410_v60, %v3728_v15  ;;  %v3757_v51 = vadd.f32 %v3755_v47, %v3751_v61  ;;  %v3930_v15 = vld [vmem:[%s10965_s4 + $0x28] sm:$0xff] }
0x1e4a   :  { %v8897_v17 = vpack.c.bf16 %v3930_v15, %v3929_v23 }
0x1e4b   :  { %v3750_v13 = vmul.f32 %v3749_v50, %v3744_v1 }
0x1e4c   :  { %8898 = vmatprep.subr.bf16.mxu0 %v8897_v17 }
0x1e4d   :  { %v3756_v56 = vadd.f32 %v3755_v47, %v3750_v13  ;;  %8900 = vmatpush3.bf16.msra.mxu0 %v8897_v17 }
0x1e4e   :  { %8902 = vmatprep.subr.bf16.mxu0 %v8901_v11 }
0x1e4f   :  { %8438 = vmatprep.mubr.msk.f32.mxu1 %vm294_vm1, %v3756_v56 }
0x1e50   :  { %8439 = vmatmul.mubr.msk.f32.vlgmr.msra.gmra.mrb[46].mxu1 %vm294_vm1, %v3757_v51 }
0x1e51   :  { %8904 = vmatpush3.bf16.msra.mxu0 %v8901_v11 }
0x1e52   :  { %8906 = vmatprep.subr.bf16.mxu0 %v8905_v44 }
0x1e55   :  { %8908 = vmatpush3.bf16.msra.mxu0 %v8905_v44 }
0x1e56   :  { %8910 = vmatprep.subr.bf16.mxu0 %v8909_v24 }
0x1e59   :  { %8912 = vmatpush3.bf16.msra.mxu0 %v8909_v24 }
0x1e5a   :  { %8914 = vmatprep.subr.bf16.mxu0 %v8913_v19 }
0x1e5d   :  { %8916 = vmatpush3.bf16.msra.mxu0 %v8913_v19 }
0x1e5e   :  { %8918 = vmatprep.subr.bf16.mxu0 %v8917_v5 }
0x1e61   :  { %8920 = vmatpush3.bf16.msra.mxu0 %v8917_v5 }
0x1e62   :  { %8517 = vmatprep.subr.mxu0 %v9538_v42 }
0x1f23   :  { %v8440_v6 = vpop.f32.mrb[46].mxu1 }
0x1f24   :  { %v3868_v62 = vadd.f32 %v8440_v6, %v3761_v28  ;;  %v3862_v29 = vpop.f32.mrb[47].mxu1 }
0x1f25   :  { %v3863_v30 = vadd.f32 %v3862_v29, %v3761_v28 }
0x1f26   :  { %v3874_v31 = vmul.f32 0.70710677, %v3868_v62 }
0x1f27   :  { %v3873_v25 = vmul.f32 0.70710677, %v3863_v30  ;;  %v3871_v6 = vmul.f32 0.5, %v3863_v30 }
0x1f28   :  { %v3876_v37 = vand.u32 2147483647, %v3874_v31  ;;  %vm3916_vm7 = vcmp.lt.f32.partialorder %v3874_v31, 0.0 }
0x1f29   :  { %v3875_v39 = vand.u32 2147483647, %v3873_v25  ;;  %vm3915_vm8 = vcmp.lt.f32.partialorder %v3873_v25, 0.0 }
0x1f2a   :  { %v3878_v55 = vmul.f32 0.3275911, %v3876_v37  ;;  %v3904_v43 = vsub.f32 0.0, %v3876_v37 }
0x1f2b   :  { %v3877_v40 = vmul.f32 0.3275911, %v3875_v39  ;;  %v3903_v46 = vsub.f32 0.0, %v3875_v39 }
0x1f2c   :  { %v3880_v41 = vadd.f32 1.0, %v3878_v55  ;;  %v3906_v50 = vmul.f32 %v3904_v43, %v3876_v37  ;;  %v3872_v37 = vmul.f32 0.5, %v3868_v62 }
0x1f2d   :  { %v3879_v3 = vadd.f32 1.0, %v3877_v40  ;;  %v3905_v1 = vmul.f32 %v3903_v46, %v3875_v39  ;;  %v10367_v40 = vld [vmem:[%s10962_s1 + $0x10] sm:$0xff] }
0x1f2e   :  { %9411 = vrcp.f32 %v3880_v41  ;;  %v3909_v13 = vmul.f32 1.442695, %v3906_v50  ;;  %v4021_v31 = vrot.slane %v10367_v40, %v9697_v34 }
0x1f2f   :  { %9413 = vrcp.f32 %v3879_v3  ;;  %v3907_v52 = vmul.f32 1.442695, %v3905_v1 }
0x1f30   :  { %9415 = vpow2.f32 %v3909_v13 }
0x1f31   :  { %9417 = vpow2.f32 %v3907_v52  ;;  %v10393_v52 = vld [vmem:[%s10964_s3 + $0x78] sm:$0xff] }
0x1f38   :  { %v9412_v48 = vpop.eup %9411 }
0x1f39   :  { %v9414_v60 = vpop.eup %9413  ;;  %v3886_v54 = vmul.f32 1.0614054, %v9412_v48 }
0x1f3a   :  { %v3885_v61 = vmul.f32 1.0614054, %v9414_v60  ;;  %v9416_v14 = vpop.eup %9415 }
0x1f3b   :  { %v3888_v47 = vadd.f32 -1.4531521, %v3886_v54  ;;  %v9418_v22 = vpop.eup %9417 }
0x1f3c   :  { %v3887_v56 = vadd.f32 -1.4531521, %v3885_v61 }
0x1f3d   :  { %v3890_v51 = vmul.f32 %v9412_v48, %v3888_v47 }
0x1f3e   :  { %v3889_v10 = vmul.f32 %v9414_v60, %v3887_v56 }
0x1f3f   :  { %v3892_v58 = vadd.f32 1.4214138, %v3890_v51  ;;  %v10388_v51 = vld [vmem:[%s10964_s3 + $0x60] sm:$0xff] }
0x1f40   :  { %v3891_v8 = vadd.f32 1.4214138, %v3889_v10  ;;  %v8921_v10 = vpack.c.bf16 %v10393_v52, %v10388_v51 }
0x1f41   :  { %v3894_v53 = vmul.f32 %v9412_v48, %v3892_v58  ;;  %v9195_v58 = vpack.i.bf16 %v10393_v52, %v10388_v51 }
0x1f42   :  { %v3893_v7 = vmul.f32 %v9414_v60, %v3891_v8  ;;  %8922 = vmatprep.subr.bf16.mxu1 %v8921_v10  ;;  %v10402_v8 = vld [vmem:[%s10964_s3 + $0x90] sm:$0xff] }
0x1f43   :  { %v3896_v23 = vadd.f32 -0.28449672, %v3894_v53  ;;  %8924 = vmatpush3.bf16.msra.mxu1 %v8921_v10  ;;  %v10407_v53 = vld [vmem:[%s10964_s3 + $0xa8] sm:$0xff] }
0x1f44   :  { %v3895_v15 = vadd.f32 -0.28449672, %v3893_v7  ;;  %v9200_v7 = vpack.i.bf16 %v10407_v53, %v10402_v8 }
0x1f45   :  { %v3898_v17 = vmul.f32 %v9412_v48, %v3896_v23  ;;  %v8925_v23 = vpack.c.bf16 %v10407_v53, %v10402_v8 }
0x1f46   :  { %v3897_v20 = vmul.f32 %v9414_v60, %v3895_v15 }
0x1f47   :  { %v3900_v9 = vadd.f32 0.2548296, %v3898_v17  ;;  %8926 = vmatprep.subr.bf16.mxu1 %v8925_v23 }
0x1f48   :  { %v3899_v11 = vadd.f32 0.2548296, %v3897_v20  ;;  %8928 = vmatpush3.bf16.msra.mxu1 %v8925_v23 }
0x1f49   :  { %v3902_v21 = vmul.f32 %v9412_v48, %v3900_v9  ;;  %8487 = vmatprep.subr.mxu1 %v9538_v42 }
0x1f4a   :  { %v3901_v44 = vmul.f32 %v9414_v60, %v3899_v11 }
0x1f4b   :  { %v3912_v18 = vmul.f32 %v9416_v14, %v3902_v21  ;;  %v4066_v14 = vrot.slane %v10367_v40, %v9754_v38 }
0x1f4c   :  { %v3911_v24 = vmul.f32 %v9418_v22, %v3901_v44 }
0x1f4d   :  { %v3914_v45 = vsub.f32 1.0, %v3912_v18  ;;  %v4072_v18 = vrot.slane %v10367_v40, %v10079_v32 }
0x1f4e   :  { %v3913_v26 = vsub.f32 1.0, %v3911_v24 }
0x1f4f   :  { %v3918_v19 = vsub.f32 0.0, %v3914_v45 }
0x1f50   :  { %v3917_v12 = vsub.f32 0.0, %v3913_v26 }
0x1f51   :  { %v3920_v27 = vsel %vm3916_vm7, %v3918_v19, %v3914_v45 }
0x1f52   :  { %v3922_v5 = vadd.f32 1.0, %v3920_v27  ;;  %v3919_v28 = vsel %vm3915_vm8, %v3917_v12, %v3913_v26 }
0x1f53   :  { %v3921_v29 = vadd.f32 1.0, %v3919_v28 }
0x1f54   :  { %v3924_v55 = vmul.f32 %v3922_v5, %v3872_v37 }
0x1f55   :  { %v3923_v39 = vmul.f32 %v3921_v29, %v3871_v6 }
0x1f57   :  { %8473 = vmatprep.mubr.f32.mxu0 %v3923_v39 }
0x1f58   :  { %8474 = vmatmul.mubr.f32.vlgmr.msra.gmra.mrb[36].mxu0 %v3924_v55 }
0x1f59   :  { %8519 = vmatprep.mubr.msk.f32.mxu0 %vm9539_vm2, %v9538_v42 }
0x202b   :  { %v8475_v25 = vpop.f32.mrb[36].mxu0 }
0x202c   :  { %v4017_v30 = vadd.f32 %v8475_v25, %v10265_v2  ;;  %v4007_v41 = vpop.f32.mrb[37].mxu0 }
0x202d   :  { %v4016_v62 = vadd.f32 %v4007_v41, %v10268_v49 }
0x202e   :  { %v10373_v3 = vadd.f32 %v4021_v31, %v4017_v30 }
0x202f   :  { %v10375_v43 = vadd.f32 %v4021_v31, %v4016_v62 }
0x2030   :  { %v4040_v46 = vsel %vm294_vm1, %v10373_v3, 0.0 }
0x2031   :  { %4041 = vadd.xlane.f32.xlu0 %v4040_v46  ;;  %v4037_v48 = vsel %vm294_vm1, %v10375_v43, 0.0 }
0x2032   :  { %4038 = vadd.xlane.f32.xlu1 %v4037_v48 }
0x20be   :  { %v4042_v50 = vpop.xlane.xlu0 %4041 }
0x20bf   :  { %v4044_v60 = vmul.f32 0.03125, %v4042_v50  ;;  %v4039_v54 = vpop.xlane.xlu1 %4038 }
0x20c0   :  { %v4043_v1 = vmul.f32 0.03125, %v4039_v54 }
0x20c1   :  { %v4046_v2 = vsub.f32 %v10373_v3, %v4044_v60 }
0x20c2   :  { %v4045_v49 = vsub.f32 %v10375_v43, %v4043_v1 }
0x20c3   :  { %v4048_v13 = vmul.f32 %v4046_v2, %v4046_v2 }
0x20c4   :  { %v4047_v61 = vmul.f32 %v4045_v49, %v4045_v49 }
0x20c5   :  { %v4052_v56 = vsel %vm294_vm1, %v4048_v13, 0.0 }
0x20c6   :  { %v4049_v47 = vsel %vm294_vm1, %v4047_v61, 0.0 }
0x20c7   :  { %4050 = vadd.xlane.f32.xlu0 %v4049_v47 }
0x20cb   :  { %4053 = vadd.xlane.f32.xlu0 %v4052_v56 }
0x2154   :  { %v4051_v15 = vpop.xlane.xlu0 %4050 }
0x2155   :  { %v4055_v17 = vmul.f32 0.03125, %v4051_v15 }
0x2157   :  { %v4057_v20 = vadd.f32 1e-05, %v4055_v17 }
0x2158   :  { %v4054_v9 = vpop.xlane.xlu0 %4053 }
0x2159   :  { %9419 = vrsqrt.f32 %v4057_v20  ;;  %v4056_v11 = vmul.f32 0.03125, %v4054_v9 }
0x215b   :  { %v4058_v21 = vadd.f32 1e-05, %v4056_v11 }
0x215d   :  { %9421 = vrsqrt.f32 %v4058_v21 }
0x2163   :  { %v9420_v44 = vpop.eup %9419 }
0x2164   :  { %v4061_v22 = vmul.f32 %v9420_v44, %v4045_v49 }
0x2166   :  { %v4067_v24 = vmul.f32 %v4066_v14, %v4061_v22 }
0x2167   :  { %v9422_v45 = vpop.eup %9421 }
0x2168   :  { %v4062_v26 = vmul.f32 %v9422_v45, %v4046_v2  ;;  %v4073_v19 = vadd.f32 %v4072_v18, %v4067_v24 }
0x216a   :  { %v4068_v12 = vmul.f32 %v4066_v14, %v4062_v26  ;;  %8484 = vmatprep.mubr.msk.f32.mxu1 %vm294_vm1, %v4073_v19 }
0x216c   :  { %v4074_v27 = vadd.f32 %v4072_v18, %v4068_v12 }
0x216e   :  { %8485 = vmatmul.mubr.msk.f32.vlgmr.msra.gmra.mrb[48].mxu1 %vm294_vm1, %v4074_v27 }
0x216f   :  { %8489 = vmatprep.mubr.msk.f32.mxu1 %vm9539_vm2, %v9538_v42 }
0x2241   :  { %v10422_v5 = vpop.f32.mrb[48].mxu1 }
0x2242   :  { %4234 = vrot.lane.b32.xlu0 %v10422_v5, %s9537_s25  ;;  %v10426_v28 = vpop.f32.mrb[49].mxu1 }
0x2243   :  { %4157 = vrot.lane.b32.xlu1 %v10426_v28, %s9537_s25 }
0x22b4   :  { %v4235_v29 = vpop.permute.xlu0 %4234 }
0x22b5   :  { %v4158_v6 = vpop.permute.xlu1 %4157 }
0x22b6   :  { %8488 = vmatpush3.xpose.msk.msra.mxu1 %vm631_vm3, %v4158_v6 }
0x22b7   :  { %8492 = vmatprep.subr.mxu1 %v9538_v42 }
0x22b9   :  { %8490 = vmatmul.mubr.msk.f32.vlgmr.msra.gmra.mrb[50].mxu1 %vm631_vm3, %v10426_v28 }
0x22ba   :  { %8493 = vmatpush3.xpose.msk.msra.mxu1 %vm631_vm3, %v4235_v29  ;;  %8494 = vmatprep.mubr.msk.f32.mxu1 %vm9539_vm2, %v9538_v42 }
0x22bb   :  { %8497 = vmatprep.subr.mxu1 %v9538_v42 }
0x22bd   :  { %8495 = vmatmul.mubr.msk.f32.vlgmr.msra.gmra.mrb[52].mxu1 %vm631_vm3, %v10422_v5 }
0x22be   :  { %8499 = vmatprep.mubr.msk.f32.mxu1 %vm9539_vm2, %v9538_v42 }
0x238c   :  { %v4229_v37 = vpop.f32.mrb[50].mxu1 }
0x238d   :  { %v4310_v39 = vmul.f32 0.35355338, %v4229_v37  ;;  %v8491_v55 = vpop.f32.mrb[51].mxu1 }
0x238f   :  { %v4312_v31 = vsel %vm631_vm3, %v4310_v39, -inf }
0x2390   :  { %4313 = vmax.xlane.f32.xlu1 %v4312_v31  ;;  %v4306_v25 = vpop.f32.mrb[52].mxu1 }
0x2391   :  { %v4311_v30 = vmul.f32 0.35355338, %v4306_v25  ;;  %v8496_v41 = vpop.f32.mrb[53].mxu1 }
0x2393   :  { %v4315_v62 = vsel %vm631_vm3, %v4311_v30, -inf }
0x2394   :  { %4316 = vmax.xlane.f32.xlu0 %v4315_v62 }
0x23a1   :  { %4334 = vrot.lane.b32.xlu1 %v10426_v28, %s9540_s16 }
0x241d   :  { %v4314_v46 = vpop.xlane.xlu1 %4313 }
0x241e   :  { %v4318_v48 = vsub.f32 %v4310_v39, %v4314_v46 }
0x2420   :  { %v4320_v50 = vmul.f32 1.442695, %v4318_v48 }
0x2421   :  { %v4335_v60 = vpop.permute.xlu1 %4334  ;;  %v4317_v54 = vpop.xlane.xlu0 %4316 }
0x2422   :  { %9423 = vpow2.f32 %v4320_v50  ;;  %v4319_v1 = vsub.f32 %v4311_v30, %v4317_v54  ;;  %8498 = vmatpush3.msra.mxu1 %v4335_v60 }
0x2423   :  { %8502 = vmatprep.subr.mxu1 %v9538_v42 }
0x2424   :  { %v4322_v2 = vmul.f32 1.442695, %v4319_v1 }
0x2426   :  { %9425 = vpow2.f32 %v4322_v2 }
0x242c   :  { %v9424_v49 = vpop.eup %9423 }
0x242d   :  { %v4324_v61 = vsel %vm631_vm3, %v9424_v49, 0.0 }
0x242e   :  { %4325 = vadd.xlane.f32.xlu1 %v4324_v61 }
0x2430   :  { %v9426_v47 = vpop.eup %9425 }
0x2431   :  { %v4327_v13 = vsel %vm631_vm3, %v9426_v47, 0.0 }
0x2432   :  { %4328 = vadd.xlane.f32.xlu0 %v4327_v13 }
0x243f   :  { %4488 = vrot.lane.b32.xlu1 %v10426_v28, %s9541_s17 }
0x2443   :  { %4486 = vrot.lane.b32.xlu1 %v10426_v28, %s9542_s18 }
0x2447   :  { %4566 = vrot.lane.b32.xlu1 %v10422_v5, %s9541_s17 }
0x2448   :  { %4410 = vrot.lane.b32.xlu0 %v10422_v5, %s9540_s16 }
0x244c   :  { %4564 = vrot.lane.b32.xlu0 %v10422_v5, %s9542_s18 }
0x24bb   :  { %v4326_v56 = vpop.xlane.xlu1 %4325 }
0x24bc   :  { %9427 = vrcp.f32 %v4326_v56 }
0x24bf   :  { %v4329_v10 = vpop.xlane.xlu0 %4328  ;;  %v4489_v17 = vpop.permute.xlu1 %4488 }
0x24c0   :  { %9429 = vrcp.f32 %v4329_v10 }
0x24c3   :  { %v4411_v20 = vpop.permute.xlu0 %4410  ;;  %v4487_v21 = vpop.permute.xlu1 %4486 }
0x24c6   :  { %v9428_v23 = vpop.eup %9427 }
0x24c7   :  { %v4331_v15 = vmul.f32 %v9428_v23, %v9424_v49  ;;  %v4567_v14 = vpop.permute.xlu1 %4566  ;;  %v4565_v44 = vpop.permute.xlu0 %4564 }
0x24c9   :  { %8500 = vmatmul.mubr.msk.f32.vlgmr.msra.gmra.mrb[54].mxu1 %vm631_vm3, %v4331_v15 }
0x24ca   :  { %v9430_v9 = vpop.eup %9429  ;;  %8503 = vmatpush3.msra.mxu1 %v4411_v20  ;;  %8504 = vmatprep.mubr.msk.f32.mxu1 %vm9539_vm2, %v9538_v42 }
0x24cb   :  { %v4333_v11 = vmul.f32 %v9430_v9, %v9426_v47  ;;  %8507 = vmatprep.subr.mxu1 %v9538_v42 }
0x24cd   :  { %8505 = vmatmul.mubr.msk.f32.vlgmr.msra.gmra.mrb[56].mxu1 %vm631_vm3, %v4333_v11 }
0x24ce   :  { %8509 = vmatprep.mubr.msk.f32.mxu1 %vm9539_vm2, %v9538_v42 }
0x24d1   :  { %8508 = vmatpush3.xpose.msk.msra.mxu1 %vm631_vm3, %v4489_v17 }
0x24d2   :  { %8512 = vmatprep.subr.mxu1 %v9538_v42 }
0x24d4   :  { %8510 = vmatmul.mubr.msk.f32.vlgmr.msra.gmra.mrb[58].mxu1 %vm631_vm3, %v4487_v21 }
0x24d5   :  { %8513 = vmatpush3.xpose.msk.msra.mxu1 %vm631_vm3, %v4567_v14  ;;  %8514 = vmatprep.mubr.msk.f32.mxu1 %vm9539_vm2, %v9538_v42 }
0x24d6   :  { %8522 = vmatprep.subr.mxu1 %v9538_v42 }
0x24d8   :  { %8515 = vmatmul.mubr.msk.f32.vlgmr.msra.gmra.mrb[60].mxu1 %vm631_vm3, %v4565_v44 }
0x24d9   :  { %8524 = vmatprep.mubr.msk.f32.mxu1 %vm9539_vm2, %v9538_v42 }
0x259c   :  { %v10476_v22 = vpop.f32.mrb[54].mxu1 }
0x259d   :  { %v8501_v18 = vpop.f32.mrb[55].mxu1 }
0x25a0   :  { %v10478_v24 = vpop.f32.mrb[56].mxu1 }
0x25a1   :  { %v8506_v45 = vpop.f32.mrb[57].mxu1 }
0x25a7   :  { %v4560_v26 = vpop.f32.mrb[58].mxu1 }
0x25a8   :  { %v4642_v19 = vmul.f32 0.35355338, %v4560_v26  ;;  %v8511_v12 = vpop.f32.mrb[59].mxu1 }
0x25aa   :  { %v4644_v27 = vsel %vm631_vm3, %v4642_v19, -inf }
0x25ab   :  { %4645 = vmax.xlane.f32.xlu1 %v4644_v27  ;;  %v4638_v6 = vpop.f32.mrb[60].mxu1 }
0x25ac   :  { %v4643_v29 = vmul.f32 0.35355338, %v4638_v6  ;;  %v8516_v37 = vpop.f32.mrb[61].mxu1 }
0x25ae   :  { %v4647_v39 = vsel %vm631_vm3, %v4643_v29, -inf }
0x25af   :  { %4648 = vmax.xlane.f32.xlu0 %v4647_v39 }
0x25bc   :  { %4666 = vrot.lane.b32.xlu1 %v10426_v28, %s9543_s19 }
0x25c0   :  { %4820 = vrot.lane.b32.xlu1 %v10426_v28, %s9544_s20 }
0x25c4   :  { %4898 = vrot.lane.b32.xlu1 %v10422_v5, %s9544_s20 }
0x25c5   :  { %4742 = vrot.lane.b32.xlu0 %v10422_v5, %s9543_s19 }
0x25c8   :  { %4818 = vrot.lane.b32.xlu1 %v10426_v28, %s9545_s21 }
0x2638   :  { %v4646_v55 = vpop.xlane.xlu1 %4645 }
0x2639   :  { %v4650_v31 = vsub.f32 %v4642_v19, %v4646_v55 }
0x263b   :  { %v4652_v25 = vmul.f32 1.442695, %v4650_v31 }
0x263c   :  { %v4667_v30 = vpop.permute.xlu1 %4666  ;;  %v4649_v41 = vpop.xlane.xlu0 %4648 }
0x263d   :  { %9431 = vpow2.f32 %v4652_v25  ;;  %v4651_v62 = vsub.f32 %v4643_v29, %v4649_v41  ;;  %8518 = vmatpush3.msra.mxu0 %v4667_v30 }
0x263e   :  { %8527 = vmatprep.subr.mxu0 %v9538_v42 }
0x263f   :  { %v4654_v46 = vmul.f32 1.442695, %v4651_v62 }
0x2640   :  { %v4743_v48 = vpop.permute.xlu0 %4742  ;;  %v4821_v61 = vpop.permute.xlu1 %4820 }
0x2641   :  { %9433 = vpow2.f32 %v4654_v46  ;;  %8523 = vmatpush3.msra.mxu1 %v4743_v48 }
0x2642   :  { %8532 = vmatprep.subr.mxu1 %v9538_v42 }
0x2644   :  { %v4899_v13 = vpop.permute.xlu1 %4898 }
0x2647   :  { %v9432_v50 = vpop.eup %9431 }
0x2648   :  { %v4656_v60 = vsel %vm631_vm3, %v9432_v50, 0.0  ;;  %v4819_v15 = vpop.permute.xlu1 %4818 }
0x2649   :  { %4657 = vadd.xlane.f32.xlu0 %v4656_v60 }
0x264b   :  { %v9434_v54 = vpop.eup %9433 }
0x264c   :  { %v4659_v1 = vsel %vm631_vm3, %v9434_v54, 0.0 }
0x264d   :  { %4660 = vadd.xlane.f32.xlu0 %v4659_v1 }
0x2663   :  { %4896 = vrot.lane.b32.xlu0 %v10422_v5, %s9545_s21 }
0x26d6   :  { %v4658_v2 = vpop.xlane.xlu0 %4657 }
0x26d7   :  { %9435 = vrcp.f32 %v4658_v2 }
0x26da   :  { %v4661_v49 = vpop.xlane.xlu0 %4660 }
0x26db   :  { %9437 = vrcp.f32 %v4661_v49 }
0x26de   :  { %v4897_v17 = vpop.permute.xlu0 %4896 }
0x26e1   :  { %v9436_v47 = vpop.eup %9435 }
0x26e2   :  { %v4663_v56 = vmul.f32 %v9436_v47, %v9432_v50 }
0x26e4   :  { %8520 = vmatmul.mubr.msk.f32.vlgmr.msra.gmra.mrb[38].mxu0 %vm631_vm3, %v4663_v56 }
0x26e5   :  { %v9438_v10 = vpop.eup %9437  ;;  %8528 = vmatpush3.xpose.msk.msra.mxu0 %vm631_vm3, %v4821_v61  ;;  %8529 = vmatprep.mubr.msk.f32.mxu0 %vm9539_vm2, %v9538_v42 }
0x26e6   :  { %v4665_v23 = vmul.f32 %v9438_v10, %v9434_v54  ;;  %8537 = vmatprep.subr.mxu0 %v9538_v42 }
0x26e8   :  { %8525 = vmatmul.mubr.msk.f32.vlgmr.msra.gmra.mrb[62].mxu1 %vm631_vm3, %v4665_v23  ;;  %8530 = vmatmul.mubr.msk.f32.vlgmr.msra.gmra.mrb[40].mxu0 %vm631_vm3, %v4819_v15 }
0x26e9   :  { %8533 = vmatpush3.xpose.msk.msra.mxu1 %vm631_vm3, %v4899_v13  ;;  %8534 = vmatprep.mubr.msk.f32.mxu1 %vm9539_vm2, %v9538_v42 }
0x26ea   :  { %8542 = vmatprep.subr.mxu1 %v9538_v42  ;;  %8539 = vmatprep.mubr.msk.f32.mxu0 %vm9539_vm2, %v9538_v42 }
0x26ec   :  { %8535 = vmatmul.mubr.msk.f32.vlgmr.msra.gmra.mrb[64].mxu1 %vm631_vm3, %v4897_v17 }
0x26ed   :  { %8544 = vmatprep.mubr.msk.f32.mxu1 %vm9539_vm2, %v9538_v42 }
0x27b7   :  { %v10514_v20 = vpop.f32.mrb[38].mxu0 }
0x27b8   :  { %v8521_v9 = vpop.f32.mrb[39].mxu0 }
0x27bb   :  { %v10516_v11 = vpop.f32.mrb[62].mxu1  ;;  %v4892_v21 = vpop.f32.mrb[40].mxu0 }
0x27bc   :  { %v4974_v14 = vmul.f32 0.35355338, %v4892_v21  ;;  %v8526_v44 = vpop.f32.mrb[63].mxu1  ;;  %v8531_v18 = vpop.f32.mrb[41].mxu0 }
0x27be   :  { %v4976_v45 = vsel %vm631_vm3, %v4974_v14, -inf }
0x27bf   :  { %4977 = vmax.xlane.f32.xlu1 %v4976_v45  ;;  %v4970_v26 = vpop.f32.mrb[64].mxu1 }
0x27c0   :  { %v4975_v19 = vmul.f32 0.35355338, %v4970_v26  ;;  %v8536_v12 = vpop.f32.mrb[65].mxu1 }
0x27c2   :  { %v4979_v27 = vsel %vm631_vm3, %v4975_v19, -inf }
0x27c3   :  { %4980 = vmax.xlane.f32.xlu0 %v4979_v27 }
0x27d0   :  { %4998 = vrot.lane.b32.xlu1 %v10426_v28, %s9546_s22 }
0x27d4   :  { %5152 = vrot.lane.b32.xlu1 %v10426_v28, %s9547_s23 }
0x27d8   :  { %5230 = vrot.lane.b32.xlu1 %v10422_v5, %s9547_s23 }
0x27d9   :  { %5074 = vrot.lane.b32.xlu0 %v10422_v5, %s9546_s22 }
0x27dc   :  { %5150 = vrot.lane.b32.xlu1 %v10426_v28, %s9548_s26 }
0x284c   :  { %v4978_v6 = vpop.xlane.xlu1 %4977 }
0x284d   :  { %v4982_v29 = vsub.f32 %v4974_v14, %v4978_v6 }
0x284f   :  { %v4984_v37 = vmul.f32 1.442695, %v4982_v29 }
0x2850   :  { %v4999_v39 = vpop.permute.xlu1 %4998  ;;  %v4981_v55 = vpop.xlane.xlu0 %4980 }
0x2851   :  { %9439 = vpow2.f32 %v4984_v37  ;;  %v4983_v31 = vsub.f32 %v4975_v19, %v4981_v55  ;;  %8538 = vmatpush3.msra.mxu0 %v4999_v39 }
0x2852   :  { %8547 = vmatprep.subr.mxu0 %v9538_v42 }
0x2853   :  { %v4986_v25 = vmul.f32 1.442695, %v4983_v31 }
0x2854   :  { %v5075_v30 = vpop.permute.xlu0 %5074  ;;  %v5153_v54 = vpop.permute.xlu1 %5152 }
0x2855   :  { %9441 = vpow2.f32 %v4986_v25  ;;  %8543 = vmatpush3.msra.mxu1 %v5075_v30 }
0x2856   :  { %8552 = vmatprep.subr.mxu1 %v9538_v42 }
0x2858   :  { %v5231_v2 = vpop.permute.xlu1 %5230 }
0x285b   :  { %v9440_v41 = vpop.eup %9439 }
0x285c   :  { %v4988_v62 = vsel %vm631_vm3, %v9440_v41, 0.0  ;;  %v5151_v13 = vpop.permute.xlu1 %5150 }
0x285d   :  { %4989 = vadd.xlane.f32.xlu0 %v4988_v62 }
0x285f   :  { %v9442_v46 = vpop.eup %9441 }
0x2860   :  { %v4991_v48 = vsel %vm631_vm3, %v9442_v46, 0.0 }
0x2861   :  { %4992 = vadd.xlane.f32.xlu0 %v4991_v48 }
0x2877   :  { %5228 = vrot.lane.b32.xlu0 %v10422_v5, %s9548_s26 }
0x28ea   :  { %v4990_v50 = vpop.xlane.xlu0 %4989 }
0x28eb   :  { %9443 = vrcp.f32 %v4990_v50 }
0x28ee   :  { %v4993_v60 = vpop.xlane.xlu0 %4992 }
0x28ef   :  { %9445 = vrcp.f32 %v4993_v60 }
0x28f2   :  { %v5229_v56 = vpop.permute.xlu0 %5228 }
0x28f5   :  { %v9444_v1 = vpop.eup %9443 }
0x28f6   :  { %v4995_v49 = vmul.f32 %v9444_v1, %v9440_v41 }
0x28f8   :  { %8540 = vmatmul.mubr.msk.f32.vlgmr.msra.gmra.mrb[42].mxu0 %vm631_vm3, %v4995_v49 }
0x28f9   :  { %v9446_v61 = vpop.eup %9445  ;;  %8548 = vmatpush3.xpose.msk.msra.mxu0 %vm631_vm3, %v5153_v54  ;;  %8549 = vmatprep.mubr.msk.f32.mxu0 %vm9539_vm2, %v9538_v42 }
0x28fa   :  { %v4997_v47 = vmul.f32 %v9446_v61, %v9442_v46  ;;  %8557 = vmatprep.subr.mxu0 %v9538_v42 }
0x28fc   :  { %8545 = vmatmul.mubr.msk.f32.vlgmr.msra.gmra.mrb[66].mxu1 %vm631_vm3, %v4997_v47  ;;  %8550 = vmatmul.mubr.msk.f32.vlgmr.msra.gmra.mrb[44].mxu0 %vm631_vm3, %v5151_v13 }
0x28fd   :  { %8553 = vmatpush3.xpose.msk.msra.mxu1 %vm631_vm3, %v5231_v2  ;;  %8554 = vmatprep.mubr.msk.f32.mxu1 %vm9539_vm2, %v9538_v42 }
0x28fe   :  { %8562 = vmatprep.subr.mxu1 %v9538_v42  ;;  %8559 = vmatprep.mubr.msk.f32.mxu0 %vm9539_vm2, %v9538_v42 }
0x2900   :  { %8555 = vmatmul.mubr.msk.f32.vlgmr.msra.gmra.mrb[68].mxu1 %vm631_vm3, %v5229_v56 }
0x2901   :  { %8564 = vmatprep.mubr.msk.f32.mxu1 %vm9539_vm2, %v9538_v42 }
0x29cb   :  { %v5070_v10 = vpop.f32.mrb[42].mxu0 }
0x29cc   :  { %v8541_v23 = vpop.f32.mrb[43].mxu0 }
0x29cf   :  { %v5146_v15 = vpop.f32.mrb[66].mxu1  ;;  %v5224_v17 = vpop.f32.mrb[44].mxu0 }
0x29d0   :  { %v5306_v9 = vmul.f32 0.35355338, %v5224_v17  ;;  %v8546_v21 = vpop.f32.mrb[67].mxu1  ;;  %v8551_v14 = vpop.f32.mrb[45].mxu0 }
0x29d2   :  { %v5308_v44 = vsel %vm631_vm3, %v5306_v9, -inf }
0x29d3   :  { %5309 = vmax.xlane.f32.xlu1 %v5308_v44  ;;  %v5302_v18 = vpop.f32.mrb[68].mxu1 }
0x29d4   :  { %v5307_v45 = vmul.f32 0.35355338, %v5302_v18  ;;  %v8556_v26 = vpop.f32.mrb[69].mxu1 }
0x29d6   :  { %v5311_v19 = vsel %vm631_vm3, %v5307_v45, -inf }
0x29d7   :  { %5312 = vmax.xlane.f32.xlu0 %v5311_v19 }
0x29e4   :  { %5330 = vrot.lane.b32.xlu1 %v10426_v28, %s9549_s27 }
0x29e8   :  { %9196 = vrot.lane.b32.xlu1 %v9195_v58, %s9536_s24 }
0x29ec   :  { %9201 = vrot.lane.b32.xlu1 %v9200_v7, %s9536_s24 }
0x29f0   :  { %5484 = vrot.lane.b32.xlu1 %v10514_v20, %s9550_s28 }
0x29f4   :  { %5492 = vrot.lane.b32.xlu1 %v5070_v10, %s9551_s29 }
0x2a60   :  { %v5310_v12 = vpop.xlane.xlu1 %5309 }
0x2a61   :  { %v5314_v27 = vsub.f32 %v5306_v9, %v5310_v12 }
0x2a63   :  { %v5316_v6 = vmul.f32 1.442695, %v5314_v27 }
0x2a64   :  { %v5331_v29 = vpop.permute.xlu1 %5330  ;;  %v5313_v28 = vpop.xlane.xlu0 %5312 }
0x2a65   :  { %9447 = vpow2.f32 %v5316_v6  ;;  %v5315_v37 = vsub.f32 %v5307_v45, %v5313_v28  ;;  %8558 = vmatpush3.msra.mxu0 %v5331_v29 }
0x2a67   :  { %v5318_v51 = vmul.f32 1.442695, %v5315_v37 }
0x2a68   :  { %v9197_v52 = vpop.permute.xlu1 %9196 }
0x2a69   :  { %9449 = vpow2.f32 %v5318_v51  ;;  %v9199_v58 = vunpack.i.h.bf16 %v9197_v52  ;;  %v9198_v39 = vunpack.i.l.bf16 %v9197_v52 }
0x2a6b   :  { %v8929_v8 = vpack.c.bf16 %v9199_v58, %v9198_v39 }
0x2a6c   :  { %v9202_v30 = vpop.permute.xlu1 %9201 }
0x2a6d   :  { %8930 = vmatprep.subr.bf16.mxu0 %v8929_v8  ;;  %v9204_v41 = vunpack.i.h.bf16 %v9202_v30  ;;  %v9203_v62 = vunpack.i.l.bf16 %v9202_v30 }
0x2a6f   :  { %v9448_v53 = vpop.eup %9447  ;;  %v8933_v50 = vpack.c.bf16 %v9204_v41, %v9203_v62  ;;  %v10634_v41 = vld [vmem:[%s10964_s3 + $0x98] sm:$0xff]  ;;  %v10639_v62 = vld [vmem:[%s10964_s3 + $0xb0] sm:$0xff] }
0x2a70   :  { %v5320_v7 = vsel %vm631_vm3, %v9448_v53, 0.0  ;;  %v5485_v61 = vpop.permute.xlu1 %5484 }
0x2a71   :  { %5321 = vadd.xlane.f32.xlu0 %v5320_v7  ;;  %v5506_v56 = vsel %vm631_vm3, %v10476_v22, %v5485_v61  ;;  %v10594_v22 = vld [vmem:[%s10962_s1 + $0x18] sm:$0xff] }
0x2a72   :  { %v5515_v18 = vrot.slane %v10594_v22, %v9697_v34  ;;  %v5650_v61 = vrot.slane %v10594_v22, %v9660_v59 }
0x2a73   :  { %v9450_v20 = vpop.eup %9449 }
0x2a74   :  { %v5323_v55 = vsel %vm631_vm3, %v9450_v20, 0.0  ;;  %v5493_v13 = vpop.permute.xlu1 %5492 }
0x2a75   :  { %5324 = vadd.xlane.f32.xlu0 %v5323_v55  ;;  %v5508_v10 = vsel %vm1981_vm4, %v5506_v56, %v5493_v13 }
0x2a8b   :  { %5406 = vrot.lane.b32.xlu0 %v10422_v5, %s9549_s27 }
0x2a8f   :  { %5486 = vrot.lane.b32.xlu0 %v10516_v11, %s9550_s28 }
0x2a93   :  { %5494 = vrot.lane.b32.xlu0 %v5146_v15, %s9551_s29 }
0x2afe   :  { %v5322_v31 = vpop.xlane.xlu0 %5321 }
0x2aff   :  { %9451 = vrcp.f32 %v5322_v31  ;;  %v10620_v31 = vld [vmem:[%s10964_s3 + $0x68] sm:$0xff] }
0x2b02   :  { %v5325_v25 = vpop.xlane.xlu0 %5324 }
0x2b03   :  { %9453 = vrcp.f32 %v5325_v25  ;;  %v10625_v25 = vld [vmem:[%s10964_s3 + $0x80] sm:$0xff] }
0x2b04   :  { %v8937_v30 = vpack.c.bf16 %v10625_v25, %v10620_v31 }
0x2b06   :  { %v5407_v46 = vpop.permute.xlu0 %5406 }
0x2b07   :  { %8563 = vmatpush3.msra.mxu1 %v5407_v46  ;;  %v8941_v46 = vpack.c.bf16 %v10639_v62, %v10634_v41 }
0x2b08   :  { %8938 = vmatprep.subr.bf16.mxu1 %v8937_v30 }
0x2b09   :  { %v9452_v48 = vpop.eup %9451 }
0x2b0a   :  { %v5327_v60 = vmul.f32 %v9452_v48, %v9448_v53  ;;  %v5487_v47 = vpop.permute.xlu0 %5486 }
0x2b0b   :  { %v5507_v9 = vsel %vm631_vm3, %v10478_v24, %v5487_v47 }
0x2b0c   :  { %8560 = vmatmul.mubr.msk.f32.vlgmr.msra.gmra.mrb[46].mxu0 %vm631_vm3, %v5327_v60 }
0x2b0d   :  { %v9454_v5 = vpop.eup %9453  ;;  %8932 = vmatpush3.bf16.msra.mxu0 %v8929_v8 }
0x2b0e   :  { %v5329_v54 = vmul.f32 %v9454_v5, %v9450_v20  ;;  %8934 = vmatprep.subr.bf16.mxu0 %v8933_v50  ;;  %v5495_v23 = vpop.permute.xlu0 %5494 }
0x2b0f   :  { %v5509_v21 = vsel %vm1981_vm4, %v5507_v9, %v5495_v23 }
0x2b10   :  { %8565 = vmatmul.mubr.msk.f32.vlgmr.msra.gmra.mrb[70].mxu1 %vm631_vm3, %v5329_v54 }
0x2b11   :  { %8936 = vmatpush3.bf16.msra.mxu0 %v8933_v50  ;;  %8940 = vmatpush3.bf16.msra.mxu1 %v8937_v30 }
0x2b12   :  { %8945 = vmatprep.subr.bf16.mxu0 %v9552_v35  ;;  %8942 = vmatprep.subr.bf16.mxu1 %v8941_v46 }
0x2b15   :  { %8944 = vmatpush3.bf16.msra.mxu1 %v8941_v46 }
0x2b16   :  { %8949 = vmatprep.subr.bf16.mxu1 %v9552_v35 }
0x2bdf   :  { %v5402_v11 = vpop.f32.mrb[46].mxu0 }
0x2be0   :  { %5500 = vrot.lane.b32.xlu1 %v5402_v11, %s9553_s30  ;;  %v8561_v1 = vpop.f32.mrb[47].mxu0 }
0x2be1   :  { %v5644_v1 = vrot.slane %v10367_v40, %v10303_v16 }
0x2be3   :  { %v5478_v2 = vpop.f32.mrb[70].mxu1 }
0x2be4   :  { %5502 = vrot.lane.b32.xlu0 %v5478_v2, %s9553_s30  ;;  %v8566_v49 = vpop.f32.mrb[71].mxu1 }
0x2c52   :  { %v5501_v15 = vpop.permute.xlu1 %5500 }
0x2c53   :  { %v5510_v17 = vsel %vm1984_vm5, %v5508_v10, %v5501_v15 }
0x2c54   :  { %8575 = vmatprep.mubr.msk.f32.mxu0 %vm294_vm1, %v5510_v17 }
0x2c56   :  { %v5503_v14 = vpop.permute.xlu0 %5502 }
0x2c57   :  { %v5511_v44 = vsel %vm1984_vm5, %v5509_v21, %v5503_v14 }
0x2c58   :  { %8576 = vmatmul.mubr.msk.f32.vlgmr.msra.gmra.mrb[48].mxu0 %vm294_vm1, %v5511_v44 }
0x2c59   :  { %8593 = vmatprep.mubr.msk.f32.mxu0 %vm9539_vm2, %v9538_v42 }
0x2d2b   :  { %v8577_v45 = vpop.f32.mrb[48].mxu0 }
0x2d2c   :  { %v5610_v24 = vadd.f32 %v8577_v45, %v5515_v18  ;;  %v5604_v26 = vpop.f32.mrb[49].mxu0 }
0x2d2d   :  { %v5605_v19 = vadd.f32 %v5604_v26, %v5515_v18 }
0x2d2e   :  { %v10599_v12 = vadd.f32 %v5610_v24, %v10373_v3 }
0x2d2f   :  { %v10602_v27 = vadd.f32 %v5605_v19, %v10375_v43 }
0x2d30   :  { %v5618_v6 = vsel %vm294_vm1, %v10599_v12, 0.0 }
0x2d31   :  { %5619 = vadd.xlane.f32.xlu0 %v5618_v6  ;;  %v5615_v29 = vsel %vm294_vm1, %v10602_v27, 0.0 }
0x2d32   :  { %5616 = vadd.xlane.f32.xlu1 %v5615_v29 }
0x2d43   :  { %9206 = vrot.lane.b32.xlu1 %v9841_v0, %s9540_s16 }
0x2dbe   :  { %v5620_v34 = vpop.xlane.xlu0 %5619 }
0x2dbf   :  { %v5622_v28 = vmul.f32 0.03125, %v5620_v34  ;;  %v5617_v37 = vpop.xlane.xlu1 %5616 }
0x2dc0   :  { %v5621_v51 = vmul.f32 0.03125, %v5617_v37 }
0x2dc1   :  { %v5624_v3 = vsub.f32 %v10599_v12, %v5622_v28 }
0x2dc2   :  { %v5623_v43 = vsub.f32 %v10602_v27, %v5621_v51 }
0x2dc3   :  { %v9207_v52 = vpop.permute.xlu1 %9206  ;;  %v5626_v20 = vmul.f32 %v5624_v3, %v5624_v3 }
0x2dc4   :  { %v9209_v58 = vunpack.i.h.bf16 %v9207_v52  ;;  %v9208_v39 = vunpack.i.l.bf16 %v9207_v52  ;;  %v5625_v8 = vmul.f32 %v5623_v43, %v5623_v43 }
0x2dc5   :  { %v5630_v55 = vsel %vm294_vm1, %v5626_v20, 0.0 }
0x2dc6   :  { %v8946_v53 = vpack.c.bf16 %v9209_v58, %v9208_v39  ;;  %v5627_v7 = vsel %vm294_vm1, %v5625_v8, 0.0 }
0x2dc7   :  { %5628 = vadd.xlane.f32.xlu0 %v5627_v7 }
0x2dc8   :  { %8948 = vmatpush3.bf16.xpose.msk.msra.mxu0 %vm10018_vm6, %v8946_v53 }
0x2dc9   :  { %8953 = vmatprep.subr.bf16.mxu0 %v9552_v35 }
0x2dcb   :  { %5631 = vadd.xlane.f32.xlu0 %v5630_v55 }
0x2de1   :  { %9211 = vrot.lane.b32.xlu0 %v9851_v4, %s9540_s16 }
0x2e54   :  { %v5629_v48 = vpop.xlane.xlu0 %5628 }
0x2e55   :  { %v5633_v50 = vmul.f32 0.03125, %v5629_v48 }
0x2e57   :  { %v5635_v60 = vadd.f32 1e-05, %v5633_v50 }
0x2e58   :  { %v5632_v5 = vpop.xlane.xlu0 %5631 }
0x2e59   :  { %9455 = vrsqrt.f32 %v5635_v60  ;;  %v5634_v54 = vmul.f32 0.03125, %v5632_v5 }
0x2e5b   :  { %v5636_v11 = vadd.f32 1e-05, %v5634_v54 }
0x2e5c   :  { %v9212_v47 = vpop.permute.xlu0 %9211 }
0x2e5d   :  { %9457 = vrsqrt.f32 %v5636_v11  ;;  %v9214_v15 = vunpack.i.h.bf16 %v9212_v47  ;;  %v9213_v17 = vunpack.i.l.bf16 %v9212_v47 }
0x2e5f   :  { %v8950_v14 = vpack.c.bf16 %v9214_v15, %v9213_v17 }
0x2e63   :  { %v9456_v2 = vpop.eup %9455 }
0x2e64   :  { %v5639_v49 = vmul.f32 %v9456_v2, %v5623_v43 }
0x2e66   :  { %v5645_v13 = vmul.f32 %v5644_v1, %v5639_v49 }
0x2e67   :  { %v9458_v56 = vpop.eup %9457 }
0x2e68   :  { %v5640_v10 = vmul.f32 %v9458_v56, %v5624_v3  ;;  %v5651_v23 = vadd.f32 %v5650_v61, %v5645_v13 }
0x2e6a   :  { %v5646_v9 = vmul.f32 %v5644_v1, %v5640_v10  ;;  %8586 = vmatprep.mubr.msk.f32.mxu1 %vm294_vm1, %v5651_v23 }
0x2e6c   :  { %v5652_v21 = vadd.f32 %v5650_v61, %v5646_v9 }
0x2e6e   :  { %8587 = vmatmul.mubr.msk.f32.vlgmr.msra.gmra.mrb[72].mxu1 %vm294_vm1, %v5652_v21 }
0x2e6f   :  { %8952 = vmatpush3.bf16.xpose.msk.msra.mxu1 %vm10018_vm6, %v8950_v14  ;;  %8600 = vmatprep.mubr.msk.f32.mxu1 %vm9539_vm2, %v9538_v42 }
0x2e70   :  { %8956 = vmatprep.subr.bf16.mxu1 %v9552_v35 }
0x2f41   :  { %v10655_v59 = vpop.f32.mrb[72].mxu1 }
0x2f42   :  { %v10657_v40 = vpop.f32.mrb[73].mxu1  ;;  %8601 = vmatmul.mubr.msk.f32.vlgmr.msra.gmra.mrb[74].mxu1 %vm631_vm3, %v10655_v59 }
0x2f43   :  { %8594 = vmatmul.mubr.msk.f32.vlgmr.msra.gmra.mrb[50].mxu0 %vm631_vm3, %v10657_v40  ;;  %8614 = vmatprep.mubr.msk.f32.mxu1 %vm9539_vm2, %v9538_v42 }
0x2f44   :  { %8607 = vmatprep.mubr.msk.f32.mxu0 %vm9539_vm2, %v9538_v42 }
0x3015   :  { %v5892_v44 = vpop.f32.mrb[74].mxu1 }
0x3016   :  { %v5897_v18 = vmul.f32 0.35355338, %v5892_v44  ;;  %v5811_v45 = vpop.f32.mrb[50].mxu0  ;;  %v8602_v24 = vpop.f32.mrb[75].mxu1 }
0x3017   :  { %v5896_v26 = vmul.f32 0.35355338, %v5811_v45  ;;  %v8595_v19 = vpop.f32.mrb[51].mxu0 }
0x3018   :  { %v5901_v6 = vsel %vm1981_vm4, %v5897_v18, -inf }
0x3019   :  { %5902 = vmax.xlane.f32.xlu0 %v5901_v6  ;;  %v5898_v29 = vsel %vm1981_vm4, %v5896_v26, -inf }
0x301a   :  { %5899 = vmax.xlane.f32.xlu1 %v5898_v29 }
0x302b   :  { %9216 = vrot.lane.b32.xlu1 %v9841_v0, %s9536_s24 }
0x302f   :  { %9226 = vrot.lane.b32.xlu1 %v9841_v0, %s9543_s19 }
0x3033   :  { %9231 = vrot.lane.b32.xlu1 %v9851_v4, %s9543_s19 }
0x30a6   :  { %v5903_v34 = vpop.xlane.xlu0 %5902 }
0x30a7   :  { %v5905_v28 = vsub.f32 %v5897_v18, %v5903_v34  ;;  %v5900_v37 = vpop.xlane.xlu1 %5899 }
0x30a8   :  { %v5904_v51 = vsub.f32 %v5896_v26, %v5900_v37 }
0x30a9   :  { %v5908_v3 = vmul.f32 1.442695, %v5905_v28 }
0x30aa   :  { %v5906_v43 = vmul.f32 1.442695, %v5904_v51 }
0x30ab   :  { %9459 = vpow2.f32 %v5908_v3  ;;  %v9217_v52 = vpop.permute.xlu1 %9216 }
0x30ac   :  { %9461 = vpow2.f32 %v5906_v43  ;;  %v9219_v58 = vunpack.i.h.bf16 %v9217_v52  ;;  %v9218_v39 = vunpack.i.l.bf16 %v9217_v52 }
0x30ae   :  { %v8954_v8 = vpack.c.bf16 %v9219_v58, %v9218_v39 }
0x30af   :  { %v9227_v30 = vpop.permute.xlu1 %9226 }
0x30b0   :  { %8955 = vmatpush3.bf16.msra.mxu0 %v8954_v8  ;;  %v9229_v1 = vunpack.i.h.bf16 %v9227_v30  ;;  %v9228_v2 = vunpack.i.l.bf16 %v9227_v30 }
0x30b1   :  { %8959 = vmatprep.subr.bf16.mxu0 %v9552_v35 }
0x30b2   :  { %v8960_v23 = vpack.c.bf16 %v9229_v1, %v9228_v2 }
0x30b3   :  { %v9232_v46 = vpop.permute.xlu1 %9231 }
0x30b4   :  { %v9234_v47 = vunpack.i.h.bf16 %v9232_v46  ;;  %v9233_v13 = vunpack.i.l.bf16 %v9232_v46 }
0x30b5   :  { %v9460_v53 = vpop.eup %9459 }
0x30b6   :  { %v9462_v7 = vpop.eup %9461  ;;  %v5913_v20 = vsel %vm1981_vm4, %v9460_v53, 0.0  ;;  %v8964_v15 = vpack.c.bf16 %v9234_v47, %v9233_v13 }
0x30b7   :  { %5914 = vadd.xlane.f32.xlu0 %v5913_v20  ;;  %v5910_v55 = vsel %vm1981_vm4, %v9462_v7, 0.0 }
0x30b8   :  { %5911 = vadd.xlane.f32.xlu1 %v5910_v55 }
0x30c9   :  { %6078 = vrot.lane.b32.xlu1 %v10657_v40, %s9542_s18 }
0x30cd   :  { %9221 = vrot.lane.b32.xlu0 %v9851_v4, %s9536_s24  ;;  %s9554_s24 = smov [#allocation2]  }
0x30d1   :  { %6160 = vrot.lane.b32.xlu0 %v10655_v59, %s9542_s18 }
0x3144   :  { %v5915_v48 = vpop.xlane.xlu0 %5914 }
0x3145   :  { %9463 = vrcp.f32 %v5915_v48  ;;  %v5912_v50 = vpop.xlane.xlu1 %5911 }
0x3146   :  { %9465 = vrcp.f32 %v5912_v50 }
0x3148   :  { %v9222_v60 = vpop.permute.xlu0 %9221 }
0x3149   :  { %v9224_v5 = vunpack.i.h.bf16 %v9222_v60  ;;  %v9223_v54 = vunpack.i.l.bf16 %v9222_v60  ;;  %v6079_v17 = vpop.permute.xlu1 %6078 }
0x314b   :  { %v8957_v11 = vpack.c.bf16 %v9224_v5, %v9223_v54 }
0x314c   :  { %v6161_v9 = vpop.permute.xlu0 %6160 }
0x314d   :  { %8958 = vmatpush3.bf16.msra.mxu1 %v8957_v11 }
0x314e   :  { %8963 = vmatprep.subr.bf16.mxu1 %v9552_v35 }
0x314f   :  { %v9464_v49 = vpop.eup %9463 }
0x3150   :  { %v9466_v61 = vpop.eup %9465  ;;  %v5919_v56 = vmul.f32 %v9464_v49, %v9460_v53 }
0x3151   :  { %v5917_v10 = vmul.f32 %v9466_v61, %v9462_v7 }
0x3152   :  { %8615 = vmatmul.mubr.msk.f32.vlgmr.msra.gmra.mrb[76].mxu1 %vm1981_vm4, %v5919_v56 }
0x3153   :  { %8608 = vmatmul.mubr.msk.f32.vlgmr.msra.gmra.mrb[52].mxu0 %vm1981_vm4, %v5917_v10  ;;  %8628 = vmatprep.mubr.msk.f32.mxu1 %vm9539_vm2, %v9538_v42 }
0x3154   :  { %8962 = vmatpush3.bf16.xpose.msk.msra.mxu0 %vm10018_vm6, %v8960_v23  ;;  %8621 = vmatprep.mubr.msk.f32.mxu0 %vm9539_vm2, %v9538_v42 }
0x3155   :  { %8967 = vmatprep.subr.bf16.mxu0 %v9552_v35 }
0x3156   :  { %8966 = vmatpush3.bf16.xpose.msk.msra.mxu1 %vm10018_vm6, %v8964_v15 }
0x3157   :  { %8970 = vmatprep.subr.bf16.mxu1 %v9552_v35 }
0x315b   :  { %8622 = vmatmul.mubr.msk.f32.vlgmr.msra.gmra.mrb[54].mxu0 %vm631_vm3, %v6079_v17 }
0x315c   :  { %8635 = vmatprep.mubr.msk.f32.mxu0 %vm9539_vm2, %v9538_v42 }
0x315d   :  { %8629 = vmatmul.mubr.msk.f32.vlgmr.msra.gmra.mrb[78].mxu1 %vm631_vm3, %v6161_v9 }
0x315e   :  { %8642 = vmatprep.mubr.msk.f32.mxu1 %vm9539_vm2, %v9538_v42 }
0x3225   :  { %v10703_v21 = vpop.f32.mrb[76].mxu1 }
0x3226   :  { %v10705_v14 = vpop.f32.mrb[52].mxu0  ;;  %v8616_v44 = vpop.f32.mrb[77].mxu1 }
0x3227   :  { %v8609_v18 = vpop.f32.mrb[53].mxu0 }
0x322e   :  { %v6156_v45 = vpop.f32.mrb[54].mxu0 }
0x322f   :  { %v6242_v24 = vmul.f32 0.35355338, %v6156_v45  ;;  %v8623_v26 = vpop.f32.mrb[55].mxu0 }
0x3230   :  { %v6238_v19 = vpop.f32.mrb[78].mxu1 }
0x3231   :  { %v6243_v6 = vmul.f32 0.35355338, %v6238_v19  ;;  %v8630_v29 = vpop.f32.mrb[79].mxu1  ;;  %v6244_v34 = vsel %vm1981_vm4, %v6242_v24, -inf }
0x3232   :  { %6245 = vmax.xlane.f32.xlu1 %v6244_v34 }
0x3233   :  { %v6247_v28 = vsel %vm1981_vm4, %v6243_v6, -inf }
0x3234   :  { %6248 = vmax.xlane.f32.xlu0 %v6247_v28 }
0x3243   :  { %9236 = vrot.lane.b32.xlu1 %v9841_v0, %s9553_s30 }
0x3247   :  { %9246 = vrot.lane.b32.xlu1 %v9841_v0, %s9546_s22 }
0x324b   :  { %9251 = vrot.lane.b32.xlu1 %v9851_v4, %s9546_s22 }
0x324f   :  { %6424 = vrot.lane.b32.xlu1 %v10657_v40, %s9545_s21 }
0x32bf   :  { %v6246_v37 = vpop.xlane.xlu1 %6245 }
0x32c0   :  { %v6250_v51 = vsub.f32 %v6242_v24, %v6246_v37 }
0x32c1   :  { %v6249_v3 = vpop.xlane.xlu0 %6248 }
0x32c2   :  { %v6251_v43 = vsub.f32 %v6243_v6, %v6249_v3  ;;  %v6252_v58 = vmul.f32 1.442695, %v6250_v51 }
0x32c3   :  { %v9237_v52 = vpop.permute.xlu1 %9236 }
0x32c4   :  { %v6254_v39 = vmul.f32 1.442695, %v6251_v43  ;;  %v9239_v8 = vunpack.i.h.bf16 %v9237_v52  ;;  %v9238_v53 = vunpack.i.l.bf16 %v9237_v52 }
0x32c6   :  { %9467 = vpow2.f32 %v6254_v39  ;;  %v8968_v7 = vpack.c.bf16 %v9239_v8, %v9238_v53 }
0x32c7   :  { %9469 = vpow2.f32 %v6252_v58  ;;  %v9247_v60 = vpop.permute.xlu1 %9246 }
0x32c8   :  { %8969 = vmatpush3.bf16.msra.mxu0 %v8968_v7  ;;  %v9249_v49 = vunpack.i.h.bf16 %v9247_v60  ;;  %v9248_v61 = vunpack.i.l.bf16 %v9247_v60 }
0x32c9   :  { %8973 = vmatprep.subr.bf16.mxu0 %v9552_v35 }
0x32ca   :  { %v8974_v17 = vpack.c.bf16 %v9249_v49, %v9248_v61 }
0x32cb   :  { %v9252_v47 = vpop.permute.xlu1 %9251 }
0x32cc   :  { %v9254_v10 = vunpack.i.h.bf16 %v9252_v47  ;;  %v9253_v23 = vunpack.i.l.bf16 %v9252_v47 }
0x32ce   :  { %v8978_v9 = vpack.c.bf16 %v9254_v10, %v9253_v23 }
0x32cf   :  { %v6425_v44 = vpop.permute.xlu1 %6424 }
0x32d0   :  { %v9468_v20 = vpop.eup %9467 }
0x32d1   :  { %v6259_v55 = vsel %vm1981_vm4, %v9468_v20, 0.0  ;;  %v9470_v30 = vpop.eup %9469 }
0x32d2   :  { %6260 = vadd.xlane.f32.xlu0 %v6259_v55  ;;  %v6256_v46 = vsel %vm1981_vm4, %v9470_v30, 0.0 }
0x32d6   :  { %6257 = vadd.xlane.f32.xlu0 %v6256_v46 }
0x32ec   :  { %9241 = vrot.lane.b32.xlu0 %v9851_v4, %s9553_s30 }
0x32f0   :  { %6506 = vrot.lane.b32.xlu0 %v10655_v59, %s9545_s21 }
0x335f   :  { %v6261_v48 = vpop.xlane.xlu0 %6260 }
0x3360   :  { %9471 = vrcp.f32 %v6261_v48 }
0x3363   :  { %v6258_v50 = vpop.xlane.xlu0 %6257 }
0x3364   :  { %9473 = vrcp.f32 %v6258_v50 }
0x3367   :  { %v9242_v5 = vpop.permute.xlu0 %9241 }
0x3368   :  { %v9244_v54 = vunpack.i.h.bf16 %v9242_v5  ;;  %v9243_v11 = vunpack.i.l.bf16 %v9242_v5 }
0x336a   :  { %v9472_v1 = vpop.eup %9471  ;;  %v8971_v2 = vpack.c.bf16 %v9244_v54, %v9243_v11 }
0x336b   :  { %v6265_v13 = vmul.f32 %v9472_v1, %v9468_v20  ;;  %v6507_v18 = vpop.permute.xlu0 %6506 }
0x336c   :  { %8972 = vmatpush3.bf16.msra.mxu1 %v8971_v2 }
0x336d   :  { %8977 = vmatprep.subr.bf16.mxu1 %v9552_v35 }
0x336e   :  { %v9474_v56 = vpop.eup %9473 }
0x336f   :  { %v6263_v15 = vmul.f32 %v9474_v56, %v9470_v30  ;;  %8643 = vmatmul.mubr.msk.f32.vlgmr.msra.gmra.mrb[80].mxu1 %vm1981_vm4, %v6265_v13 }
0x3370   :  { %8656 = vmatprep.mubr.msk.f32.mxu1 %vm9539_vm2, %v9538_v42 }
0x3371   :  { %8636 = vmatmul.mubr.msk.f32.vlgmr.msra.gmra.mrb[56].mxu0 %vm1981_vm4, %v6263_v15 }
0x3372   :  { %8976 = vmatpush3.bf16.xpose.msk.msra.mxu0 %vm10018_vm6, %v8974_v17  ;;  %8649 = vmatprep.mubr.msk.f32.mxu0 %vm9539_vm2, %v9538_v42 }
0x3373   :  { %8981 = vmatprep.subr.bf16.mxu0 %v9552_v35 }
0x3375   :  { %8980 = vmatpush3.bf16.xpose.msk.msra.mxu1 %vm10018_vm6, %v8978_v9 }
0x3376   :  { %8984 = vmatprep.subr.bf16.mxu1 %v9552_v35 }
0x3379   :  { %8650 = vmatmul.mubr.msk.f32.vlgmr.msra.gmra.mrb[58].mxu0 %vm631_vm3, %v6425_v44 }
0x337a   :  { %8663 = vmatprep.mubr.msk.f32.mxu0 %vm9539_vm2, %v9538_v42 }
0x337c   :  { %8657 = vmatmul.mubr.msk.f32.vlgmr.msra.gmra.mrb[82].mxu1 %vm631_vm3, %v6507_v18 }
0x337d   :  { %8670 = vmatprep.mubr.msk.f32.mxu1 %vm9539_vm2, %v9538_v42 }
0x3442   :  { %v10743_v45 = vpop.f32.mrb[80].mxu1 }
0x3443   :  { %v8644_v24 = vpop.f32.mrb[81].mxu1 }
0x3444   :  { %v10745_v26 = vpop.f32.mrb[56].mxu0 }
0x3445   :  { %v8637_v19 = vpop.f32.mrb[57].mxu0 }
0x344c   :  { %v6502_v6 = vpop.f32.mrb[58].mxu0 }
0x344d   :  { %v6588_v29 = vmul.f32 0.35355338, %v6502_v6  ;;  %v8651_v34 = vpop.f32.mrb[59].mxu0 }
0x344f   :  { %v6584_v28 = vpop.f32.mrb[82].mxu1  ;;  %v6590_v37 = vsel %vm1981_vm4, %v6588_v29, -inf }
0x3450   :  { %v6589_v51 = vmul.f32 0.35355338, %v6584_v28  ;;  %6591 = vmax.xlane.f32.xlu1 %v6590_v37  ;;  %v8658_v3 = vpop.f32.mrb[83].mxu1 }
0x3452   :  { %v6593_v43 = vsel %vm1981_vm4, %v6589_v51, -inf }
0x3453   :  { %6594 = vmax.xlane.f32.xlu0 %v6593_v43 }
0x3461   :  { %9256 = vrot.lane.b32.xlu1 %v9841_v0, %s9551_s29 }
0x3465   :  { %9266 = vrot.lane.b32.xlu1 %v9841_v0, %s9549_s27 }
0x3469   :  { %9271 = vrot.lane.b32.xlu1 %v9851_v4, %s9549_s27 }
0x346d   :  { %6770 = vrot.lane.b32.xlu1 %v10657_v40, %s9548_s26 }
0x34dd   :  { %v6592_v52 = vpop.xlane.xlu1 %6591 }
0x34de   :  { %v6596_v58 = vsub.f32 %v6588_v29, %v6592_v52 }
0x34e0   :  { %v6595_v39 = vpop.xlane.xlu0 %6594  ;;  %v6598_v55 = vmul.f32 1.442695, %v6596_v58 }
0x34e1   :  { %v6597_v8 = vsub.f32 %v6589_v51, %v6595_v39  ;;  %v9257_v53 = vpop.permute.xlu1 %9256  ;;  %v9290_v39 = vpack.i.bf16 %v10639_v62, %v10634_v41 }
0x34e2   :  { %v9259_v7 = vunpack.i.h.bf16 %v9257_v53  ;;  %v9258_v20 = vunpack.i.l.bf16 %v9257_v53 }
0x34e3   :  { %v6600_v30 = vmul.f32 1.442695, %v6597_v8 }
0x34e4   :  { %v8982_v46 = vpack.c.bf16 %v9259_v7, %v9258_v20 }
0x34e5   :  { %9475 = vpow2.f32 %v6600_v30  ;;  %v9267_v11 = vpop.permute.xlu1 %9266 }
0x34e6   :  { %8983 = vmatpush3.bf16.msra.mxu0 %v8982_v46  ;;  %9477 = vpow2.f32 %v6598_v55  ;;  %v9269_v13 = vunpack.i.h.bf16 %v9267_v11  ;;  %v9268_v56 = vunpack.i.l.bf16 %v9267_v11 }
0x34e7   :  { %8987 = vmatprep.subr.bf16.mxu0 %v9552_v35 }
0x34e8   :  { %v8988_v44 = vpack.c.bf16 %v9269_v13, %v9268_v56 }
0x34e9   :  { %v9272_v10 = vpop.permute.xlu1 %9271 }
0x34ea   :  { %v9274_v17 = vunpack.i.h.bf16 %v9272_v10 }
0x34ed   :  { %v6771_v24 = vpop.permute.xlu1 %6770 }
0x34ef   :  { %v9476_v48 = vpop.eup %9475 }
0x34f0   :  { %v6605_v50 = vsel %vm1981_vm4, %v9476_v48, 0.0  ;;  %v9478_v60 = vpop.eup %9477 }
0x34f1   :  { %6606 = vadd.xlane.f32.xlu0 %v6605_v50  ;;  %v6602_v40 = vsel %vm1981_vm4, %v9478_v60, 0.0 }
0x34f5   :  { %6603 = vadd.xlane.f32.xlu0 %v6602_v40 }
0x350b   :  { %9261 = vrot.lane.b32.xlu0 %v9851_v4, %s9551_s29 }
0x350f   :  { %6852 = vrot.lane.b32.xlu0 %v10655_v59, %s9548_s26  ;;  %v9273_v59 = vunpack.i.l.bf16 %v9272_v10 }
0x3511   :  { %v8992_v18 = vpack.c.bf16 %v9274_v17, %v9273_v59 }
0x357e   :  { %v6607_v5 = vpop.xlane.xlu0 %6606 }
0x357f   :  { %9479 = vrcp.f32 %v6607_v5 }
0x3582   :  { %v6604_v54 = vpop.xlane.xlu0 %6603 }
0x3583   :  { %9481 = vrcp.f32 %v6604_v54 }
0x3586   :  { %v9262_v1 = vpop.permute.xlu0 %9261 }
0x3587   :  { %v9264_v2 = vunpack.i.h.bf16 %v9262_v1  ;;  %v9263_v49 = vunpack.i.l.bf16 %v9262_v1 }
0x3589   :  { %v9480_v61 = vpop.eup %9479  ;;  %v8985_v47 = vpack.c.bf16 %v9264_v2, %v9263_v49 }
0x358a   :  { %v6611_v23 = vmul.f32 %v9480_v61, %v9476_v48  ;;  %v6853_v19 = vpop.permute.xlu0 %6852 }
0x358b   :  { %8986 = vmatpush3.bf16.msra.mxu1 %v8985_v47 }
0x358c   :  { %8991 = vmatprep.subr.bf16.mxu1 %v9552_v35 }
0x358d   :  { %v9482_v15 = vpop.eup %9481 }
0x358e   :  { %v6609_v9 = vmul.f32 %v9482_v15, %v9478_v60  ;;  %8671 = vmatmul.mubr.msk.f32.vlgmr.msra.gmra.mrb[84].mxu1 %vm1981_vm4, %v6611_v23 }
0x358f   :  { %8684 = vmatprep.mubr.msk.f32.mxu1 %vm9539_vm2, %v9538_v42 }
0x3590   :  { %8664 = vmatmul.mubr.msk.f32.vlgmr.msra.gmra.mrb[60].mxu0 %vm1981_vm4, %v6609_v9 }
0x3591   :  { %8990 = vmatpush3.bf16.xpose.msk.msra.mxu0 %vm10018_vm6, %v8988_v44  ;;  %8677 = vmatprep.mubr.msk.f32.mxu0 %vm9539_vm2, %v9538_v42 }
0x3592   :  { %8995 = vmatprep.subr.bf16.mxu0 %v9552_v35 }
0x3594   :  { %8994 = vmatpush3.bf16.xpose.msk.msra.mxu1 %vm10018_vm6, %v8992_v18 }
0x3595   :  { %8998 = vmatprep.subr.bf16.mxu1 %v9552_v35 }
0x3598   :  { %8678 = vmatmul.mubr.msk.f32.vlgmr.msra.gmra.mrb[62].mxu0 %vm631_vm3, %v6771_v24 }
0x3599   :  { %8691 = vmatprep.mubr.msk.f32.mxu0 %vm9539_vm2, %v9538_v42 }
0x359b   :  { %8685 = vmatmul.mubr.msk.f32.vlgmr.msra.gmra.mrb[86].mxu1 %vm631_vm3, %v6853_v19 }
0x359c   :  { %8698 = vmatprep.mubr.msk.f32.mxu1 %vm9539_vm2, %v9538_v42  ;;  %v9285_v42 = vpack.i.bf16 %v10625_v25, %v10620_v31 }
0x3661   :  { %v6766_v6 = vpop.f32.mrb[84].mxu1 }
0x3662   :  { %v8672_v29 = vpop.f32.mrb[85].mxu1 }
0x3663   :  { %v6687_v34 = vpop.f32.mrb[60].mxu0 }
0x3664   :  { %v8665_v28 = vpop.f32.mrb[61].mxu0 }
0x366b   :  { %v6848_v57 = vpop.f32.mrb[62].mxu0 }
0x366c   :  { %v6934_v37 = vmul.f32 0.35355338, %v6848_v57  ;;  %v8679_v51 = vpop.f32.mrb[63].mxu0 }
0x366e   :  { %v6930_v35 = vpop.f32.mrb[86].mxu1  ;;  %v6936_v3 = vsel %vm1981_vm4, %v6934_v37, -inf }
0x366f   :  { %v6935_v43 = vmul.f32 0.35355338, %v6930_v35  ;;  %6937 = vmax.xlane.f32.xlu1 %v6936_v3  ;;  %v8686_v52 = vpop.f32.mrb[87].mxu1 }
0x3671   :  { %v6939_v58 = vsel %vm1981_vm4, %v6935_v43, -inf }
0x3672   :  { %6940 = vmax.xlane.f32.xlu0 %v6939_v58 }
0x3680   :  { %9276 = vrot.lane.b32.xlu1 %v9841_v0, %s9550_s28 }
0x3684   :  { %9286 = vrot.lane.b32.xlu1 %v9285_v42, %s9537_s25 }
0x3688   :  { %9291 = vrot.lane.b32.xlu1 %v9290_v39, %s9537_s25  ;;  %s7688_s25 = sshll.u32 %s9554_s24, 4  ;;  %s7689_s25 = int_to_ptr.vmem [resolvable:$true] %s7688_s25 }
0x3689   :  { %s9512_s18 = scalar_lea.vmem %s7689_s25, 256  ;;  %p9517_p1 = scmp.lt.s32.totalorder %s7689_s25, %s7689_s25 }
0x368a   :  { %p9513_p0 = scmp.ne.s32.totalorder %s7689_s25, %s9512_s18  ;;  %p9518_p2 = scmp.lt.s32.totalorder %s9512_s18, %s9512_s18 }
0x368c   :  { %7118 = vrot.lane.b32.xlu1 %v10745_v26, %s9550_s28  ;;  %p9519_p3 = por %p9518_p2, %p9517_p1 }
0x368e   :  { %p9520_p4 = pnand %p9519_p3, %p9513_p0 }
0x3690   :  { %7126 = vrot.lane.b32.xlu1 %v6687_v34, %s9551_s29 }
0x36fc   :  { %v6938_v8 = vpop.xlane.xlu1 %6937 }
0x36fd   :  { %v6942_v53 = vsub.f32 %v6934_v37, %v6938_v8 }
0x36ff   :  { %v6941_v7 = vpop.xlane.xlu0 %6940  ;;  %v6944_v46 = vmul.f32 1.442695, %v6942_v53 }
0x3700   :  { %v6943_v20 = vsub.f32 %v6935_v43, %v6941_v7  ;;  %v9277_v0 = vpop.permute.xlu1 %9276 }
0x3701   :  { %v9279_v55 = vunpack.i.h.bf16 %v9277_v0  ;;  %v9278_v30 = vunpack.i.l.bf16 %v9277_v0 }
0x3702   :  { %v6946_v48 = vmul.f32 1.442695, %v6943_v20 }
0x3703   :  { %v8996_v50 = vpack.c.bf16 %v9279_v55, %v9278_v30 }
0x3704   :  { %9483 = vpow2.f32 %v6946_v48  ;;  %v9287_v60 = vpop.permute.xlu1 %9286 }
0x3705   :  { %v9289_v40 = vunpack.i.h.bf16 %v9287_v60  ;;  %v9288_v5 = vunpack.i.l.bf16 %v9287_v60  ;;  %8997 = vmatpush3.bf16.msra.mxu0 %v8996_v50  ;;  %9485 = vpow2.f32 %v6944_v46  ;;  %v7786_v46 = vld [vmem:[%s10964_s3 + $0xb8] sm:$0xff] }
0x3706   :  { %v9310_v48 = vpack.i.bf16 %v7786_v46, %v10639_v62  ;;  %v7780_v62 = vld [vmem:[%s10964_s3 + $0x88] sm:$0xff]  ;;  %v7859_v46 = vld [vmem:[%s10965_s4 + $0xb0] sm:$0xff] }
0x3707   :  { %v9001_v54 = vpack.c.bf16 %v9289_v40, %v9288_v5 }
0x3708   :  { %v9292_v23 = vpop.permute.xlu1 %9291 }
0x3709   :  { %9002 = vmatprep.subr.bf16.mxu0 %v9001_v54  ;;  %v9294_v17 = vunpack.i.h.bf16 %v9292_v23  ;;  %v9293_v59 = vunpack.i.l.bf16 %v9292_v23 }
0x370b   :  { %v9005_v44 = vpack.c.bf16 %v9294_v17, %v9293_v59 }
0x370c   :  { %v7119_v34 = vpop.permute.xlu1 %7118 }
0x370d   :  { %v7140_v37 = vsel %vm631_vm3, %v10705_v14, %v7119_v34  ;;  %v7149_v14 = vrot.slane %v10594_v22, %v9748_v36  ;;  %v7777_v36 = vld [vmem:[%s10964_s3 + $0x70] sm:$0xff] }
0x370e   :  { %v9484_v26 = vpop.eup %9483  ;;  %v9295_v30 = vpack.i.bf16 %v7777_v36, %v10620_v31 }
0x370f   :  { %v6951_v11 = vsel %vm1981_vm4, %v9484_v26, 0.0  ;;  %v9486_v1 = vpop.eup %9485 }
0x3710   :  { %6952 = vadd.xlane.f32.xlu0 %v6951_v11  ;;  %v6948_v2 = vsel %vm1981_vm4, %v9486_v1, 0.0  ;;  %v7127_v57 = vpop.permute.xlu1 %7126 }
0x3711   :  { %v7142_v35 = vsel %vm1981_vm4, %v7140_v37, %v7127_v57 }
0x3714   :  { %6949 = vadd.xlane.f32.xlu0 %v6948_v2  ;;  %v9300_v2 = vpack.i.bf16 %v7780_v62, %v10625_v25  ;;  %v7867_v62 = vld [vmem:[%s10965_s4 + $0xf0] sm:$0xff] }
0x372a   :  { %9281 = vrot.lane.b32.xlu0 %v9851_v4, %s9550_s28 }
0x372e   :  { %7120 = vrot.lane.b32.xlu0 %v10743_v45, %s9550_s28 }
0x3732   :  { %7128 = vrot.lane.b32.xlu0 %v6766_v6, %s9551_s29 }
0x379d   :  { %v6953_v49 = vpop.xlane.xlu0 %6952 }
0x379e   :  { %9487 = vrcp.f32 %v6953_v49 }
0x37a1   :  { %v6950_v61 = vpop.xlane.xlu0 %6949 }
0x37a2   :  { %9489 = vrcp.f32 %v6950_v61 }
0x37a5   :  { %v9282_v47 = vpop.permute.xlu0 %9281 }
0x37a6   :  { %v9284_v13 = vunpack.i.h.bf16 %v9282_v47  ;;  %v9283_v56 = vunpack.i.l.bf16 %v9282_v47 }
0x37a8   :  { %v9488_v10 = vpop.eup %9487  ;;  %v8999_v15 = vpack.c.bf16 %v9284_v13, %v9283_v56 }
0x37a9   :  { %v6957_v9 = vmul.f32 %v9488_v10, %v9484_v26  ;;  %v7121_v29 = vpop.permute.xlu0 %7120 }
0x37aa   :  { %9000 = vmatpush3.bf16.msra.mxu1 %v8999_v15  ;;  %v7141_v3 = vsel %vm631_vm3, %v10703_v21, %v7121_v29 }
0x37ac   :  { %v9490_v4 = vpop.eup %9489 }
0x37ad   :  { %v6955_v18 = vmul.f32 %v9490_v4, %v9486_v1  ;;  %8699 = vmatmul.mubr.msk.f32.vlgmr.msra.gmra.mrb[88].mxu1 %vm1981_vm4, %v6957_v9  ;;  %v7129_v28 = vpop.permute.xlu0 %7128 }
0x37ae   :  { %v7143_v52 = vsel %vm1981_vm4, %v7141_v3, %v7129_v28  ;;  %v7278_v3 = vrot.slane %v10594_v22, %v9668_v63  ;;  %v7854_v63 = vld [vmem:[%s10965_s4 + $0x88] sm:$0xff] }
0x37af   :  { %8692 = vmatmul.mubr.msk.f32.vlgmr.msra.gmra.mrb[64].mxu0 %vm1981_vm4, %v6955_v18 }
0x37b0   :  { %9004 = vmatpush3.bf16.msra.mxu0 %v9001_v54 }
0x37b1   :  { %9006 = vmatprep.subr.bf16.mxu0 %v9005_v44 }
0x37b4   :  { %9008 = vmatpush3.bf16.msra.mxu0 %v9005_v44 }
0x3880   :  { %v7112_v45 = vpop.f32.mrb[88].mxu1 }
0x3881   :  { %7136 = vrot.lane.b32.xlu0 %v7112_v45, %s9553_s30  ;;  %v8700_v24 = vpop.f32.mrb[89].mxu1 }
0x3882   :  { %v7033_v19 = vpop.f32.mrb[64].mxu0 }
0x3883   :  { %7134 = vrot.lane.b32.xlu1 %v7033_v19, %s9553_s30  ;;  %v8693_v6 = vpop.f32.mrb[65].mxu0 }
0x38f3   :  { %v7137_v51 = vpop.permute.xlu0 %7136 }
0x38f4   :  { %v7145_v42 = vsel %vm1984_vm5, %v7143_v52, %v7137_v51 }
0x38f5   :  { %v7135_v43 = vpop.permute.xlu1 %7134 }
0x38f6   :  { %v7144_v58 = vsel %vm1984_vm5, %v7142_v35, %v7135_v43 }
0x38f7   :  { %8709 = vmatprep.mubr.msk.f32.mxu0 %vm294_vm1, %v7144_v58 }
0x38f8   :  { %8710 = vmatmul.mubr.msk.f32.vlgmr.msra.gmra.mrb[66].mxu0 %vm294_vm1, %v7145_v42  ;;  %v7284_v42 = vrot.slane %v10594_v22, %v9694_v33 }
0x39cb   :  { %v8711_v39 = vpop.f32.mrb[66].mxu0 }
0x39cc   :  { %v7244_v8 = vadd.f32 %v8711_v39, %v7149_v14  ;;  %v7238_v53 = vpop.f32.mrb[67].mxu0 }
0x39cd   :  { %v7239_v7 = vadd.f32 %v7238_v53, %v7149_v14  ;;  %v7853_v53 = vld [vmem:[%s10965_s4 + $0x80] sm:$0xff] }
0x39ce   :  { %v10820_v21 = vadd.f32 %v7244_v8, %v10599_v12  ;;  %v7783_v12 = vld [vmem:[%s10964_s3 + $0xa0] sm:$0xff] }
0x39cf   :  { %v10823_v20 = vadd.f32 %v7239_v7, %v10602_v27  ;;  %v9305_v27 = vpack.i.bf16 %v7783_v12, %v10634_v41  ;;  %v9017_v7 = vpack.c.bf16 %v7854_v63, %v7853_v53  ;;  %v7857_v12 = vld [vmem:[%s10965_s4 + $0xa0] sm:$0xff] }
0x39d0   :  { %v7252_v0 = vsel %vm294_vm1, %v10820_v21, 0.0 }
0x39d1   :  { %7253 = vadd.xlane.f32.xlu0 %v7252_v0  ;;  %v7249_v55 = vsel %vm294_vm1, %v10823_v20, 0.0  ;;  %9018 = vmatprep.subr.bf16.mxu0 %v9017_v7  ;;  %v7855_v0 = vld [vmem:[%s10965_s4 + $0x90] sm:$0xff] }
0x39d2   :  { %7250 = vadd.xlane.f32.xlu1 %v7249_v55  ;;  %9020 = vmatpush3.bf16.msra.mxu0 %v9017_v7  ;;  %v7856_v55 = vld [vmem:[%s10965_s4 + $0x98] sm:$0xff] }
0x39d3   :  { %v9021_v36 = vpack.c.bf16 %v7856_v55, %v7855_v0 }
0x39d5   :  { %9022 = vmatprep.subr.bf16.mxu0 %v9021_v36 }
0x39d6   :  { %9024 = vmatpush3.bf16.msra.mxu0 %v9021_v36 }
0x39e3   :  { %9296 = vrot.lane.b32.xlu1 %v9295_v30, %s9540_s16  ;;  %v7858_v30 = vld [vmem:[%s10965_s4 + $0xa8] sm:$0xff] }
0x39e7   :  { %9306 = vrot.lane.b32.xlu1 %v9305_v27, %s9540_s16  ;;  %v9025_v27 = vpack.c.bf16 %v7858_v30, %v7857_v12 }
0x39e9   :  { %9026 = vmatprep.subr.bf16.mxu0 %v9025_v27 }
0x39ea   :  { %9028 = vmatpush3.bf16.msra.mxu0 %v9025_v27 }
0x39eb   :  { %9311 = vrot.lane.b32.xlu1 %v9310_v48, %s9540_s16  ;;  %v7860_v48 = vld [vmem:[%s10965_s4 + $0xb8] sm:$0xff] }
0x3a5e   :  { %v7254_v50 = vpop.xlane.xlu0 %7253 }
0x3a5f   :  { %v7256_v60 = vmul.f32 0.03125, %v7254_v50  ;;  %v7251_v40 = vpop.xlane.xlu1 %7250  ;;  %v9029_v50 = vpack.c.bf16 %v7860_v48, %v7859_v46 }
0x3a60   :  { %v7255_v5 = vmul.f32 0.03125, %v7251_v40  ;;  %v7862_v40 = vld [vmem:[%s10965_s4 + $0xc8] sm:$0xff] }
0x3a61   :  { %v7258_v31 = vsub.f32 %v10820_v21, %v7256_v60  ;;  %9030 = vmatprep.subr.bf16.mxu0 %v9029_v50  ;;  %v7861_v60 = vld [vmem:[%s10965_s4 + $0xc0] sm:$0xff] }
0x3a62   :  { %v7257_v54 = vsub.f32 %v10823_v20, %v7255_v5  ;;  %9032 = vmatpush3.bf16.msra.mxu0 %v9029_v50  ;;  %v9033_v5 = vpack.c.bf16 %v7862_v40, %v7861_v60 }
0x3a63   :  { %v7260_v26 = vmul.f32 %v7258_v31, %v7258_v31  ;;  %v9297_v49 = vpop.permute.xlu1 %9296 }
0x3a64   :  { %v7259_v11 = vmul.f32 %v7257_v54, %v7257_v54  ;;  %v9299_v15 = vunpack.i.h.bf16 %v9297_v49  ;;  %v9298_v17 = vunpack.i.l.bf16 %v9297_v49  ;;  %9034 = vmatprep.subr.bf16.mxu0 %v9033_v5 }
0x3a65   :  { %v7264_v41 = vsel %vm294_vm1, %v7260_v26, 0.0 }
0x3a66   :  { %7265 = vadd.xlane.f32.xlu0 %v7264_v41  ;;  %v7261_v1 = vsel %vm294_vm1, %v7259_v11, 0.0  ;;  %v7311_v25 = vsel %vm31_vm0, %v9298_v17, %v9299_v15  ;;  %9036 = vmatpush3.bf16.msra.mxu0 %v9033_v5  ;;  %v7865_v41 = vld [vmem:[%s10965_s4 + $0xe0] sm:$0xff]  ;;  %v7866_v11 = vld [vmem:[%s10965_s4 + $0xe8] sm:$0xff] }
0x3a67   :  { %v9307_v61 = vpop.permute.xlu1 %9306 }
0x3a68   :  { %v9309_v59 = vunpack.i.h.bf16 %v9307_v61  ;;  %v9308_v9 = vunpack.i.l.bf16 %v9307_v61  ;;  %v7290_v61 = vrot.slane %v10594_v22, %v10079_v32 }
0x3a6a   :  { %7262 = vadd.xlane.f32.xlu0 %v7261_v1  ;;  %v7313_v19 = vsel %vm31_vm0, %v9308_v9, %v9309_v59  ;;  %v9041_v1 = vpack.c.bf16 %v7866_v11, %v7865_v41 }
0x3a6b   :  { %v9312_v56 = vpop.permute.xlu1 %9311 }
0x3a6c   :  { %v9314_v44 = vunpack.i.h.bf16 %v9312_v56  ;;  %v9313_v18 = vunpack.i.l.bf16 %v9312_v56 }
0x3a6e   :  { %v7314_v34 = vsel %vm31_vm0, %v9313_v18, %v9314_v44 }
0x3a6f   :  { %v9013_v37 = vpack.c.bf16 %v7314_v34, %v7313_v19 }
0x3a80   :  { %9301 = vrot.lane.b32.xlu0 %v9300_v2, %s9540_s16  ;;  %v7868_v2 = vld [vmem:[%s10965_s4 + $0xf8] sm:$0xff] }
0x3a81   :  { %v9045_v49 = vpack.c.bf16 %v7868_v2, %v7867_v62  ;;  %v9509_v62 = vld [vmem:[%s10962_s1 + $0x18] sm:$0xff] }
0x3a82   :  { %v7551_v2 = vrot.slane %v9509_v62, %v9754_v38 }
0x3af3   :  { %v7266_v47 = vpop.xlane.xlu0 %7265 }
0x3af4   :  { %v7268_v13 = vmul.f32 0.03125, %v7266_v47 }
0x3af6   :  { %v7270_v10 = vadd.f32 1e-05, %v7268_v13 }
0x3af7   :  { %v7263_v23 = vpop.xlane.xlu0 %7262 }
0x3af8   :  { %9491 = vrsqrt.f32 %v7270_v10  ;;  %v7267_v4 = vmul.f32 0.03125, %v7263_v23 }
0x3afa   :  { %v7269_v45 = vadd.f32 1e-05, %v7267_v4 }
0x3afb   :  { %v9302_v24 = vpop.permute.xlu0 %9301 }
0x3afc   :  { %9493 = vrsqrt.f32 %v7269_v45  ;;  %v9304_v6 = vunpack.i.h.bf16 %v9302_v24  ;;  %v9303_v29 = vunpack.i.l.bf16 %v9302_v24 }
0x3afe   :  { %v7312_v28 = vsel %vm31_vm0, %v9303_v29, %v9304_v6 }
0x3aff   :  { %v9009_v57 = vpack.c.bf16 %v7312_v28, %v7311_v25 }
0x3b01   :  { %9010 = vmatprep.subr.bf16.mxu1 %v9009_v57 }
0x3b02   :  { %v9492_v51 = vpop.eup %9491  ;;  %9012 = vmatpush3.bf16.msra.mxu1 %v9009_v57 }
0x3b03   :  { %9014 = vmatprep.subr.bf16.mxu1 %v9013_v37  ;;  %v7274_v35 = vmul.f32 %v9492_v51, %v7258_v31  ;;  %v7863_v31 = vld [vmem:[%s10965_s4 + $0xd0] sm:$0xff] }
0x3b05   :  { %v7280_v58 = vmul.f32 %v7278_v3, %v7274_v35 }
0x3b06   :  { %v9494_v43 = vpop.eup %9493  ;;  %9016 = vmatpush3.bf16.msra.mxu1 %v9013_v37 }
0x3b07   :  { %v7273_v52 = vmul.f32 %v9494_v43, %v7257_v54  ;;  %v7286_v8 = vadd.f32 %v7284_v42, %v7280_v58  ;;  %v7864_v54 = vld [vmem:[%s10965_s4 + $0xd8] sm:$0xff] }
0x3b08   :  { %v9037_v26 = vpack.c.bf16 %v7864_v54, %v7863_v31 }
0x3b09   :  { %v7279_v14 = vmul.f32 %v7278_v3, %v7273_v52 }
0x3b0a   :  { %9038 = vmatprep.subr.bf16.mxu0 %v9037_v26 }
0x3b0b   :  { %v7285_v39 = vadd.f32 %v7284_v42, %v7279_v14  ;;  %9040 = vmatpush3.bf16.msra.mxu0 %v9037_v26 }
0x3b0c   :  { %9042 = vmatprep.subr.bf16.mxu0 %v9041_v1 }
0x3b0d   :  { %8720 = vmatprep.mubr.msk.f32.mxu1 %vm294_vm1, %v7285_v39 }
0x3b0e   :  { %8721 = vmatmul.mubr.msk.f32.vlgmr.msra.gmra.mrb[90].mxu1 %vm294_vm1, %v7286_v8 }
0x3b0f   :  { %9044 = vmatpush3.bf16.msra.mxu0 %v9041_v1 }
0x3b10   :  { %9046 = vmatprep.subr.bf16.mxu0 %v9045_v49 }
0x3b13   :  { %9048 = vmatpush3.bf16.msra.mxu0 %v9045_v49 }
0x3be1   :  { %v8722_v47 = vpop.f32.mrb[90].mxu1 }
0x3be2   :  { %v7397_v13 = vadd.f32 %v8722_v47, %v7290_v61  ;;  %v7391_v56 = vpop.f32.mrb[91].mxu1 }
0x3be3   :  { %v7392_v10 = vadd.f32 %v7391_v56, %v7290_v61 }
0x3be4   :  { %v7403_v23 = vmul.f32 0.70710677, %v7397_v13  ;;  %v7401_v41 = vmul.f32 0.5, %v7397_v13 }
0x3be5   :  { %v7402_v15 = vmul.f32 0.70710677, %v7392_v10  ;;  %v7400_v54 = vmul.f32 0.5, %v7392_v10 }
0x3be6   :  { %v7405_v17 = vand.u32 2147483647, %v7403_v23  ;;  %vm7445_vm9 = vcmp.lt.f32.partialorder %v7403_v23, 0.0 }
0x3be7   :  { %v7404_v59 = vand.u32 2147483647, %v7402_v15  ;;  %vm7444_vm10 = vcmp.lt.f32.partialorder %v7402_v15, 0.0 }
0x3be8   :  { %v7407_v9 = vmul.f32 0.3275911, %v7405_v17  ;;  %v7433_v45 = vsub.f32 0.0, %v7405_v17 }
0x3be9   :  { %v7406_v4 = vmul.f32 0.3275911, %v7404_v59  ;;  %v7432_v24 = vsub.f32 0.0, %v7404_v59 }
0x3bea   :  { %v7409_v44 = vadd.f32 1.0, %v7407_v9  ;;  %v7435_v19 = vmul.f32 %v7433_v45, %v7405_v17 }
0x3beb   :  { %v7408_v18 = vadd.f32 1.0, %v7406_v4  ;;  %v7434_v29 = vmul.f32 %v7432_v24, %v7404_v59  ;;  %v7592_v24 = vld [vmem:[%s10963_s2 + $0x60] sm:$0xff] }
0x3bec   :  { %9495 = vrcp.f32 %v7409_v44  ;;  %v7438_v57 = vmul.f32 1.442695, %v7435_v19 }
0x3bed   :  { %9497 = vrcp.f32 %v7408_v18  ;;  %v7436_v35 = vmul.f32 1.442695, %v7434_v29 }
0x3bee   :  { %9499 = vpow2.f32 %v7438_v57 }
0x3bef   :  { %9501 = vpow2.f32 %v7436_v35 }
0x3bf6   :  { %v9496_v25 = vpop.eup %9495 }
0x3bf7   :  { %v9498_v6 = vpop.eup %9497  ;;  %v7415_v22 = vmul.f32 1.0614054, %v9496_v25 }
0x3bf8   :  { %v7414_v34 = vmul.f32 1.0614054, %v9498_v6  ;;  %v9500_v55 = vpop.eup %9499 }
0x3bf9   :  { %v7417_v28 = vadd.f32 -1.4531521, %v7415_v22  ;;  %v9502_v12 = vpop.eup %9501  ;;  %v7595_v22 = vld [vmem:[%s10963_s2 + $0x78] sm:$0xff] }
0x3bfa   :  { %v7416_v37 = vadd.f32 -1.4531521, %v7414_v34 }
0x3bfb   :  { %v7419_v51 = vmul.f32 %v9496_v25, %v7417_v28 }
0x3bfc   :  { %v7418_v3 = vmul.f32 %v9498_v6, %v7416_v37 }
0x3bfd   :  { %v7421_v43 = vadd.f32 1.4214138, %v7419_v51 }
0x3bfe   :  { %v7420_v52 = vadd.f32 1.4214138, %v7418_v3  ;;  %v9510_v3 = vld [vmem:[%s10962_s1] sm:$0xff] }
0x3bff   :  { %v7423_v58 = vmul.f32 %v9496_v25, %v7421_v43  ;;  %v7583_v43 = vrot.slane %v9510_v3, %v10079_v32 }
0x3c00   :  { %v7422_v42 = vmul.f32 %v9498_v6, %v7420_v52 }
0x3c01   :  { %v7425_v14 = vadd.f32 -0.28449672, %v7423_v58 }
0x3c02   :  { %v7424_v39 = vadd.f32 -0.28449672, %v7422_v42  ;;  %v7589_v42 = vrot.slane %v9510_v3, %v10303_v16 }
0x3c03   :  { %v7427_v8 = vmul.f32 %v9496_v25, %v7425_v14 }
0x3c04   :  { %v7426_v53 = vmul.f32 %v9498_v6, %v7424_v39 }
0x3c05   :  { %v7429_v63 = vadd.f32 0.2548296, %v7427_v8 }
0x3c06   :  { %v7428_v7 = vadd.f32 0.2548296, %v7426_v53 }
0x3c07   :  { %v7431_v0 = vmul.f32 %v9496_v25, %v7429_v63  ;;  %v7593_v25 = vld [vmem:[%s10963_s2 + $0x68] sm:$0xff] }
0x3c08   :  { %v7430_v36 = vmul.f32 %v9498_v6, %v7428_v7  ;;  %v9049_v19 = vpack.c.bf16 %v7593_v25, %v7592_v24  ;;  %v7594_v6 = vld [vmem:[%s10963_s2 + $0x70] sm:$0xff] }
0x3c09   :  { %v7441_v30 = vmul.f32 %v9500_v55, %v7431_v0  ;;  %v9053_v29 = vpack.c.bf16 %v7595_v22, %v7594_v6  ;;  %v9511_v0 = vld [vmem:[%s10962_s1 + $0x8] sm:$0xff] }
0x3c0a   :  { %v7440_v27 = vmul.f32 %v9502_v12, %v7430_v36  ;;  %9050 = vmatprep.subr.bf16.mxu1 %v9049_v19  ;;  %v7599_v32 = vrot.slane %v9511_v0, %v9694_v33 }
0x3c0b   :  { %v7443_v46 = vsub.f32 1.0, %v7441_v30  ;;  %9052 = vmatpush3.bf16.msra.mxu1 %v9049_v19 }
0x3c0c   :  { %v7442_v48 = vsub.f32 1.0, %v7440_v27  ;;  %9054 = vmatprep.subr.bf16.mxu1 %v9053_v29 }
0x3c0d   :  { %v7447_v50 = vsub.f32 0.0, %v7443_v46 }
0x3c0e   :  { %v7446_v60 = vsub.f32 0.0, %v7442_v48 }
0x3c0f   :  { %v7449_v40 = vsel %vm7445_vm9, %v7447_v50, %v7443_v46  ;;  %9056 = vmatpush3.bf16.msra.mxu1 %v9053_v29 }
0x3c10   :  { %v7451_v5 = vadd.f32 1.0, %v7449_v40  ;;  %v7448_v31 = vsel %vm7444_vm10, %v7446_v60, %v7442_v48 }
0x3c11   :  { %v7450_v26 = vadd.f32 1.0, %v7448_v31 }
0x3c12   :  { %v7453_v1 = vmul.f32 %v7451_v5, %v7401_v41 }
0x3c13   :  { %v7452_v11 = vmul.f32 %v7450_v26, %v7400_v54 }
0x3c15   :  { %8755 = vmatprep.mubr.f32.mxu0 %v7452_v11 }
0x3c16   :  { %8756 = vmatmul.mubr.f32.vlgmr.msra.gmra.mrb[68].mxu0 %v7453_v1 }
0x3ce9   :  { %v8757_v49 = vpop.f32.mrb[68].mxu0 }
0x3cea   :  { %v7547_v61 = vadd.f32 %v8757_v49, %v10820_v21  ;;  %v7537_v47 = vpop.f32.mrb[69].mxu0 }
0x3ceb   :  { %v7546_v56 = vadd.f32 %v7537_v47, %v10823_v20 }
0x3cec   :  { %v7553_v23 = vadd.f32 %v7551_v2, %v7547_v61 }
0x3ced   :  { %v7552_v10 = vadd.f32 %v7551_v2, %v7546_v56 }
0x3cee   :  { %v7557_v13 = vsel %vm294_vm1, %v7553_v23, 0.0 }
0x3cef   :  { %7558 = vadd.xlane.f32.xlu0 %v7557_v13  ;;  %v7554_v15 = vsel %vm294_vm1, %v7552_v10, 0.0 }
0x3cf0   :  { %7555 = vadd.xlane.f32.xlu1 %v7554_v15 }
0x3d7c   :  { %v7559_v17 = vpop.xlane.xlu0 %7558 }
0x3d7d   :  { %v7561_v59 = vmul.f32 0.03125, %v7559_v17  ;;  %v7556_v9 = vpop.xlane.xlu1 %7555 }
0x3d7e   :  { %v7560_v4 = vmul.f32 0.03125, %v7556_v9 }
0x3d7f   :  { %v7563_v44 = vsub.f32 %v7553_v23, %v7561_v59 }
0x3d80   :  { %v7562_v38 = vsub.f32 %v7552_v10, %v7560_v4 }
0x3d81   :  { %v7565_v45 = vmul.f32 %v7563_v44, %v7563_v44 }
0x3d82   :  { %v7564_v18 = vmul.f32 %v7562_v38, %v7562_v38 }
0x3d83   :  { %v7569_v20 = vsel %vm294_vm1, %v7565_v45, 0.0 }
0x3d84   :  { %v7566_v21 = vsel %vm294_vm1, %v7564_v18, 0.0 }
0x3d85   :  { %7567 = vadd.xlane.f32.xlu0 %v7566_v21 }
0x3d89   :  { %7570 = vadd.xlane.f32.xlu0 %v7569_v20 }
0x3e12   :  { %v7568_v34 = vpop.xlane.xlu0 %7567 }
0x3e13   :  { %v7572_v28 = vmul.f32 0.03125, %v7568_v34 }
0x3e15   :  { %v7574_v57 = vadd.f32 1e-05, %v7572_v28 }
0x3e16   :  { %v7571_v37 = vpop.xlane.xlu0 %7570 }
0x3e17   :  { %9503 = vrsqrt.f32 %v7574_v57  ;;  %v7573_v51 = vmul.f32 0.03125, %v7571_v37 }
0x3e19   :  { %v7575_v35 = vadd.f32 1e-05, %v7573_v51 }
0x3e1b   :  { %9505 = vrsqrt.f32 %v7575_v35 }
0x3e21   :  { %v9504_v52 = vpop.eup %9503 }
0x3e22   :  { %v7578_v58 = vmul.f32 %v9504_v52, %v7562_v38 }
0x3e24   :  { %v7584_v14 = vmul.f32 %v7583_v43, %v7578_v58 }
0x3e25   :  { %v9506_v39 = vpop.eup %9505 }
0x3e26   :  { %v7579_v8 = vmul.f32 %v9506_v39, %v7563_v44  ;;  %v7590_v53 = vadd.f32 %v7589_v42, %v7584_v14 }
0x3e28   :  { %v7585_v63 = vmul.f32 %v7583_v43, %v7579_v8  ;;  %8766 = vmatprep.mubr.msk.f32.mxu1 %vm294_vm1, %v7590_v53 }
0x3e2a   :  { %v7591_v7 = vadd.f32 %v7589_v42, %v7585_v63 }
0x3e2c   :  { %8767 = vmatmul.mubr.msk.f32.vlgmr.msra.gmra.mrb[92].mxu1 %vm294_vm1, %v7591_v7 }
0x3eff   :  { %v8768_v55 = vpop.f32.mrb[92].mxu1 }
0x3f00   :  { %v7678_v16 = vadd.f32 %v8768_v55, %v7599_v32  ;;  %v7672_v36 = vpop.f32.mrb[93].mxu1 }
0x3f01   :  { %v7673_v12 = vadd.f32 %v7672_v36, %v7599_v32 }
0x3f02   :  { %7682 = vst.msk [vmem:[#allocation2 + $0x8] sm:$0xff] %vm31_vm0, %v7678_v16 }
0x3f03   :  { %7681 = vst.msk [vmem:[#allocation2] sm:$0xff] %vm31_vm0, %v7673_v12 }
0x3f04   :  { %9523 = shalt.err (!%p9520_p4)
}
0x3f05   :  { %s9524_s21 = scalar_lea.hbm %s10966_s5, 256 }
0x3f06   :  { %p9525_p5 = scmp.ne.s32.totalorder %s10966_s5, %s9524_s21  ;;  %p9528_p6 = scmp.lt.u32.totalorder %s9524_s21, %s10966_s5 }
0x3f08   :  { %p9530_p7 = pnand %p9528_p6, %p9525_p5 }
0x3f0a   :  { %9533 = shalt.err (!%p9530_p7)
}
0x3f0b   :  { %s9555_s16 = smov 128  }
0x3f0c   :  { %7694 = dma.vmem_to_hbm [thread:$0]  %s7689_s25, 256, %s10966_s5, [#allocation3], %s9555_s16, %s9555_s16, %s9550_s28  }
0x3f0d   :  { %9534 = dma.done.wait [#allocation3], 256  }
0x3f0e   :  { %9535 = vsyncadd [#allocation3], 4294967040 }
0x3f0f   :  { %7698 = vsyncpa [#allocation3], 1 }

</bundles_post_ra>
